<compile_context>
chip_gen: v7x
topology: tpu7x:2x2x1
jax: 0.10.0
libtpu: 0.0.40
codegen_flags: <defaults>
</compile_context>

<pallas_src>
import functools

import jax
import jax.numpy as jnp
from jax.experimental import pallas as pl
from jax.experimental.pallas import tpu as pltpu

WINDOW_SIZES = (3, 4, 5)
N_FILTERS = (100, 100, 100)
LANE = 128
BF16_SUBLANE = 16   # bf16 packs 16 rows per vreg


def _round_up(x, m):
    return (x + m - 1) // m * m


def cnn_kernel(x_ref, wcat_ref, bcat_ref, gw_ref, gb_ref, out_ref,
               *, window_sizes, f_pads, lp):
    """One batch tile.

    x_ref   : (TB*Lp, Ep)             bf16  flattened embedded tokens
    wcat_ref: (Ep, sum_i w_i*Fp_i)    bf16  conv weights, concat over (window, shift)
    bcat_ref: (1, sum_i Fp_i)         f32   conv biases (zero-padded lanes)
    gw_ref  : (sum_i Fp_i, Cp)        bf16  generator weights (zero-padded)
    gb_ref  : (1, Cp)                 f32   generator bias (-1e30 on padded classes)
    out_ref : (TB, Cp)                f32   log-probs
    """
    tb = x_ref.shape[0] // lp
    x = x_ref[...]                                     # load once, reuse per window

    feats = []
    off = 0
    boff = 0
    for w, fp in zip(window_sizes, f_pads):
        wlanes = w * fp
        # Per-window MXU matmul (bf16 in, f32 acc).  Splitting per window keeps
        # the peak live f32 Z slab at w_max*Fp lanes instead of sum_i w_i*Fp_i,
        # which is what bounds the batch-tile size (esp. on v7x 64 MiB VMEM).
        z = jnp.dot(x, wcat_ref[:, off:off + wlanes],
                    preferred_element_type=jnp.float32)
        z = z.reshape(tb, lp, wlanes)                   # (TB, Lp, w*Fp) f32
        t = lp - w + 1
        # conv(t, f) = sum_s Z[t+s, s*Fp : (s+1)*Fp]  (VPU shift-adds)
        acc = z[:, 0:t, 0:fp]
        for s in range(1, w):
            acc = acc + z[:, s:s + t, s * fp:(s + 1) * fp]
        y = jnp.maximum(acc + bcat_ref[:, boff:boff + fp], 0.0)   # bias + ReLU (f32)
        # TODO(synk): nn.Dropout(p) is identity at inference; not applied.
        feats.append(jnp.max(y, axis=1))                # max_pool1d over positions
        off += wlanes
        boff += fp

    feat = jnp.concatenate(feats, axis=-1)              # (TB, sum Fp) f32
    logits = jnp.dot(feat.astype(jnp.bfloat16), gw_ref[...],
                     preferred_element_type=jnp.float32) + gb_ref[...]
    # LogSoftmax(dim=-1); padded classes carry bias -1e30 -> exp underflows to 0.
    # Logits stay f32 end-to-end so the -1e30 sentinel never becomes -inf.
    m = jnp.max(logits, axis=-1, keepdims=True)
    zc = logits - m
    lse = jnp.log(jnp.sum(jnp.exp(zc), axis=-1, keepdims=True))
    out_ref[...] = zc - lse


def _choose_batch_tile(b, lp, e_pad, window_sizes, f_pads,
                       target_rows=4096, vmem_row_budget=20 * 1024 * 1024):
    """Pick the batch tile (rows multiple of 16) from a per-row VMEM budget."""
    max_wlanes = max(w * fp for w, fp in zip(window_sizes, f_pads))
    per_row = (max_wlanes * 4            # largest per-window f32 Z slab
               + 2 * max(f_pads) * 4     # shift-add acc + ReLU slabs (f32)
               + 2 * e_pad * 2)          # double-buffered bf16 x tile
    rows_cap = max(lp, vmem_row_budget // per_row)
    rows = min(target_rows, rows_cap)
    # TODO(synk): for very long sequences (lp in the thousands) even a 16-row
    # batch tile may exceed the v7x VMEM budget; would need length tiling with
    # a running max-pool accumulator.
    tb = max(BF16_SUBLANE, (rows // max(lp, 1)) // BF16_SUBLANE * BF16_SUBLANE)
    b16 = _round_up(b, BF16_SUBLANE)
    if b16 >= 2 * BF16_SUBLANE:
        # Keep the grid length >= 2 so v7x megacore can split the batch.
        tb = min(tb, _round_up((b16 + 1) // 2, BF16_SUBLANE))
    tb = min(tb, b16)
    return tb, per_row


def cnn_classifier_forward(tokens, params, window_sizes=WINDOW_SIZES,
                           target_rows=4096):
    """tokens: (B, L) int32.  Returns (B, n_classes) f32 log-probs."""
    emb = params["emb"]                                 # (V, E)
    e = emb.shape[1]
    n_filters = tuple(w.shape[1] for w in params["conv_w"])
    n_classes = params["gen_w"].shape[1]

    # bf16 embedding gather: halves the gather's HBM traffic and removes the
    # separate f32 -> bf16 re-materialization pass before the kernel.
    # TODO(synk): the gather could move into the kernel (scalar-prefetched token
    # ids + manual HBM row DMA) to cut x HBM traffic further; kept as an XLA
    # gather in the wrapper for robustness.
    x = jnp.take(emb.astype(jnp.bfloat16), tokens, axis=0)     # (B, L, E) bf16
    b, l, _ = x.shape
    min_len = max(window_sizes)
    if l < min_len:                                     # zero-pad like the PyTorch code
        x = jnp.concatenate([x, jnp.zeros((b, min_len - l, e), x.dtype)], axis=1)
    lp = x.shape[1]

    # Lane-dense E only when it is large and misaligned (e.g. 300 -> 384); for
    # small E the pad would multiply x HBM traffic for no gain.
    e_pad = e if (e <= LANE or e % LANE == 0) else _round_up(e, LANE)
    if e_pad != e:
        x = jnp.pad(x, ((0, 0), (0, 0), (0, e_pad - e)))

    # ---- lane-dense padded weight layout (built once per call; XLA glue) ----
    f_pads = tuple(_round_up(f, LANE) for f in n_filters)
    c_pad = _round_up(n_classes, LANE)

    w_blocks, b_blocks, g_blocks = [], [], []
    row = 0
    for i, (w, f, fp) in enumerate(zip(window_sizes, n_filters, f_pads)):
        cw = params["conv_w"][i]                        # (w*E, F)
        cb = params["conv_b"][i]                        # (1, F)
        for s in range(w):
            blk = cw[s * e:(s + 1) * e, :]              # (E, F) weights for shift s
            w_blocks.append(jnp.pad(blk, ((0, e_pad - e), (0, fp - f))))
        b_blocks.append(jnp.pad(cb, ((0, 0), (0, fp - f))))
        g_blocks.append(jnp.pad(params["gen_w"][row:row + f, :],
                                ((0, fp - f), (0, c_pad - n_classes))))
        row += f
    wcat = jnp.concatenate(w_blocks, axis=1).astype(jnp.bfloat16)  # (Ep, sum w_i*Fp_i)
    bcat = jnp.concatenate(b_blocks, axis=1).astype(jnp.float32)   # (1, sum Fp_i)
    gw = jnp.concatenate(g_blocks, axis=0).astype(jnp.bfloat16)    # (sum Fp_i, Cp)
    gb = jnp.concatenate(
        [params["gen_b"].astype(jnp.float32),
         jnp.full((1, c_pad - n_classes), -1e30, jnp.float32)], axis=1)

    # ---- batch tiling: big, VMEM-budgeted tiles amortize per-step overhead ----
    tb, per_row = _choose_batch_tile(b, lp, e_pad, window_sizes, f_pads,
                                     target_rows=target_rows)
    b_pad = _round_up(b, tb)
    if b_pad != b:
        x = jnp.concatenate(
            [x, jnp.zeros((b_pad - b, lp, e_pad), x.dtype)], axis=0)
    x_flat = x.reshape(b_pad * lp, e_pad)               # (B_pad*Lp, Ep) bf16

    grid = (b_pad // tb,)
    wtot = wcat.shape[1]
    ftot = gw.shape[0]
    flops = 2 * b_pad * lp * e_pad * wtot + 2 * b_pad * ftot * c_pad
    bytes_accessed = (x_flat.size * 2 + wcat.size * 2 + gw.size * 2
                      + bcat.size * 4 + gb.size * 4 + b_pad * c_pad * 4)

    # VMEM limit sized from the chosen tile: generous for v5e/v6e (128 MiB
    # physical) but capped well under v7x's 64 MiB physical VMEM.
    # TODO(synk): constant-index weight specs could use pipeline_mode=
    # pl.Buffered(1) to drop their second buffer (~200 KiB); skipped as a
    # minor saving.
    weights_bytes = 2 * (wcat.size * 2 + gw.size * 2 + bcat.size * 4 + gb.size * 4)
    vmem_estimate = per_row * tb * lp + weights_bytes + 2 * tb * c_pad * 4
    vmem_limit = int(min(56 * 1024 * 1024,
                         max(32 * 1024 * 1024, 2 * vmem_estimate)))

    kernel = functools.partial(cnn_kernel, window_sizes=tuple(window_sizes),
                               f_pads=f_pads, lp=lp)

    out = pl.pallas_call(
        kernel,
        out_shape=jax.ShapeDtypeStruct((b_pad, c_pad), jnp.float32),
        grid_spec=pltpu.PrefetchScalarGridSpec(
            num_scalar_prefetch=0,
            grid=grid,
            in_specs=[
                pl.BlockSpec((tb * lp, e_pad), lambda i: (i, 0)),  # x tile (pipelined)
                pl.BlockSpec(wcat.shape, lambda i: (0, 0)),        # weights stay resident
                pl.BlockSpec(bcat.shape, lambda i: (0, 0)),
                pl.BlockSpec(gw.shape, lambda i: (0, 0)),
                pl.BlockSpec(gb.shape, lambda i: (0, 0)),
            ],
            out_specs=pl.BlockSpec((tb, c_pad), lambda i: (i, 0)),
        ),
        compiler_params=pltpu.CompilerParams(
            dimension_semantics=("parallel",),          # megacore-shardable on v7x
            vmem_limit_bytes=vmem_limit,
        ),
        cost_estimate=pl.CostEstimate(flops=flops,
                                      transcendentals=b_pad * c_pad,
                                      bytes_accessed=bytes_accessed),
    )(x_flat, wcat, bcat, gw, gb)

    return out[:b, :n_classes]


def init_params(key, vocab_size, word_vec_size, n_classes,
                window_sizes=WINDOW_SIZES, n_filters=N_FILTERS):
    keys = jax.random.split(key, 3 + 2 * len(window_sizes))
    params = {}
    params["emb"] = jax.random.normal(keys[0], (vocab_size, word_vec_size),
                                      jnp.float32)
    conv_w, conv_b = [], []
    for i, (w, f) in enumerate(zip(window_sizes, n_filters)):
        fan_in = w * word_vec_size
        conv_w.append(
            jax.random.normal(keys[1 + 2 * i], (fan_in, f), jnp.float32)
            * (1.0 / jnp.sqrt(fan_in)))
        conv_b.append(
            jax.random.normal(keys[2 + 2 * i], (1, f), jnp.float32) * 0.01)
    params["conv_w"] = conv_w
    params["conv_b"] = conv_b
    sum_f = sum(n_filters)
    params["gen_w"] = (jax.random.normal(keys[-2], (sum_f, n_classes), jnp.float32)
                       * (1.0 / jnp.sqrt(sum_f)))
    params["gen_b"] = jax.random.normal(keys[-1], (1, n_classes), jnp.float32) * 0.01
    return params


def reference_forward(tokens, params, window_sizes=WINDOW_SIZES, cast_bf16=False):
    """Pure-JAX reference.  cast_bf16=True mirrors the kernel's matmul precision."""
    x = jnp.take(params["emb"], tokens, axis=0)
    b, l, e = x.shape
    min_len = max(window_sizes)
    if l < min_len:
        x = jnp.concatenate([x, jnp.zeros((b, min_len - l, e), x.dtype)], axis=1)
    lp = x.shape[1]
    xc = x.astype(jnp.bfloat16) if cast_bf16 else x
    feats = []
    for i, w in enumerate(window_sizes):
        cw, cb = params["conv_w"][i], params["conv_b"][i]
        cwc = cw.astype(jnp.bfloat16) if cast_bf16 else cw
        t = lp - w + 1
        acc = jnp.zeros((b, t, cw.shape[1]), jnp.float32)
        for s in range(w):
            acc = acc + jnp.einsum("ble,ef->blf", xc[:, s:s + t, :],
                                   cwc[s * e:(s + 1) * e, :],
                                   preferred_element_type=jnp.float32)
        feats.append(jnp.max(jnp.maximum(acc + cb, 0.0), axis=1))
    feat = jnp.concatenate(feats, axis=-1)
    gw = params["gen_w"]
    if cast_bf16:
        feat = feat.astype(jnp.bfloat16)
        gw = gw.astype(jnp.bfloat16)
    logits = jnp.dot(feat, gw, preferred_element_type=jnp.float32) + params["gen_b"]
    return jax.nn.log_softmax(logits, axis=-1)


if __name__ == "__main__":
    # Small, module-consistent shapes: vocab=50, word_vec=32, classes=5,
    # batch=40 (not a multiple of the chosen 32-row batch tile -> exercises
    # pad+slice and a 2-step pipelined grid / megacore split), seq_len=8
    # (>= max window 5).
    vocab_size, word_vec_size, n_classes = 50, 32, 5
    B, L = 40, 8

    key = jax.random.PRNGKey(0)
    k_tok, k_par = jax.random.split(key)
    tokens = jax.random.randint(k_tok, (B, L), 0, vocab_size, dtype=jnp.int32)
    params = init_params(k_par, vocab_size, word_vec_size, n_classes)

    out = jax.block_until_ready(cnn_classifier_forward(tokens, params))
    assert out.shape == (B, n_classes)

    # Tight check vs. a reference using the same bf16-matmul / f32-acc precision.
    ref_bf16 = jax.block_until_ready(
        reference_forward(tokens, params, cast_bf16=True))
    assert jnp.allclose(out, ref_bf16, atol=1e-3, rtol=1e-3), (
        "mismatch vs bf16-matched reference:\n%s\n%s" % (out, ref_bf16))

    # Looser sanity check vs. the full-f32 reference (semantics preserved).
    ref_f32 = jax.block_until_ready(
        reference_forward(tokens, params, cast_bf16=False))
    assert jnp.allclose(out, ref_f32, atol=1e-1, rtol=1e-1), (
        "mismatch vs f32 reference:\n%s\n%s" % (out, ref_f32))

    print("KERNEL_OK")
</pallas_src>

<mosaic_0001>
module attributes {stable_mosaic.version = 11 : i64} {
  func.func @cnn_kernel(%arg0: i32, %arg1: memref<256x32xbf16, #tpu.memory_space<vmem>>, %arg2: memref<32x1536xbf16, #tpu.memory_space<vmem>>, %arg3: memref<1x384xf32, #tpu.memory_space<vmem>>, %arg4: memref<384x128xbf16, #tpu.memory_space<vmem>>, %arg5: memref<1x128xf32, #tpu.memory_space<vmem>>, %arg6: memref<32x128xf32, #tpu.memory_space<vmem>>) attributes {dimension_semantics = [#tpu.dimension_semantics<parallel>], iteration_bounds = array<i64: 2>, scalar_prefetch = 0 : i64, scratch_operands = 0 : i64, tpu.core_type = #tpu.core_type<tc>, window_params = [{transform_indices = @transform_0, window_bounds = array<i64: 256, 32>}, {pipeline_mode = #tpu.pipeline_mode<synchronous>, transform_indices = @transform_1, window_bounds = array<i64: 32, 1536>}, {pipeline_mode = #tpu.pipeline_mode<synchronous>, transform_indices = @transform_2, window_bounds = array<i64: 1, 384>}, {pipeline_mode = #tpu.pipeline_mode<synchronous>, transform_indices = @transform_3, window_bounds = array<i64: 384, 128>}, {pipeline_mode = #tpu.pipeline_mode<synchronous>, transform_indices = @transform_4, window_bounds = array<i64: 1, 128>}, {transform_indices = @transform_5, window_bounds = array<i64: 32, 128>}]} {
    %c0 = arith.constant 0 : index
    %c0_0 = arith.constant 0 : index
    %0 = vector.load %arg1[%c0, %c0_0] : memref<256x32xbf16, #tpu.memory_space<vmem>>, vector<256x32xbf16>
    %c0_1 = arith.constant 0 : index
    %c0_2 = arith.constant 0 : index
    %1 = vector.load %arg2[%c0_1, %c0_2] : memref<32x1536xbf16, #tpu.memory_space<vmem>>, vector<32x384xbf16>
    %cst = arith.constant dense<0.000000e+00> : vector<256x384xf32>
    %2 = tpu.matmul %0, %1, %cst {dimension_numbers = #tpu.dot_dimension_numbers<[1], [0], [0], [1], [0, 0, 1, 1], [], []>} : vector<256x32xbf16>, vector<32x384xbf16>, vector<256x384xf32> -> vector<256x384xf32>
    %3 = vector.shape_cast %2 : vector<256x384xf32> to vector<32x8x384xf32>
    %4 = vector.extract_strided_slice %3 {offsets = [0, 0, 0], sizes = [32, 6, 128], strides = [1, 1, 1]} : vector<32x8x384xf32> to vector<32x6x128xf32>
    %5 = vector.extract_strided_slice %3 {offsets = [0, 1, 128], sizes = [32, 6, 128], strides = [1, 1, 1]} : vector<32x8x384xf32> to vector<32x6x128xf32>
    %6 = arith.addf %4, %5 : vector<32x6x128xf32>
    %7 = vector.extract_strided_slice %3 {offsets = [0, 2, 256], sizes = [32, 6, 128], strides = [1, 1, 1]} : vector<32x8x384xf32> to vector<32x6x128xf32>
    %8 = arith.addf %6, %7 : vector<32x6x128xf32>
    %c0_3 = arith.constant 0 : index
    %c0_4 = arith.constant 0 : index
    %9 = vector.load %arg3[%c0_3, %c0_4] : memref<1x384xf32, #tpu.memory_space<vmem>>, vector<1x128xf32>
    %10 = vector.shape_cast %9 : vector<1x128xf32> to vector<1x1x128xf32>
    %11 = vector.broadcast %10 : vector<1x1x128xf32> to vector<32x6x128xf32>
    %12 = arith.addf %8, %11 : vector<32x6x128xf32>
    %cst_5 = arith.constant 0.000000e+00 : f32
    %13 = vector.broadcast %cst_5 : f32 to vector<32x6x128xf32>
    %14 = arith.maximumf %12, %13 : vector<32x6x128xf32>
    %cst_6 = arith.constant dense<0xFF800000> : vector<32x128xf32>
    %15 = vector.multi_reduction <maximumf>, %14, %cst_6 [1] : vector<32x6x128xf32> to vector<32x128xf32>
    %c0_7 = arith.constant 0 : index
    %c384 = arith.constant 384 : index
    %16 = vector.load %arg2[%c0_7, %c384] : memref<32x1536xbf16, #tpu.memory_space<vmem>>, vector<32x512xbf16>
    %cst_8 = arith.constant dense<0.000000e+00> : vector<256x512xf32>
    %17 = tpu.matmul %0, %16, %cst_8 {dimension_numbers = #tpu.dot_dimension_numbers<[1], [0], [0], [1], [0, 0, 1, 1], [], []>} : vector<256x32xbf16>, vector<32x512xbf16>, vector<256x512xf32> -> vector<256x512xf32>
    %18 = vector.shape_cast %17 : vector<256x512xf32> to vector<32x8x512xf32>
    %19 = vector.extract_strided_slice %18 {offsets = [0, 0, 0], sizes = [32, 5, 128], strides = [1, 1, 1]} : vector<32x8x512xf32> to vector<32x5x128xf32>
    %20 = vector.extract_strided_slice %18 {offsets = [0, 1, 128], sizes = [32, 5, 128], strides = [1, 1, 1]} : vector<32x8x512xf32> to vector<32x5x128xf32>
    %21 = arith.addf %19, %20 : vector<32x5x128xf32>
    %22 = vector.extract_strided_slice %18 {offsets = [0, 2, 256], sizes = [32, 5, 128], strides = [1, 1, 1]} : vector<32x8x512xf32> to vector<32x5x128xf32>
    %23 = arith.addf %21, %22 : vector<32x5x128xf32>
    %24 = vector.extract_strided_slice %18 {offsets = [0, 3, 384], sizes = [32, 5, 128], strides = [1, 1, 1]} : vector<32x8x512xf32> to vector<32x5x128xf32>
    %25 = arith.addf %23, %24 : vector<32x5x128xf32>
    %c0_9 = arith.constant 0 : index
    %c128 = arith.constant 128 : index
    %26 = vector.load %arg3[%c0_9, %c128] : memref<1x384xf32, #tpu.memory_space<vmem>>, vector<1x128xf32>
    %27 = vector.shape_cast %26 : vector<1x128xf32> to vector<1x1x128xf32>
    %28 = vector.broadcast %27 : vector<1x1x128xf32> to vector<32x5x128xf32>
    %29 = arith.addf %25, %28 : vector<32x5x128xf32>
    %cst_10 = arith.constant 0.000000e+00 : f32
    %30 = vector.broadcast %cst_10 : f32 to vector<32x5x128xf32>
    %31 = arith.maximumf %29, %30 : vector<32x5x128xf32>
    %cst_11 = arith.constant dense<0xFF800000> : vector<32x128xf32>
    %32 = vector.multi_reduction <maximumf>, %31, %cst_11 [1] : vector<32x5x128xf32> to vector<32x128xf32>
    %c0_12 = arith.constant 0 : index
    %c896 = arith.constant 896 : index
    %33 = vector.load %arg2[%c0_12, %c896] : memref<32x1536xbf16, #tpu.memory_space<vmem>>, vector<32x640xbf16>
    %cst_13 = arith.constant dense<0.000000e+00> : vector<256x640xf32>
    %34 = tpu.matmul %0, %33, %cst_13 {dimension_numbers = #tpu.dot_dimension_numbers<[1], [0], [0], [1], [0, 0, 1, 1], [], []>} : vector<256x32xbf16>, vector<32x640xbf16>, vector<256x640xf32> -> vector<256x640xf32>
    %35 = vector.shape_cast %34 : vector<256x640xf32> to vector<32x8x640xf32>
    %36 = vector.extract_strided_slice %35 {offsets = [0, 0, 0], sizes = [32, 4, 128], strides = [1, 1, 1]} : vector<32x8x640xf32> to vector<32x4x128xf32>
    %37 = vector.extract_strided_slice %35 {offsets = [0, 1, 128], sizes = [32, 4, 128], strides = [1, 1, 1]} : vector<32x8x640xf32> to vector<32x4x128xf32>
    %38 = arith.addf %36, %37 : vector<32x4x128xf32>
    %39 = vector.extract_strided_slice %35 {offsets = [0, 2, 256], sizes = [32, 4, 128], strides = [1, 1, 1]} : vector<32x8x640xf32> to vector<32x4x128xf32>
    %40 = arith.addf %38, %39 : vector<32x4x128xf32>
    %41 = vector.extract_strided_slice %35 {offsets = [0, 3, 384], sizes = [32, 4, 128], strides = [1, 1, 1]} : vector<32x8x640xf32> to vector<32x4x128xf32>
    %42 = arith.addf %40, %41 : vector<32x4x128xf32>
    %43 = vector.extract_strided_slice %35 {offsets = [0, 4, 512], sizes = [32, 4, 128], strides = [1, 1, 1]} : vector<32x8x640xf32> to vector<32x4x128xf32>
    %44 = arith.addf %42, %43 : vector<32x4x128xf32>
    %c0_14 = arith.constant 0 : index
    %c256 = arith.constant 256 : index
    %45 = vector.load %arg3[%c0_14, %c256] : memref<1x384xf32, #tpu.memory_space<vmem>>, vector<1x128xf32>
    %46 = vector.shape_cast %45 : vector<1x128xf32> to vector<1x1x128xf32>
    %47 = vector.broadcast %46 : vector<1x1x128xf32> to vector<32x4x128xf32>
    %48 = arith.addf %44, %47 : vector<32x4x128xf32>
    %cst_15 = arith.constant 0.000000e+00 : f32
    %49 = vector.broadcast %cst_15 : f32 to vector<32x4x128xf32>
    %50 = arith.maximumf %48, %49 : vector<32x4x128xf32>
    %cst_16 = arith.constant dense<0xFF800000> : vector<32x128xf32>
    %51 = vector.multi_reduction <maximumf>, %50, %cst_16 [1] : vector<32x4x128xf32> to vector<32x128xf32>
    %52 = tpu.concatenate %15, %32, %51 in 1 : vector<32x128xf32>, vector<32x128xf32>, vector<32x128xf32> -> vector<32x384xf32>
    %53 = arith.truncf %52 : vector<32x384xf32> to vector<32x384xbf16>
    %c0_17 = arith.constant 0 : index
    %c0_18 = arith.constant 0 : index
    %54 = vector.load %arg4[%c0_17, %c0_18] : memref<384x128xbf16, #tpu.memory_space<vmem>>, vector<384x128xbf16>
    %cst_19 = arith.constant dense<0.000000e+00> : vector<32x128xf32>
    %55 = tpu.matmul %53, %54, %cst_19 {dimension_numbers = #tpu.dot_dimension_numbers<[1], [0], [0], [1], [0, 0, 1, 1], [], []>} : vector<32x384xbf16>, vector<384x128xbf16>, vector<32x128xf32> -> vector<32x128xf32>
    %c0_20 = arith.constant 0 : index
    %c0_21 = arith.constant 0 : index
    %56 = vector.load %arg5[%c0_20, %c0_21] : memref<1x128xf32, #tpu.memory_space<vmem>>, vector<1x128xf32>
    %57 = vector.broadcast %56 : vector<1x128xf32> to vector<32x128xf32>
    %58 = arith.addf %55, %57 : vector<32x128xf32>
    %cst_22 = arith.constant dense<0xFF800000> : vector<32xf32>
    %59 = vector.multi_reduction <maximumf>, %58, %cst_22 [1] : vector<32x128xf32> to vector<32xf32>
    %60 = vector.shape_cast %59 : vector<32xf32> to vector<32x1xf32>
    %61 = vector.broadcast %60 : vector<32x1xf32> to vector<32x128xf32>
    %62 = arith.subf %58, %61 : vector<32x128xf32>
    %63 = math.exp %62 : vector<32x128xf32>
    %cst_23 = arith.constant dense<0.000000e+00> : vector<32xf32>
    %64 = vector.multi_reduction <add>, %63, %cst_23 [1] : vector<32x128xf32> to vector<32xf32>
    %65 = vector.shape_cast %64 : vector<32xf32> to vector<32x1xf32>
    %66 = math.log %65 : vector<32x1xf32>
    %67 = vector.broadcast %66 : vector<32x1xf32> to vector<32x128xf32>
    %68 = arith.subf %62, %67 : vector<32x128xf32>
    %c0_24 = arith.constant 0 : index
    %c0_25 = arith.constant 0 : index
    %69 = vector.load %arg6[%c0_24, %c0_25] : memref<32x128xf32, #tpu.memory_space<vmem>>, vector<32x128xf32>
    tpu.vector_store %arg6[%c0_24, %c0_25], %68 {strides = array<i32>} : memref<32x128xf32, #tpu.memory_space<vmem>>, vector<32x128xf32>,
    return
  }
  func.func @transform_0(%arg0: i32) -> (i32, i32) {
    %c0_i32 = arith.constant 0 : i32
    %c0_i32_0 = arith.constant 0 : i32
    return %arg0, %c0_i32 : i32, i32
  }
  func.func @transform_1(%arg0: i32) -> (i32, i32) {
    %c0_i32 = arith.constant 0 : i32
    %c0_i32_0 = arith.constant 0 : i32
    %c0_i32_1 = arith.constant 0 : i32
    return %c0_i32, %c0_i32_0 : i32, i32
  }
  func.func @transform_2(%arg0: i32) -> (i32, i32) {
    %c0_i32 = arith.constant 0 : i32
    %c0_i32_0 = arith.constant 0 : i32
    %c0_i32_1 = arith.constant 0 : i32
    return %c0_i32, %c0_i32_0 : i32, i32
  }
  func.func @transform_3(%arg0: i32) -> (i32, i32) {
    %c0_i32 = arith.constant 0 : i32
    %c0_i32_0 = arith.constant 0 : i32
    %c0_i32_1 = arith.constant 0 : i32
    return %c0_i32, %c0_i32_0 : i32, i32
  }
  func.func @transform_4(%arg0: i32) -> (i32, i32) {
    %c0_i32 = arith.constant 0 : i32
    %c0_i32_0 = arith.constant 0 : i32
    %c0_i32_1 = arith.constant 0 : i32
    return %c0_i32, %c0_i32_0 : i32, i32
  }
  func.func @transform_5(%arg0: i32) -> (i32, i32) {
    %c0_i32 = arith.constant 0 : i32
    %c0_i32_0 = arith.constant 0 : i32
    return %arg0, %c0_i32 : i32, i32
  }
}

</mosaic_0001>

<bundles_post_ra>
// kernel: tpu_custom_call.1
= control target key start
LH: loop header
LB: loop body
LE: loop exit
PB: predicated region body
PF: predicated region fallthrough
CT: control target
= control target key end

     0   :  { %10 = vsyncpa [#allocation3], 0  ;;  %s6659_s0 = inlined_call_operand.vmem [shape: bf16[512,32], index: 0, kind: input, shape index: {}]   ;;  %s6660_s1 = inlined_call_operand.vmem [shape: bf16[32,1536], index: 1, kind: input, shape index: {}]   ;;  %s6661_s2 = inlined_call_operand.vmem [shape: f32[1,384], index: 2, kind: input, shape index: {}]   ;;  %s6662_s3 = inlined_call_operand.hbm [shape: bf16[384,128], index: 3, kind: input, shape index: {}]   ;;  %s6663_s4 = inlined_call_operand.vmem [shape: f32[1,128], index: 4, kind: input, shape index: {}]   ;;  %s6664_s5 = inlined_call_operand.hbm [shape: f32[64,128], index: 5, kind: output, shape index: {}]  }
   0x1   :  { %11 = vsyncpa [#allocation4], 0 }
   0x2   :  { %13 = vsyncpa [#allocation4 + $0x1], 0  ;;  %s5173_s18 = smov 0   ;;  %s5175_s19 = smov 0  }
   0x3   :  { %s5177_s20 = smov 0   ;;  %s5179_s21 = smov 0  }
   0x4 LB: > { %s5194_s22 = sadd.s32 4294967295, %s5134_s21   ;;  %s4516_s23 = sadd.s32 4294967294, %s5134_s21   ;;  %s5134_s21 = sphi %s5179_s21, %s6696_s21   ;;  %s5130_s20 = sphi %s5177_s20, %s6695_s20   ;;  %s5126_s19 = sphi %s5175_s19, %s6694_s19   ;;  %s5122_s18 = sphi %s5173_s18, %s6693_s18  }
   0x5   : > { %s5198_s24 = sadd.s32 1, %s5134_s21   ;;  %s136_s25 = sadd.s32 1, %s5130_s20 }
   0x6   : > { %s133_s26 = ssub.s32 %s5134_s21, %s5198_s24  ;;  %p146_p0 = scmp.ne.s32.totalorder %s5130_s20, %s5126_s19 }
   0x7   : > { %p134_p1 = scmp.eq.s32.totalorder %s133_s26, 0  ;;  %p147_p2 = scmp.eq.s32.totalorder %s5194_s22, 1 }
   0x8   : > { %p152_p3 = scmp.ne.s32.totalorder %s5126_s19, %s5122_s18  ;;  %p153_p4 = scmp.eq.s32.totalorder %s4516_s23, 1 }
   0x9   : > { %s5209_s27 = scalar_select %p134_p1, %s5130_s20, %s136_s25  }
   0xa   : > { %p5211_p5 = por %p147_p2, %p146_p0  ;;  %p5215_p6 = por %p153_p4, %p152_p3 }
   0xb   : > { %p4517_p7 = scmp.ge.s32.totalorder %s5134_s21, 1  ;;  %p160_p8 = scmp.lt.s32.totalorder %s5134_s21, 3 }
   0xc   : > { %s6668_s28 = scalar_select %p5211_p5, 1, 0 }
   0xd   : > { %s6669_s29 = scalar_select %p5215_p6, 1, 0 }
   0xe   : > { %p6665_p9 = scmp.eq.s32.totalorder %s5194_s22, 0  ;;  %p5222_p10 = pnand %p4517_p7, %p160_p8 }
   0xf   : > { %s5136_s6 = smov [#allocation2]   ;;  %s5040_s11 = scalar_lea.hbm %s6662_s3, 3072 }
  0x10   : > { %s6670_s30 = scalar_select %p5222_p10, 1, 0 }
  0x11   : > { %s178_s7 = sshll.u32 %s5136_s6, 4  ;;  %p4883_p11 = pneg %p5222_p10  ;;  %s179_s7 = int_to_ptr.vmem [resolvable:$true] %s178_s7 }
  0x12   : > { %p5041_p13 = scmp.ne.s32.totalorder %s6662_s3, %s5040_s11  ;;  %p5047_p3 = scmp.lt.u32.totalorder %s5040_s11, %s6662_s3 }
  0x13   : > { %p5230_p12 = pnand %p6665_p9, %p4883_p11 }
  0x15   : > { %p5042_p0 = pneg %p5230_p12 }
  0x17   : > { %p5043_p1 = pnand %p5042_p0, %p5041_p13 }
  0x19   : > { %p5044_p2 = pneg %p5043_p1 }
  0x1b   : > { %p5049_p4 = pnand %p5047_p3, %p5044_p2 }
  0x1d   : > { %5052 = shalt.err (!%p5049_p4)
}
  0x1e   : > { %s5053_s16 = scalar_lea.vmem %s179_s7, 3072  ;;  %p5061_p9 = scmp.lt.s32.totalorder %s179_s7, %s179_s7 }
  0x1f   : > { %p5054_p7 = scmp.ne.s32.totalorder %s179_s7, %s5053_s16  ;;  %p5062_p6 = scmp.lt.s32.totalorder %s5053_s16, %s5053_s16 }
  0x21   : > { %p5056_p8 = pnand %p5054_p7, %p5042_p0  ;;  %p5063_p5 = por %p5062_p6, %p5061_p9 }
  0x23   : > { %p5057_p11 = pneg %p5056_p8 }
  0x25   : > { %p5064_p10 = pnand %p5063_p5, %p5057_p11 }
  0x27   : > { %5067 = shalt.err (!%p5064_p10)
}
  0x28   : > { %s5137_s17 = smov 64   ;;  %s5138_s23 = smov 4  }
  0x29   : > { %4886 = dma.hbm_to_vmem [thread:$0]  (!%p5230_p12), %s6662_s3, 3072, %s179_s7, [#allocation3], %s5137_s17, %s5137_s17, %s5138_s23  }
  0x2a   : > { %p6672_p13 = scmp.ne.s32.totalorder %s6670_s30, 0 }
  0x2c   : > { %206 = sbr.rel (%p6672_p13) target bundleno = 1274 (0x4fa), region = 40 }
  0x33   : > { %p6673_p1 = scmp.eq.s32.totalorder %s5194_s22, 0 }
  0x35   : > { %5113 = dma.done.wait (%p6673_p1), [#allocation3], 3072   ;;  %p6674_p0 = pmov %p6673_p1 }
  0x36   : > { %s4523_s6 = sshll.u32 %s5194_s22, 5  ;;  %v5139_v0 = vmov 0   ;;  %v4932_v1 = vld [vmem:[%s6660_s1 + $0x4] ss:$48 sps:$4 sm:$0xff]   ;;  %v4934_v2 = vld [vmem:[%s6660_s1 + $0x8] ss:$48 sps:$4 sm:$0xff]  }
  0x37   : > { %5115 = vsyncadd (%p6674_p0), [#allocation3], 4294964224  ;;  %475 = vmatprep.mubr.bf16.mxu0 %v5139_v0  ;;  %p235_p5 = scmp.lt.s32.totalorder %s4523_s6, 63  ;;  %443 = vmatprep.subr.bf16.mxu0 %v4932_v1  ;;  %v4935_v3 = vld [vmem:[%s6660_s1] ss:$48 sps:$4 sm:$0xff]   ;;  %vm394_vm0 = vcmask 261120  }
  0x38   : > { %4785 = vmatprep.subr.bf16.mxu1 %v4934_v2  ;;  %v4936_v4 = vld [vmem:[%s6660_s1 + $0x64] ss:$48 sps:$4 sm:$0xff]   ;;  %444 = vmatpush1.bf16.msra.mxu0 %v4935_v3  ;;  %v4938_v5 = vld [vmem:[%s6660_s1 + $0x68] ss:$48 sps:$4 sm:$0xff]   ;;  %v4939_v6 = vld [vmem:[%s6660_s1 + $0x60] ss:$48 sps:$4 sm:$0xff]  }
  0x39   : > { %s6698_s6 = smov (!%p235_p5, %s4523_s6), 63  ;;  %4786 = vmatpush3.bf16.msra.mxu1 %v4934_v2  ;;  %445 = vmatprep.subr.bf16.mxu0 %v4936_v4  ;;  %v4942_v9 = vld [vmem:[%s6660_s1 + $0x14] ss:$48 sps:$4 sm:$0xff]   ;;  %v4944_v10 = vld [vmem:[%s6660_s1 + $0x18] ss:$48 sps:$4 sm:$0xff]   ;;  %vm1124_vm1 = vcmask 1045504  }
  0x3a   : > { %s4524_s8 = sshll.u32 %s6698_s6, 2  ;;  %4787 = vmatprep.subr.bf16.mxu1 %v4938_v5  ;;  %v4945_v11 = vld [vmem:[%s6660_s1 + $0xc] ss:$48 sps:$4 sm:$0xff]   ;;  %v4947_v12 = vld [vmem:[%s6660_s1 + $0x10] ss:$48 sps:$4 sm:$0xff]   ;;  %vm3914_vm2 = vcmask 1041409  }
  0x3b   : > { %s5270_s15 = scalar_lea.vmem %s6659_s0, %s4524_s8  ;;  %v4956_v16 = vld [vmem:[%s6660_s1 + $0x6c] ss:$48 sps:$4 sm:$0xff]   ;;  %v4958_v17 = vld [vmem:[%s6660_s1 + $0x70] ss:$48 sps:$4 sm:$0xff]   ;;  %v4967_v20 = vld [vmem:[%s6660_s1 + $0x78] ss:$48 sps:$4 sm:$0xff]  }
  0x3c   : > { %v5282_v7 = vld [vmem:[%s5270_s15] sm:$0xff]   ;;  %v5285_v8 = vld [vmem:[%s5270_s15 + $0x8] sm:$0xff]   ;;  %446 = vmatpush1.bf16.msra.mxu0 %v4939_v6  ;;  %v5302_v13 = vld [vmem:[%s5270_s15 + $0x10] sm:$0xff]   ;;  %vm3916_vm3 = vcmask 1042434   ;;  %vm3918_vm4 = vcmask 1043459   ;;  %vm3920_vm5 = vcmask 1044484  }
  0x3d   : > { %4789 = vmatprep.mubr.msk.bf16.mxu1 %vm394_vm0, %v5282_v7  ;;  %4788 = vmatpush3.bf16.msra.mxu1 %v4938_v5  ;;  %v5312_v14 = vld [vmem:[%s5270_s15 + $0x18] sm:$0xff]   ;;  %v5315_v15 = vld [vmem:[%s5270_s15 + $0x20] sm:$0xff]   ;;  %v5331_v18 = vld [vmem:[%s5270_s15 + $0x28] sm:$0xff]   ;;  %vm3922_vm6 = vcmask 1045509   ;;  %vm3924_vm7 = vcmask 1046534   ;;  %vm3926_vm8 = vcmask 1047559  }
  0x3e   : > { %1590 = vmatprep.subr.bf16.mxu0 %v4944_v10  ;;  %1397 = vmatprep.subr.bf16.mxu1 %v4947_v12  ;;  %v5334_v19 = vld [vmem:[%s5270_s15 + $0x30] sm:$0xff]   ;;  %v4973_v23 = vld [vmem:[%s6660_s1 + $0x28] ss:$48 sps:$4 sm:$0xff]   ;;  %v5359_v25 = vld [vmem:[%s5270_s15 + $0x40] sm:$0xff]   ;;  %vm2238_vm9 = vcmask 1044480   ;;  %vm3657_vm10 = vcmask 1043456  }
  0x3f   : > { %4547 = vmatmul.mubr.msk.bf16.vlgmr.msra.gmra.mrb[0].mxu0 %vm394_vm0, %v5282_v7  ;;  %v4965_v21 = vld [vmem:[%s6660_s1 + $0x74] ss:$48 sps:$4 sm:$0xff]   ;;  %v4970_v22 = vld [vmem:[%s6660_s1 + $0x20] ss:$48 sps:$4 sm:$0xff]   ;;  %v5356_v24 = vld [vmem:[%s5270_s15 + $0x38] sm:$0xff]   ;;  %s231_s10 = sand.u32 1, %s5126_s19  }
  0x40   : > { %4790 = vmatmul.mubr.msk.bf16.vlgmr.msra.gmra.mrb[0].mxu1 %vm394_vm0, %v5285_v8  ;;  %1591 = vmatpush1.bf16.msra.mxu0 %v4942_v9  ;;  %v5369_v26 = vld [vmem:[%s5270_s15 + $0x48] sm:$0xff]   ;;  %v5372_v27 = vld [vmem:[%s5270_s15 + $0x50] sm:$0xff]   ;;  %v5382_v28 = vld [vmem:[%s5270_s15 + $0x58] sm:$0xff]   ;;  %s4522_s30 = sshll.u32 %s231_s10, 5  ;;  %s4710_s12 = sshll.u32 %s5194_s22, 9 }
  0x41   : > { %1398 = vmatpush1.bf16.msra.mxu1 %v4945_v11  ;;  %485 = vmatprep.mubr.bf16.mxu0 %v5139_v0  ;;  %v5385_v29 = vld [vmem:[%s5270_s15 + $0x60] sm:$0xff]   ;;  %v5395_v30 = vld [vmem:[%s5270_s15 + $0x68] sm:$0xff]   ;;  %v5398_v31 = vld [vmem:[%s5270_s15 + $0x70] sm:$0xff]   ;;  %s233_s7 = scalar_lea.vmem [#allocation5], %s4522_s30  ;;  %s6616_s16 = scalar_lea.hbm %s6664_s5, %s4710_s12 }
  0x42   : > { %4793 = vmatprep.mubr.msk.bf16.mxu1 %vm394_vm0, %v5302_v13  ;;  %1399 = vmatprep.subr.bf16.mxu1 %v4958_v17  ;;  %v5408_v32 = vld [vmem:[%s5270_s15 + $0x78] sm:$0xff]   ;;  %v4976_v34 = vld [vmem:[%s6660_s1 + $0x80] ss:$48 sps:$4 sm:$0xff]   ;;  %v4971_v37 = vld [vmem:[%s6660_s1 + $0x24] ss:$48 sps:$4 sm:$0xff]   ;;  %s4442_s11 = sshll.u32 %s233_s7, 4  ;;  %s6611_s11 = int_to_ptr.vmem [resolvable:$true] %s4442_s11 }
  0x43   : > { %1592 = vmatprep.subr.bf16.mxu0 %v4967_v20  ;;  %v4968_v33 = vld [vmem:[%s6660_s1 + $0x1c] ss:$48 sps:$4 sm:$0xff]   ;;  %v4979_v38 = vld [vmem:[%s6660_s1 + $0x88] ss:$48 sps:$4 sm:$0xff]   ;;  %v4977_v39 = vld [vmem:[%s6660_s1 + $0x84] ss:$48 sps:$4 sm:$0xff]  }
  0x44   : > { %1593 = vmatpush1.bf16.msra.mxu0 %v4965_v21  ;;  %v4974_v35 = vld [vmem:[%s6660_s1 + $0x7c] ss:$48 sps:$4 sm:$0xff]   ;;  %v5561_v53 = vld [vmem:[%s6661_s2] ss:$0 sm:$0xff]  ;;  %s6618_s17 = scalar_lea.sflag [#allocation4], %s231_s10  ;;  %s5068_s23 = scalar_lea.vmem %s6611_s11, 512 }
  0x45   : > { %1400 = vmatpush1.bf16.msra.mxu1 %v4956_v16  ;;  %2720 = vmatprep.subr.bf16.mxu0 %v4973_v23  ;;  %v5434_v36 = vld [vmem:[%s6660_s1 + $0x2c] ss:$48 sps:$4 sm:$0xff]   ;;  %p5069_p6 = scmp.ne.s32.totalorder %s6611_s11, %s5068_s23  ;;  %p6691_p9 = scmp.ne.s32.totalorder %s6668_s28, 0 }
  0x46   : > { %2527 = vmatprep.subr.bf16.mxu1 %v4970_v22  ;;  %v4981_v40 = vld [vmem:[%s6660_s1 + $0x8c] ss:$48 sps:$4 sm:$0xff]   ;;  %s5140_s22 = smov [#allocation5]  }
  0x47   : > { %4548 = vmatmul.mubr.msk.bf16.gmra.mrb[4].mxu0 %vm394_vm0, %v5285_v8  ;;  %p5070_p10 = pnand %p5069_p6, %p6691_p9 }
  0x48   : > { %4794 = vmatmul.mubr.msk.bf16.gmra.mrb[4].mxu1 %vm394_vm0, %v5312_v14  ;;  %495 = vmatprep.mubr.bf16.mxu0 %v5139_v0 }
  0x49   : > { %4797 = vmatprep.mubr.msk.bf16.mxu1 %vm394_vm0, %v5315_v15  ;;  %p5071_p12 = pneg %p5070_p10 }
  0x4f   : > { %4549 = vmatmul.mubr.msk.bf16.gmra.mrb[8].mxu0 %vm394_vm0, %v5302_v13 }
  0x50   : > { %4798 = vmatmul.mubr.msk.bf16.gmra.mrb[8].mxu1 %vm394_vm0, %v5331_v18  ;;  %505 = vmatprep.mubr.bf16.mxu0 %v5139_v0 }
  0x51   : > { %4801 = vmatprep.mubr.msk.bf16.mxu1 %vm394_vm0, %v5334_v19 }
  0x57   : > { %4550 = vmatmul.mubr.msk.bf16.gmra.mrb[12].mxu0 %vm394_vm0, %v5312_v14 }
  0x58   : > { %4802 = vmatmul.mubr.msk.bf16.gmra.mrb[12].mxu1 %vm394_vm0, %v5356_v24  ;;  %515 = vmatprep.mubr.bf16.mxu0 %v5139_v0 }
  0x59   : > { %4805 = vmatprep.mubr.msk.bf16.mxu1 %vm394_vm0, %v5359_v25 }
  0x5f   : > { %4551 = vmatmul.mubr.msk.bf16.gmra.mrb[16].mxu0 %vm394_vm0, %v5315_v15 }
  0x60   : > { %4806 = vmatmul.mubr.msk.bf16.gmra.mrb[16].mxu1 %vm394_vm0, %v5369_v26  ;;  %525 = vmatprep.mubr.bf16.mxu0 %v5139_v0 }
  0x61   : > { %4809 = vmatprep.mubr.msk.bf16.mxu1 %vm394_vm0, %v5372_v27 }
  0x67   : > { %4552 = vmatmul.mubr.msk.bf16.gmra.mrb[20].mxu0 %vm394_vm0, %v5331_v18 }
  0x68   : > { %4810 = vmatmul.mubr.msk.bf16.gmra.mrb[20].mxu1 %vm394_vm0, %v5382_v28  ;;  %535 = vmatprep.mubr.bf16.mxu0 %v5139_v0 }
  0x69   : > { %4813 = vmatprep.mubr.msk.bf16.mxu1 %vm394_vm0, %v5385_v29 }
  0x6f   : > { %4553 = vmatmul.mubr.msk.bf16.gmra.mrb[24].mxu0 %vm394_vm0, %v5334_v19 }
  0x70   : > { %4814 = vmatmul.mubr.msk.bf16.gmra.mrb[24].mxu1 %vm394_vm0, %v5395_v30  ;;  %545 = vmatprep.mubr.bf16.mxu0 %v5139_v0 }
  0x71   : > { %4817 = vmatprep.mubr.msk.bf16.mxu1 %vm394_vm0, %v5398_v31 }
  0x77   : > { %4554 = vmatmul.mubr.msk.bf16.gmra.mrb[28].mxu0 %vm394_vm0, %v5356_v24 }
  0x78   : > { %4818 = vmatmul.mubr.msk.bf16.gmra.mrb[28].mxu1 %vm394_vm0, %v5408_v32  ;;  %555 = vmatprep.mubr.bf16.mxu0 %v5139_v0 }
  0x79   : > { %1429 = vmatprep.mubr.bf16.mxu1 %v5139_v0 }
  0x7f   : > { %4555 = vmatmul.mubr.msk.bf16.gmra.mrb[32].mxu0 %vm394_vm0, %v5359_v25 }
  0x80   : > { %4588 = vmatmul.mubr.msk.bf16.vlgmr.msra.gmra.mrb[32].mxu1 %vm394_vm0, %v5282_v7  ;;  %565 = vmatprep.mubr.bf16.mxu0 %v5139_v0 }
  0x81   : > { %2528 = vmatpush1.bf16.msra.mxu1 %v4968_v33  ;;  %1439 = vmatprep.mubr.bf16.mxu1 %v5139_v0 }
  0x82   : > { %2529 = vmatprep.subr.bf16.mxu1 %v4976_v34 }
  0x85   : > { %2530 = vmatpush1.bf16.msra.mxu1 %v4974_v35 }
  0x86   : > { %4821 = vmatprep.subr.bf16.mxu1 %v5434_v36 }
  0x87   : > { %4556 = vmatmul.mubr.msk.bf16.gmra.mrb[36].mxu0 %vm394_vm0, %v5369_v26 }
  0x88   : > { %4589 = vmatmul.mubr.msk.bf16.gmra.mrb[36].mxu1 %vm394_vm0, %v5285_v8  ;;  %575 = vmatprep.mubr.bf16.mxu0 %v5139_v0 }
  0x89   : > { %1449 = vmatprep.mubr.bf16.mxu1 %v5139_v0 }
  0x8f   : > { %4557 = vmatmul.mubr.msk.bf16.gmra.mrb[40].mxu0 %vm394_vm0, %v5372_v27 }
  0x90   : > { %4590 = vmatmul.mubr.msk.bf16.gmra.mrb[40].mxu1 %vm394_vm0, %v5302_v13  ;;  %585 = vmatprep.mubr.bf16.mxu0 %v5139_v0 }
  0x91   : > { %1459 = vmatprep.mubr.bf16.mxu1 %v5139_v0 }
  0x97   : > { %4558 = vmatmul.mubr.msk.bf16.gmra.mrb[44].mxu0 %vm394_vm0, %v5382_v28 }
  0x98   : > { %4591 = vmatmul.mubr.msk.bf16.gmra.mrb[44].mxu1 %vm394_vm0, %v5312_v14  ;;  %595 = vmatprep.mubr.bf16.mxu0 %v5139_v0 }
  0x99   : > { %1469 = vmatprep.mubr.bf16.mxu1 %v5139_v0 }
  0x9f   : > { %4559 = vmatmul.mubr.msk.bf16.gmra.mrb[48].mxu0 %vm394_vm0, %v5385_v29 }
  0xa0   : > { %4592 = vmatmul.mubr.msk.bf16.gmra.mrb[48].mxu1 %vm394_vm0, %v5315_v15  ;;  %605 = vmatprep.mubr.bf16.mxu0 %v5139_v0 }
  0xa1   : > { %1479 = vmatprep.mubr.bf16.mxu1 %v5139_v0 }
  0xa7   : > { %4560 = vmatmul.mubr.msk.bf16.gmra.mrb[52].mxu0 %vm394_vm0, %v5395_v30 }
  0xa8   : > { %4593 = vmatmul.mubr.msk.bf16.gmra.mrb[52].mxu1 %vm394_vm0, %v5331_v18  ;;  %615 = vmatprep.mubr.bf16.mxu0 %v5139_v0 }
  0xa9   : > { %1489 = vmatprep.mubr.bf16.mxu1 %v5139_v0 }
  0xaf   : > { %4561 = vmatmul.mubr.msk.bf16.gmra.mrb[56].mxu0 %vm394_vm0, %v5398_v31 }
  0xb0   : > { %4594 = vmatmul.mubr.msk.bf16.gmra.mrb[56].mxu1 %vm394_vm0, %v5334_v19  ;;  %625 = vmatprep.mubr.bf16.mxu0 %v5139_v0 }
  0xb1   : > { %1499 = vmatprep.mubr.bf16.mxu1 %v5139_v0 }
  0xb7   : > { %4562 = vmatmul.mubr.msk.bf16.gmra.mrb[60].mxu0 %vm394_vm0, %v5408_v32 }
  0xb8   : > { %4595 = vmatmul.mubr.msk.bf16.gmra.mrb[60].mxu1 %vm394_vm0, %v5356_v24  ;;  %1622 = vmatprep.mubr.bf16.mxu0 %v5139_v0 }
  0xb9   : > { %1509 = vmatprep.mubr.bf16.mxu1 %v5139_v0 }
  0xbf   : > { %4604 = vmatmul.mubr.msk.bf16.vlgmr.msra.gmra.mrb[64].mxu0 %vm394_vm0, %v5282_v7 }
  0xc0   : > { %4596 = vmatmul.mubr.msk.bf16.gmra.mrb[64].mxu1 %vm394_vm0, %v5359_v25  ;;  %2721 = vmatpush1.bf16.msra.mxu0 %v4971_v37 }
  0xc1   : > { %1519 = vmatprep.mubr.bf16.mxu1 %v5139_v0  ;;  %1632 = vmatprep.mubr.bf16.mxu0 %v5139_v0 }
  0xc2   : > { %2722 = vmatprep.subr.bf16.mxu0 %v4979_v38 }
  0xc4   : > { %2723 = vmatpush1.bf16.msra.mxu0 %v4977_v39 }
  0xc7   : > { %4605 = vmatmul.mubr.msk.bf16.gmra.mrb[68].mxu0 %vm394_vm0, %v5285_v8 }
  0xc8   : > { %4597 = vmatmul.mubr.msk.bf16.gmra.mrb[68].mxu1 %vm394_vm0, %v5369_v26  ;;  %1642 = vmatprep.mubr.bf16.mxu0 %v5139_v0 }
  0xc9   : > { %1529 = vmatprep.mubr.bf16.mxu1 %v5139_v0 }
  0xcf   : > { %4606 = vmatmul.mubr.msk.bf16.gmra.mrb[72].mxu0 %vm394_vm0, %v5302_v13 }
  0xd0   : > { %4598 = vmatmul.mubr.msk.bf16.gmra.mrb[72].mxu1 %vm394_vm0, %v5372_v27  ;;  %1652 = vmatprep.mubr.bf16.mxu0 %v5139_v0 }
  0xd1   : > { %1539 = vmatprep.mubr.bf16.mxu1 %v5139_v0 }
  0xd7   : > { %4607 = vmatmul.mubr.msk.bf16.gmra.mrb[76].mxu0 %vm394_vm0, %v5312_v14 }
  0xd8   : > { %4599 = vmatmul.mubr.msk.bf16.gmra.mrb[76].mxu1 %vm394_vm0, %v5382_v28  ;;  %1662 = vmatprep.mubr.bf16.mxu0 %v5139_v0 }
  0xd9   : > { %1549 = vmatprep.mubr.bf16.mxu1 %v5139_v0 }
  0xdf   : > { %4608 = vmatmul.mubr.msk.bf16.gmra.mrb[80].mxu0 %vm394_vm0, %v5315_v15 }
  0xe0   : > { %4600 = vmatmul.mubr.msk.bf16.gmra.mrb[80].mxu1 %vm394_vm0, %v5385_v29  ;;  %1672 = vmatprep.mubr.bf16.mxu0 %v5139_v0 }
  0xe1   : > { %1559 = vmatprep.mubr.bf16.mxu1 %v5139_v0 }
  0xe7   : > { %4609 = vmatmul.mubr.msk.bf16.gmra.mrb[84].mxu0 %vm394_vm0, %v5331_v18 }
  0xe8   : > { %4601 = vmatmul.mubr.msk.bf16.gmra.mrb[84].mxu1 %vm394_vm0, %v5395_v30  ;;  %1682 = vmatprep.mubr.bf16.mxu0 %v5139_v0 }
  0xe9   : > { %1569 = vmatprep.mubr.bf16.mxu1 %v5139_v0 }
  0xef   : > { %4610 = vmatmul.mubr.msk.bf16.gmra.mrb[88].mxu0 %vm394_vm0, %v5334_v19 }
  0xf0   : > { %4602 = vmatmul.mubr.msk.bf16.gmra.mrb[88].mxu1 %vm394_vm0, %v5398_v31  ;;  %1692 = vmatprep.mubr.bf16.mxu0 %v5139_v0 }
  0xf1   : > { %1579 = vmatprep.mubr.bf16.mxu1 %v5139_v0 }
  0xf7   : > { %4611 = vmatmul.mubr.msk.bf16.gmra.mrb[92].mxu0 %vm394_vm0, %v5356_v24 }
  0xf8   : > { %4603 = vmatmul.mubr.msk.bf16.gmra.mrb[92].mxu1 %vm394_vm0, %v5408_v32  ;;  %1702 = vmatprep.mubr.bf16.mxu0 %v5139_v0 }
  0xf9   : > { %2559 = vmatprep.mubr.bf16.mxu1 %v5139_v0 }
  0xff   : > { %4612 = vmatmul.mubr.msk.bf16.gmra.mrb[96].mxu0 %vm394_vm0, %v5359_v25 }
 0x100   : > { %4631 = vmatmul.mubr.msk.bf16.vlgmr.msra.gmra.mrb[96].mxu1 %vm394_vm0, %v5282_v7  ;;  %1712 = vmatprep.mubr.bf16.mxu0 %v5139_v0 }
 0x101   : > { %4822 = vmatpush3.bf16.msra.mxu1 %v5434_v36  ;;  %2569 = vmatprep.mubr.bf16.mxu1 %v5139_v0 }
 0x102   : > { %4823 = vmatprep.subr.bf16.mxu1 %v4981_v40 }
 0x105   : > { %4824 = vmatpush3.bf16.msra.mxu1 %v4981_v40 }
 0x107   : > { %4613 = vmatmul.mubr.msk.bf16.gmra.mrb[100].mxu0 %vm394_vm0, %v5369_v26 }
 0x108   : > { %4632 = vmatmul.mubr.msk.bf16.gmra.mrb[100].mxu1 %vm394_vm0, %v5285_v8  ;;  %1722 = vmatprep.mubr.bf16.mxu0 %v5139_v0 }
 0x109   : > { %2579 = vmatprep.mubr.bf16.mxu1 %v5139_v0 }
 0x10f   : > { %4614 = vmatmul.mubr.msk.bf16.gmra.mrb[104].mxu0 %vm394_vm0, %v5372_v27 }
 0x110   : > { %4633 = vmatmul.mubr.msk.bf16.gmra.mrb[104].mxu1 %vm394_vm0, %v5302_v13  ;;  %1732 = vmatprep.mubr.bf16.mxu0 %v5139_v0 }
 0x111   : > { %2589 = vmatprep.mubr.bf16.mxu1 %v5139_v0 }
 0x112   : > { %v477_v41 = vpop.f32.mrb[0].mxu0 }
 0x113   : > { %v4791_v42 = vpop.f32.mrb[0].mxu1  ;;  %v479_v43 = vpop.f32.mrb[1].mxu0 }
 0x114   : > { %v670_v44 = vpop.f32.mrb[1].mxu1  ;;  %v829_v45 = vrot.slane %v479_v43, 1  ;;  %v481_v46 = vpop.f32.mrb[2].mxu0  ;;  %v959_v5 = vrot.slane %v4791_v42, 2 }
 0x115   : > { %v4792_v47 = vpop.f32.mrb[2].mxu1  ;;  %v483_v48 = vpop.f32.mrb[3].mxu0  ;;  %v957_v51 = vrot.slane %v670_v44, 2 }
 0x116   : > { %v673_v49 = vpop.f32.mrb[3].mxu1  ;;  %v893_v50 = vadd.f32 %v829_v45, %v477_v41  ;;  %v830_v52 = vrot.slane %v483_v48, 1  ;;  %v960_v16 = vrot.slane %v4792_v47, 2 }
 0x117   : > { %4615 = vmatmul.mubr.msk.bf16.gmra.mrb[108].mxu0 %vm394_vm0, %v5382_v28  ;;  %v958_v56 = vrot.slane %v673_v49, 2 }
 0x118   : > { %4634 = vmatmul.mubr.msk.bf16.gmra.mrb[108].mxu1 %vm394_vm0, %v5312_v14  ;;  %v1021_v54 = vadd.f32 %v957_v51, %v893_v50  ;;  %v894_v55 = vadd.f32 %v830_v52, %v481_v46  ;;  %1742 = vmatprep.mubr.bf16.mxu0 %v5139_v0 }
 0x119   : > { %2599 = vmatprep.mubr.bf16.mxu1 %v5139_v0 }
 0x11a   : > { %v1060_v57 = vadd.f32 %v5561_v53, %v1021_v54  ;;  %v1022_v58 = vadd.f32 %v958_v56, %v894_v55  ;;  %v487_v59 = vpop.f32.mrb[4].mxu0 }
 0x11b   : > { %v5570_v60 = vpop.f32.mrb[4].mxu1  ;;  %v489_v61 = vpop.f32.mrb[5].mxu0 }
 0x11c   : > { %v686_v62 = vpop.f32.mrb[5].mxu1  ;;  %v1092_v63 = vmax.f32 %v1060_v57, 0.0  ;;  %v1061_v1 = vadd.f32 %v5561_v53, %v1022_v58  ;;  %v831_v2 = vrot.slane %v489_v61, 1  ;;  %v491_v3 = vpop.f32.mrb[6].mxu0 }
 0x11d   : > { %v5573_v4 = vpop.f32.mrb[6].mxu1  ;;  %v493_v6 = vpop.f32.mrb[7].mxu0  ;;  %v961_v47 = vrot.slane %v686_v62, 2 }
 0x11e   : > { %v689_v9 = vpop.f32.mrb[7].mxu1  ;;  %v1125_v10 = vsel %vm1124_vm1, %v1092_v63, -inf  ;;  %v1093_v11 = vmax.f32 %v1061_v1, 0.0  ;;  %v895_v12 = vadd.f32 %v831_v2, %v487_v59  ;;  %v832_v13 = vrot.slane %v493_v6, 1 }
 0x11f   : > { %v1126_v14 = vrot.slane %v1125_v10, 4  ;;  %4616 = vmatmul.mubr.msk.bf16.gmra.mrb[112].mxu0 %vm394_vm0, %v5385_v29  ;;  %v962_v59 = vrot.slane %v689_v9, 2 }
 0x120   : > { %4635 = vmatmul.mubr.msk.bf16.gmra.mrb[112].mxu1 %vm394_vm0, %v5315_v15  ;;  %v1132_v17 = vsel %vm1124_vm1, %v1093_v11, -inf  ;;  %v1023_v20 = vadd.f32 %v959_v5, %v895_v12  ;;  %v896_v21 = vadd.f32 %v832_v13, %v491_v3  ;;  %1752 = vmatprep.mubr.bf16.mxu0 %v5139_v0 }
 0x121   : > { %2609 = vmatprep.mubr.bf16.mxu1 %v5139_v0  ;;  %v1127_v22 = vmax.f32 %v1125_v10, %v1126_v14  ;;  %v1133_v23 = vrot.slane %v1132_v17, 4 }
 0x122   : > { %v1062_v33 = vadd.f32 %v5561_v53, %v1023_v20  ;;  %v1024_v34 = vadd.f32 %v960_v16, %v896_v21  ;;  %v497_v35 = vpop.f32.mrb[8].mxu0 }
 0x123   : > { %v5584_v36 = vpop.f32.mrb[8].mxu1  ;;  %v1128_v37 = vrot.slane %v1127_v22, 2  ;;  %v1134_v38 = vmax.f32 %v1132_v17, %v1133_v23  ;;  %v499_v15 = vpop.f32.mrb[9].mxu0  ;;  %v963_v23 = vrot.slane %v5570_v60, 2  ;;  %v964_v60 = vrot.slane %v5573_v4, 2 }
 0x124   : > { %v5586_v39 = vpop.f32.mrb[9].mxu1  ;;  %v1094_v40 = vmax.f32 %v1062_v33, 0.0  ;;  %v1063_v41 = vadd.f32 %v5561_v53, %v1024_v34  ;;  %v833_v42 = vrot.slane %v499_v15, 1  ;;  %v501_v43 = vpop.f32.mrb[10].mxu0 }
 0x125   : > { %v5589_v44 = vpop.f32.mrb[10].mxu1  ;;  %v1129_v45 = vmax.f32 %v1127_v22, %v1128_v37  ;;  %v1135_v46 = vrot.slane %v1134_v38, 2  ;;  %v503_v48 = vpop.f32.mrb[11].mxu0 }
 0x126   : > { %v5591_v49 = vpop.f32.mrb[11].mxu1  ;;  %v1139_v50 = vsel %vm1124_vm1, %v1094_v40, -inf  ;;  %v1095_v51 = vmax.f32 %v1063_v41, 0.0  ;;  %v897_v52 = vadd.f32 %v833_v42, %v497_v35  ;;  %v834_v54 = vrot.slane %v503_v48, 1 }
 0x127   : > { %v1130_v55 = vrot.slane %v1129_v45, 1  ;;  %v1136_v56 = vmax.f32 %v1134_v38, %v1135_v46  ;;  %v1140_v57 = vrot.slane %v1139_v50, 4  ;;  %4617 = vmatmul.mubr.msk.bf16.gmra.mrb[116].mxu0 %vm394_vm0, %v5395_v30 }
 0x128   : > { %4636 = vmatmul.mubr.msk.bf16.gmra.mrb[116].mxu1 %vm394_vm0, %v5331_v18  ;;  %v1146_v58 = vsel %vm1124_vm1, %v1095_v51, -inf  ;;  %v1025_v61 = vadd.f32 %v961_v47, %v897_v52  ;;  %v898_v62 = vadd.f32 %v834_v54, %v501_v43  ;;  %1762 = vmatprep.mubr.bf16.mxu0 %v5139_v0 }
 0x129   : > { %2619 = vmatprep.mubr.bf16.mxu1 %v5139_v0  ;;  %v1137_v63 = vrot.slane %v1136_v56, 1  ;;  %v1141_v1 = vmax.f32 %v1139_v50, %v1140_v57  ;;  %v1147_v2 = vrot.slane %v1146_v58, 4  ;;  %v1131_v18 = vmax.f32 %v1129_v45, %v1130_v55 }
 0x12a   : > { %v1064_v3 = vadd.f32 %v5561_v53, %v1025_v61  ;;  %v1026_v5 = vadd.f32 %v962_v59, %v898_v62  ;;  %v507_v30 = vpop.f32.mrb[12].mxu0 }
 0x12b   : > { %v5602_v6 = vpop.f32.mrb[12].mxu1  ;;  %v1138_v10 = vmax.f32 %v1136_v56, %v1137_v63  ;;  %v1142_v11 = vrot.slane %v1141_v1, 2  ;;  %v1148_v9 = vmax.f32 %v1146_v58, %v1147_v2  ;;  %v509_v12 = vpop.f32.mrb[13].mxu0 }
 0x12c   : > { %v5604_v13 = vpop.f32.mrb[13].mxu1  ;;  %v1096_v14 = vmax.f32 %v1064_v3, 0.0  ;;  %v1065_v16 = vadd.f32 %v5561_v53, %v1026_v5  ;;  %v835_v17 = vrot.slane %v509_v12, 1  ;;  %v511_v20 = vpop.f32.mrb[14].mxu0  ;;  %v965_v12 = vrot.slane %v5586_v39, 2 }
 0x12d   : > { %v5607_v21 = vpop.f32.mrb[14].mxu1  ;;  %v3915_v22 = vsel %vm3914_vm2, %v1138_v10, %v1131_v18  ;;  %v1143_v33 = vmax.f32 %v1141_v1, %v1142_v11  ;;  %v1149_v34 = vrot.slane %v1148_v9, 2  ;;  %v513_v35 = vpop.f32.mrb[15].mxu0 }
 0x12e   : > { %v5611_v37 = vpop.f32.mrb[15].mxu1  ;;  %v1153_v38 = vsel %vm1124_vm1, %v1096_v14, -inf  ;;  %v1097_v15 = vmax.f32 %v1065_v16, 0.0  ;;  %v899_v40 = vadd.f32 %v835_v17, %v507_v30  ;;  %v836_v41 = vrot.slane %v513_v35, 1 }
 0x12f   : > { %v1144_v42 = vrot.slane %v1143_v33, 1  ;;  %v1150_v43 = vmax.f32 %v1148_v9, %v1149_v34  ;;  %v1154_v45 = vrot.slane %v1153_v38, 4  ;;  %4618 = vmatmul.mubr.msk.bf16.gmra.mrb[120].mxu0 %vm394_vm0, %v5398_v31 }
 0x130   : > { %4637 = vmatmul.mubr.msk.bf16.gmra.mrb[120].mxu1 %vm394_vm0, %v5334_v19  ;;  %v1160_v46 = vsel %vm1124_vm1, %v1097_v15, -inf  ;;  %v1027_v47 = vadd.f32 %v963_v23, %v899_v40  ;;  %v900_v48 = vadd.f32 %v836_v41, %v511_v20  ;;  %1772 = vmatprep.mubr.bf16.mxu0 %v5139_v0  ;;  %v966_v41 = vrot.slane %v5591_v49, 2 }
 0x131   : > { %2629 = vmatprep.mubr.bf16.mxu1 %v5139_v0  ;;  %v1145_v50 = vmax.f32 %v1143_v33, %v1144_v42  ;;  %v1151_v51 = vrot.slane %v1150_v43, 1  ;;  %v1155_v52 = vmax.f32 %v1153_v38, %v1154_v45  ;;  %v1161_v54 = vrot.slane %v1160_v46, 4 }
 0x132   : > { %v1066_v31 = vadd.f32 %v5561_v53, %v1027_v47  ;;  %v1028_v55 = vadd.f32 %v964_v60, %v900_v48  ;;  %v517_v56 = vpop.f32.mrb[16].mxu0  ;;  %v967_v49 = vrot.slane %v5584_v36, 2 }
 0x133   : > { %v5623_v19 = vpop.f32.mrb[16].mxu1  ;;  %v3917_v4 = vsel %vm3916_vm3, %v1145_v50, %v3915_v22  ;;  %v1152_v57 = vmax.f32 %v1150_v43, %v1151_v51  ;;  %v1156_v58 = vrot.slane %v1155_v52, 2  ;;  %v1162_v59 = vmax.f32 %v1160_v46, %v1161_v54  ;;  %v519_v61 = vpop.f32.mrb[17].mxu0 }
 0x134   : > { %v5626_v62 = vpop.f32.mrb[17].mxu1  ;;  %v1098_v63 = vmax.f32 %v1066_v31, 0.0  ;;  %v1067_v1 = vadd.f32 %v5561_v53, %v1028_v55  ;;  %v837_v2 = vrot.slane %v519_v61, 1  ;;  %v521_v3 = vpop.f32.mrb[18].mxu0 }
 0x135   : > { %v5629_v5 = vpop.f32.mrb[18].mxu1  ;;  %v3919_v30 = vsel %vm3918_vm4, %v1152_v57, %v3917_v4  ;;  %v1157_v18 = vmax.f32 %v1155_v52, %v1156_v58  ;;  %v1163_v10 = vrot.slane %v1162_v59, 2  ;;  %v523_v11 = vpop.f32.mrb[19].mxu0 }
 0x136   : > { %v5632_v9 = vpop.f32.mrb[19].mxu1  ;;  %v1167_v14 = vsel %vm1124_vm1, %v1098_v63, -inf  ;;  %v1099_v16 = vmax.f32 %v1067_v1, 0.0  ;;  %v901_v17 = vadd.f32 %v837_v2, %v517_v56  ;;  %v838_v33 = vrot.slane %v523_v11, 1 }
 0x137   : > { %v1158_v20 = vrot.slane %v1157_v18, 1  ;;  %v1164_v22 = vmax.f32 %v1162_v59, %v1163_v10  ;;  %v1168_v23 = vrot.slane %v1167_v14, 4  ;;  %4619 = vmatmul.mubr.msk.bf16.gmra.mrb[124].mxu0 %vm394_vm0, %v5408_v32  ;;  %v968_v2 = vrot.slane %v5589_v44, 2 }
 0x138   : > { %4638 = vmatmul.mubr.msk.bf16.gmra.mrb[124].mxu1 %vm394_vm0, %v5356_v24  ;;  %v1174_v34 = vsel %vm1124_vm1, %v1099_v16, -inf  ;;  %v1029_v35 = vadd.f32 %v965_v12, %v901_v17  ;;  %2752 = vmatprep.mubr.bf16.mxu0 %v5139_v0  ;;  %v902_v32 = vadd.f32 %v838_v33, %v521_v3 }
 0x139   : > { %2639 = vmatprep.mubr.bf16.mxu1 %v5139_v0  ;;  %v1159_v39 = vmax.f32 %v1157_v18, %v1158_v20  ;;  %v1165_v38 = vrot.slane %v1164_v22, 1  ;;  %v1169_v15 = vmax.f32 %v1167_v14, %v1168_v23  ;;  %v1175_v40 = vrot.slane %v1174_v34, 4 }
 0x13a   : > { %v1068_v42 = vadd.f32 %v5561_v53, %v1029_v35  ;;  %v527_v43 = vpop.f32.mrb[20].mxu0  ;;  %v1030_v52 = vadd.f32 %v966_v41, %v902_v32  ;;  %v969_v32 = vrot.slane %v5604_v13, 2 }
 0x13b   : > { %v5645_v45 = vpop.f32.mrb[20].mxu1  ;;  %v3921_v24 = vsel %vm3920_vm5, %v1159_v39, %v3919_v30  ;;  %v1170_v60 = vrot.slane %v1169_v15, 2  ;;  %v1176_v46 = vmax.f32 %v1174_v34, %v1175_v40  ;;  %v529_v47 = vpop.f32.mrb[21].mxu0  ;;  %v1166_v50 = vmax.f32 %v1164_v22, %v1165_v38 }
 0x13c   : > { %v5648_v48 = vpop.f32.mrb[21].mxu1  ;;  %v1100_v51 = vmax.f32 %v1068_v42, 0.0  ;;  %v839_v54 = vrot.slane %v529_v47, 1  ;;  %v531_v31 = vpop.f32.mrb[22].mxu0  ;;  %v1069_v61 = vadd.f32 %v5561_v53, %v1030_v52 }
 0x13d   : > { %v5650_v55 = vpop.f32.mrb[22].mxu1  ;;  %v1171_v56 = vmax.f32 %v1169_v15, %v1170_v60  ;;  %v1177_v4 = vrot.slane %v1176_v46, 2  ;;  %v533_v57 = vpop.f32.mrb[23].mxu0  ;;  %v3923_v12 = vsel %vm3922_vm6, %v1166_v50, %v3921_v24 }
 0x13e   : > { %v5653_v58 = vpop.f32.mrb[23].mxu1  ;;  %v1181_v59 = vsel %vm1124_vm1, %v1100_v51, -inf  ;;  %v903_v63 = vadd.f32 %v839_v54, %v527_v43  ;;  %v840_v1 = vrot.slane %v533_v57, 1  ;;  %v1101_v36 = vmax.f32 %v1069_v61, 0.0 }
 0x13f   : > { %v1172_v3 = vrot.slane %v1171_v56, 1  ;;  %v1178_v30 = vmax.f32 %v1176_v46, %v1177_v4  ;;  %v1182_v18 = vrot.slane %v1181_v59, 4  ;;  %4647 = vmatmul.mubr.msk.bf16.vlgmr.msra.gmra.mrb[128].mxu0 %vm394_vm0, %v5282_v7 }
 0x140   : > { %4639 = vmatmul.mubr.msk.bf16.gmra.mrb[128].mxu1 %vm394_vm0, %v5359_v25  ;;  %v1031_v10 = vadd.f32 %v967_v49, %v903_v63  ;;  %v904_v11 = vadd.f32 %v840_v1, %v531_v31  ;;  %2762 = vmatprep.mubr.bf16.mxu0 %v5139_v0  ;;  %v1188_v17 = vsel %vm1124_vm1, %v1101_v36, -inf  ;;  %v970_v31 = vrot.slane %v5611_v37, 2 }
 0x141   : > { %2649 = vmatprep.mubr.bf16.mxu1 %v5139_v0  ;;  %v1173_v14 = vmax.f32 %v1171_v56, %v1172_v3  ;;  %v1179_v44 = vrot.slane %v1178_v30, 1  ;;  %v1183_v16 = vmax.f32 %v1181_v59, %v1182_v18  ;;  %v1189_v33 = vrot.slane %v1188_v17, 4  ;;  %v4982_v59 = vld [vmem:[#allocation2 + $0x40] sm:$0xff]  }
 0x142   : > { %v1070_v20 = vadd.f32 %v5561_v53, %v1031_v10  ;;  %v1032_v25 = vadd.f32 %v968_v2, %v904_v11  ;;  %v537_v22 = vpop.f32.mrb[24].mxu0  ;;  %4747 = vmatprep.subr.bf16.mxu0 %v4982_v59 }
 0x143   : > { %v5667_v23 = vpop.f32.mrb[24].mxu1  ;;  %v1184_v7 = vrot.slane %v1183_v16, 2  ;;  %v539_v34 = vpop.f32.mrb[25].mxu0  ;;  %v1180_v39 = vmax.f32 %v1178_v30, %v1179_v44  ;;  %v1190_v24 = vmax.f32 %v1188_v17, %v1189_v33  ;;  %v3925_v47 = vsel %vm3924_vm7, %v1173_v14, %v3923_v12 }
 0x144   : > { %v5669_v35 = vpop.f32.mrb[25].mxu1  ;;  %v1102_v38 = vmax.f32 %v1070_v20, 0.0  ;;  %v1071_v15 = vadd.f32 %v5561_v53, %v1032_v25  ;;  %v841_v40 = vrot.slane %v539_v34, 1  ;;  %v541_v41 = vpop.f32.mrb[26].mxu0  ;;  %v971_v44 = vrot.slane %v5602_v6, 2 }
 0x145   : > { %v5672_v42 = vpop.f32.mrb[26].mxu1  ;;  %v1185_v43 = vmax.f32 %v1183_v16, %v1184_v7  ;;  %v543_v60 = vpop.f32.mrb[27].mxu0  ;;  %v1191_v49 = vrot.slane %v1190_v24, 2  ;;  %v5688_v61 = vsel %vm3926_vm8, %v1180_v39, %v3925_v47  ;;  %v4984_v7 = vld [vmem:[#allocation2 + $0x48] sm:$0xff]  }
 0x146   : > { %v5675_v46 = vpop.f32.mrb[27].mxu1  ;;  %v1195_v50 = vsel %vm1124_vm1, %v1102_v38, -inf  ;;  %v1103_v51 = vmax.f32 %v1071_v15, 0.0  ;;  %v905_v52 = vadd.f32 %v841_v40, %v537_v22  ;;  %v842_v54 = vrot.slane %v543_v60, 1 }
 0x147   : > { %v1196_v56 = vrot.slane %v1195_v50, 4  ;;  %4648 = vmatmul.mubr.msk.bf16.gmra.mrb[132].mxu0 %vm394_vm0, %v5285_v8  ;;  %v1186_v37 = vrot.slane %v1185_v43, 1  ;;  %v1192_v63 = vmax.f32 %v1190_v24, %v1191_v49 }
 0x148   : > { %4640 = vmatmul.mubr.msk.bf16.gmra.mrb[132].mxu1 %vm394_vm0, %v5369_v26  ;;  %v1202_v13 = vsel %vm1124_vm1, %v1103_v51, -inf  ;;  %v1033_v4 = vadd.f32 %v969_v32, %v905_v52  ;;  %v906_v57 = vadd.f32 %v842_v54, %v541_v41  ;;  %2772 = vmatprep.mubr.bf16.mxu0 %v5139_v0  ;;  %v4983_v26 = vld [vmem:[#allocation2] sm:$0xff]   ;;  %v4985_v41 = vld [vmem:[#allocation2 + $0x8] sm:$0xff]   ;;  %v972_v54 = vrot.slane %v5607_v21, 2 }
 0x149   : > { %2659 = vmatprep.mubr.bf16.mxu1 %v5139_v0  ;;  %v1197_v1 = vmax.f32 %v1195_v50, %v1196_v56  ;;  %v1203_v2 = vrot.slane %v1202_v13, 4  ;;  %v1193_v36 = vrot.slane %v1192_v63, 1  ;;  %4748 = vmatpush3.bf16.msra.mxu0 %v4983_v26  ;;  %v1187_v33 = vmax.f32 %v1185_v43, %v1186_v37  ;;  %v5706_v43 = vld [vmem:[%s5270_s15 + $0x10] sm:$0xff]  }
 0x14a   : > { %v1072_v3 = vadd.f32 %v5561_v53, %v1033_v4  ;;  %v1034_v8 = vadd.f32 %v970_v31, %v906_v57  ;;  %v547_v30 = vpop.f32.mrb[28].mxu0  ;;  %4749 = vmatprep.subr.bf16.mxu0 %v4984_v7  ;;  %v4987_v37 = vld [vmem:[#allocation2 + $0x10] sm:$0xff]   ;;  %v973_v7 = vrot.slane %v5626_v62, 2 }
 0x14b   : > { %v5691_v18 = vpop.f32.mrb[28].mxu1  ;;  %v1198_v10 = vrot.slane %v1197_v1, 2  ;;  %v1204_v11 = vmax.f32 %v1202_v13, %v1203_v2  ;;  %v549_v12 = vpop.f32.mrb[29].mxu0  ;;  %v1194_v34 = vmax.f32 %v1192_v63, %v1193_v36  ;;  %v4986_v13 = vld [vmem:[#allocation2 + $0x50] sm:$0xff]  }
 0x14c   : > { %v5693_v14 = vpop.f32.mrb[29].mxu1  ;;  %v1104_v16 = vmax.f32 %v1072_v3, 0.0  ;;  %v1073_v17 = vadd.f32 %v5561_v53, %v1034_v8  ;;  %v843_v20 = vrot.slane %v549_v12, 1  ;;  %v551_v25 = vpop.f32.mrb[30].mxu0 }
 0x14d   : > { %v5697_v22 = vpop.f32.mrb[30].mxu1  ;;  %v1199_v39 = vmax.f32 %v1197_v1, %v1198_v10  ;;  %v1205_v38 = vrot.slane %v1204_v11, 2  ;;  %v553_v15 = vpop.f32.mrb[31].mxu0  ;;  %v3928_v47 = vsel %vm3914_vm2, %v1194_v34, %v1187_v33  ;;  %4750 = vmatpush3.bf16.msra.mxu0 %v4985_v41  ;;  %v4989_v41 = vld [vmem:[#allocation2 + $0x18] sm:$0xff]  }
 0x14e   : > { %v5699_v40 = vpop.f32.mrb[31].mxu1  ;;  %v1209_v32 = vsel %vm1124_vm1, %v1104_v16, -inf  ;;  %v1105_v6 = vmax.f32 %v1073_v17, 0.0  ;;  %v907_v24 = vadd.f32 %v843_v20, %v547_v30  ;;  %v844_v60 = vrot.slane %v553_v15, 1  ;;  %4751 = vmatprep.subr.bf16.mxu0 %v4986_v13  ;;  %v4990_v13 = vld [vmem:[#allocation2 + $0x60] sm:$0xff]  }
 0x14f   : > { %v1200_v50 = vrot.slane %v1199_v39, 1  ;;  %v1206_v51 = vmax.f32 %v1204_v11, %v1205_v38  ;;  %v1210_v52 = vrot.slane %v1209_v32, 4  ;;  %4649 = vmatmul.mubr.msk.bf16.gmra.mrb[136].mxu0 %vm394_vm0, %v5706_v43 }
 0x150   : > { %4641 = vmatmul.mubr.msk.bf16.gmra.mrb[136].mxu1 %vm394_vm0, %v5372_v27  ;;  %v1216_v31 = vsel %vm1124_vm1, %v1105_v6, -inf  ;;  %v1035_v49 = vadd.f32 %v971_v44, %v907_v24  ;;  %v908_v56 = vadd.f32 %v844_v60, %v551_v25  ;;  %2782 = vmatprep.mubr.bf16.mxu0 %v5139_v0  ;;  %v4988_v25 = vld [vmem:[#allocation2 + $0x58] sm:$0xff]  }
 0x151   : > { %2669 = vmatprep.mubr.bf16.mxu1 %v5139_v0  ;;  %v1201_v4 = vmax.f32 %v1199_v39, %v1200_v50  ;;  %v1207_v57 = vrot.slane %v1206_v51, 1  ;;  %v1211_v59 = vmax.f32 %v1209_v32, %v1210_v52  ;;  %v1217_v27 = vrot.slane %v1216_v31, 4  ;;  %4752 = vmatpush3.bf16.msra.mxu0 %v4987_v37  ;;  %v5725_v52 = vld [vmem:[%s5270_s15 + $0x18] sm:$0xff]  }
 0x152   : > { %v1074_v63 = vadd.f32 %v5561_v53, %v1035_v49  ;;  %v1036_v1 = vadd.f32 %v972_v54, %v908_v56  ;;  %v557_v2 = vpop.f32.mrb[32].mxu0  ;;  %4753 = vmatprep.subr.bf16.mxu0 %v4988_v25  ;;  %v975_v54 = vrot.slane %v5623_v19, 2  ;;  %v974_v37 = vrot.slane %v5632_v9, 2 }
 0x153   : > { %v1431_v21 = vpop.f32.mrb[32].mxu1  ;;  %v3929_v26 = vsel %vm3916_vm3, %v1201_v4, %v3928_v47  ;;  %v1208_v3 = vmax.f32 %v1206_v51, %v1207_v57  ;;  %v1212_v8 = vrot.slane %v1211_v59, 2  ;;  %v1218_v30 = vmax.f32 %v1216_v31, %v1217_v27  ;;  %v559_v36 = vpop.f32.mrb[33].mxu0  ;;  %v4991_v27 = vld [vmem:[#allocation2 + $0x20] sm:$0xff]  }
 0x154   : > { %v1433_v10 = vpop.f32.mrb[33].mxu1  ;;  %v1106_v11 = vmax.f32 %v1074_v63, 0.0  ;;  %v1075_v12 = vadd.f32 %v5561_v53, %v1036_v1  ;;  %v845_v44 = vrot.slane %v559_v36, 1  ;;  %v561_v17 = vpop.f32.mrb[34].mxu0 }
 0x155   : > { %v1815_v16 = vrot.slane %v1433_v10, 1  ;;  %v1435_v20 = vpop.f32.mrb[34].mxu1  ;;  %v3930_v33 = vsel %vm3918_vm4, %v1208_v3, %v3929_v26  ;;  %v1213_v34 = vmax.f32 %v1211_v59, %v1212_v8  ;;  %v1219_v39 = vrot.slane %v1218_v30, 2  ;;  %v563_v38 = vpop.f32.mrb[35].mxu0  ;;  %4754 = vmatpush3.bf16.msra.mxu0 %v4989_v41 }
 0x156   : > { %v1437_v15 = vpop.f32.mrb[35].mxu1  ;;  %v1223_v32 = vsel %vm1124_vm1, %v1106_v11, -inf  ;;  %v1107_v6 = vmax.f32 %v1075_v12, 0.0  ;;  %v909_v24 = vadd.f32 %v845_v44, %v557_v2  ;;  %v846_v62 = vrot.slane %v563_v38, 1  ;;  %4755 = vmatprep.subr.bf16.mxu0 %v4990_v13 }
 0x157   : > { %v5720_v60 = vadd.f32 %v1815_v16, %v1431_v21  ;;  %v1214_v47 = vrot.slane %v1213_v34, 1  ;;  %v1220_v50 = vmax.f32 %v1218_v30, %v1219_v39  ;;  %v1224_v51 = vrot.slane %v1223_v32, 4  ;;  %4650 = vmatmul.mubr.msk.bf16.gmra.mrb[140].mxu0 %vm394_vm0, %v5725_v52 }
 0x158   : > { %4642 = vmatmul.mubr.msk.bf16.gmra.mrb[140].mxu1 %vm394_vm0, %v5382_v28  ;;  %v1230_v31 = vsel %vm1124_vm1, %v1107_v6, -inf  ;;  %v1037_v49 = vadd.f32 %v973_v7, %v909_v24  ;;  %v1816_v56 = vrot.slane %v1437_v15, 1  ;;  %2792 = vmatprep.mubr.bf16.mxu0 %v5139_v0  ;;  %v910_v19 = vadd.f32 %v846_v62, %v561_v17  ;;  %v4992_v7 = vld [vmem:[#allocation2 + $0x68] sm:$0xff]   ;;  %v5747_v62 = vld [vmem:[%s5270_s15 + $0x20] sm:$0xff]  }
 0x159   : > { %2679 = vmatprep.mubr.bf16.mxu1 %v5139_v0  ;;  %v1215_v4 = vmax.f32 %v1213_v34, %v1214_v47  ;;  %v1221_v57 = vrot.slane %v1220_v50, 1  ;;  %v1225_v59 = vmax.f32 %v1223_v32, %v1224_v51  ;;  %v1231_v28 = vrot.slane %v1230_v31, 4  ;;  %4756 = vmatpush3.bf16.msra.mxu0 %v4991_v27 }
 0x15a   : > { %v1076_v63 = vadd.f32 %v5561_v53, %v1037_v49  ;;  %v5735_v1 = vadd.f32 %v1816_v56, %v1435_v20  ;;  %v567_v2 = vpop.f32.mrb[36].mxu0  ;;  %v1038_v12 = vadd.f32 %v974_v37, %v910_v19  ;;  %v976_v17 = vrot.slane %v5629_v5, 2  ;;  %4757 = vmatprep.subr.bf16.mxu0 %v4992_v7 }
 0x15b   : > { %v1441_v21 = vpop.f32.mrb[36].mxu1  ;;  %v3931_v26 = vsel %vm3920_vm5, %v1215_v4, %v3930_v33  ;;  %v1222_v3 = vmax.f32 %v1220_v50, %v1221_v57  ;;  %v1226_v8 = vrot.slane %v1225_v59, 2  ;;  %v1232_v30 = vmax.f32 %v1230_v31, %v1231_v28  ;;  %v569_v36 = vpop.f32.mrb[37].mxu0  ;;  %v4993_v33 = vld [vmem:[#allocation2 + $0x28] sm:$0xff]   ;;  %v4994_v4 = vld [vmem:[#allocation2 + $0x70] sm:$0xff]  }
 0x15c   : > { %v1443_v10 = vpop.f32.mrb[37].mxu1  ;;  %v1108_v11 = vmax.f32 %v1076_v63, 0.0  ;;  %v847_v44 = vrot.slane %v569_v36, 1  ;;  %v571_v9 = vpop.f32.mrb[38].mxu0  ;;  %v1077_v32 = vadd.f32 %v5561_v53, %v1038_v12  ;;  %v979_v31 = vrot.slane %v5645_v45, 2 }
 0x15d   : > { %v1817_v16 = vrot.slane %v1443_v10, 1  ;;  %v1445_v25 = vpop.f32.mrb[38].mxu1  ;;  %v1227_v20 = vmax.f32 %v1225_v59, %v1226_v8  ;;  %v1233_v34 = vrot.slane %v1232_v30, 2  ;;  %v573_v39 = vpop.f32.mrb[39].mxu0  ;;  %v3932_v15 = vsel %vm3922_vm6, %v1222_v3, %v3931_v26  ;;  %4758 = vmatpush3.bf16.msra.mxu0 %v4993_v33 }
 0x15e   : > { %v1447_v38 = vpop.f32.mrb[39].mxu1  ;;  %v1237_v41 = vsel %vm1124_vm1, %v1108_v11, -inf  ;;  %v911_v6 = vadd.f32 %v847_v44, %v567_v2  ;;  %v848_v51 = vrot.slane %v573_v39, 1  ;;  %v1109_v49 = vmax.f32 %v1077_v32, 0.0  ;;  %4759 = vmatprep.subr.bf16.mxu0 %v4994_v4 }
 0x15f   : > { %v5742_v24 = vadd.f32 %v1817_v16, %v1441_v21  ;;  %v1228_v47 = vrot.slane %v1227_v20, 1  ;;  %v1234_v50 = vmax.f32 %v1232_v30, %v1233_v34  ;;  %v1238_v5 = vrot.slane %v1237_v41, 4  ;;  %4651 = vmatmul.mubr.msk.bf16.gmra.mrb[144].mxu0 %vm394_vm0, %v5747_v62 }
 0x160   : > { %4643 = vmatmul.mubr.msk.bf16.gmra.mrb[144].mxu1 %vm394_vm0, %v5385_v29  ;;  %v1039_v56 = vadd.f32 %v975_v54, %v911_v6  ;;  %v1818_v13 = vrot.slane %v1447_v38, 1  ;;  %2802 = vmatprep.mubr.bf16.mxu0 %v5139_v0  ;;  %v912_v27 = vadd.f32 %v848_v51, %v571_v9  ;;  %v4995_v29 = vld [vmem:[#allocation2 + $0x30] sm:$0xff]   ;;  %v977_v37 = vrot.slane %v5648_v48, 2  ;;  %v4996_v9 = vld [vmem:[#allocation2 + $0x78] sm:$0xff]  }
 0x161   : > { %2689 = vmatprep.mubr.bf16.mxu1 %v5139_v0  ;;  %v1229_v57 = vmax.f32 %v1227_v20, %v1228_v47  ;;  %v1235_v59 = vrot.slane %v1234_v50, 1  ;;  %v1239_v28 = vmax.f32 %v1237_v41, %v1238_v5  ;;  %v1244_v63 = vsel %vm1124_vm1, %v1109_v49, -inf  ;;  %4760 = vmatpush3.bf16.msra.mxu0 %v4995_v29  ;;  %v5769_v49 = vld [vmem:[%s5270_s15 + $0x68] sm:$0xff]  }
 0x162   : > { %v1078_v19 = vadd.f32 %v5561_v53, %v1039_v56  ;;  %v5757_v2 = vadd.f32 %v1818_v13, %v1445_v25  ;;  %v577_v54 = vpop.f32.mrb[40].mxu0  ;;  %v1245_v8 = vrot.slane %v1244_v63, 4  ;;  %v1040_v30 = vadd.f32 %v976_v17, %v912_v27  ;;  %v4997_v17 = vld [vmem:[#allocation2 + $0x38] sm:$0xff]   ;;  %4761 = vmatprep.subr.bf16.mxu0 %v4996_v9  ;;  %v5774_v56 = vld [vmem:[%s5270_s15 + $0x28] sm:$0xff]  }
 0x163   : > { %v1451_v21 = vpop.f32.mrb[40].mxu1  ;;  %v1236_v26 = vmax.f32 %v1234_v50, %v1235_v59  ;;  %v1240_v3 = vrot.slane %v1239_v28, 2  ;;  %v579_v36 = vpop.f32.mrb[41].mxu0  ;;  %v3933_v7 = vsel %vm3924_vm7, %v1229_v57, %v3932_v15  ;;  %v978_v15 = vrot.slane %v5653_v58, 2 }
 0x164   : > { %v1453_v10 = vpop.f32.mrb[41].mxu1  ;;  %v1110_v11 = vmax.f32 %v1078_v19, 0.0  ;;  %v849_v12 = vrot.slane %v579_v36, 1  ;;  %v581_v16 = vpop.f32.mrb[42].mxu0  ;;  %v1246_v25 = vmax.f32 %v1244_v63, %v1245_v8  ;;  %v1079_v34 = vadd.f32 %v5561_v53, %v1040_v30 }
 0x165   : > { %v1819_v44 = vrot.slane %v1453_v10, 1  ;;  %v1455_v48 = vpop.f32.mrb[42].mxu1  ;;  %v1241_v20 = vmax.f32 %v1239_v28, %v1240_v3  ;;  %v583_v39 = vpop.f32.mrb[43].mxu0  ;;  %v5762_v33 = vsel %vm3926_vm8, %v1236_v26, %v3933_v7  ;;  %4762 = vmatpush3.bf16.msra.mxu0 %v4997_v17  ;;  %v980_v3 = vrot.slane %v5650_v55, 2 }
 0x166   : > { %v1457_v38 = vpop.f32.mrb[43].mxu1  ;;  %v1251_v41 = vsel %vm1124_vm1, %v1110_v11, -inf  ;;  %v913_v32 = vadd.f32 %v849_v12, %v577_v54  ;;  %v850_v47 = vrot.slane %v583_v39, 1  ;;  %v1247_v50 = vrot.slane %v1246_v25, 2 }
 0x167   : > { %v5765_v6 = vadd.f32 %v1819_v44, %v1451_v21  ;;  %v1252_v5 = vrot.slane %v1251_v41, 4  ;;  %v1111_v51 = vmax.f32 %v1079_v34, 0.0  ;;  %4652 = vmatmul.mubr.msk.bf16.gmra.mrb[148].mxu0 %vm394_vm0, %v5774_v56  ;;  %v1820_v57 = vrot.slane %v1457_v38, 1 }
 0x168   : > { %4644 = vmatmul.mubr.msk.bf16.gmra.mrb[148].mxu1 %vm394_vm0, %v5769_v49  ;;  %v1041_v13 = vadd.f32 %v977_v37, %v913_v32  ;;  %v914_v4 = vadd.f32 %v850_v47, %v581_v16  ;;  %2812 = vmatprep.mubr.bf16.mxu0 %v5139_v0  ;;  %v4081_v58 = vpack.c.bf16 %v5762_v33, %v5688_v61  ;;  %v1242_v59 = vrot.slane %v1241_v20, 1 }
 0x169   : > { %2699 = vmatprep.mubr.bf16.mxu1 %v5139_v0  ;;  %v1248_v28 = vmax.f32 %v1246_v25, %v1247_v50  ;;  %v1253_v27 = vmax.f32 %v1251_v41, %v1252_v5  ;;  %v1258_v29 = vsel %vm1124_vm1, %v1111_v51, -inf  ;;  %v5784_v37 = vadd.f32 %v1820_v57, %v1455_v48 }
 0x16a   : > { %v1259_v63 = vrot.slane %v1258_v29, 4  ;;  %v1080_v19 = vadd.f32 %v5561_v53, %v1041_v13  ;;  %v1042_v54 = vadd.f32 %v978_v15, %v914_v4  ;;  %v587_v21 = vpop.f32.mrb[44].mxu0  ;;  %v981_v8 = vrot.slane %v5669_v35, 2  ;;  %v5793_v4 = vld [vmem:[%s5270_s15 + $0x70] sm:$0xff]   ;;  %v5837_v35 = vld [vmem:[%s6661_s2] ss:$0 sm:$0xff] }
 0x16b   : > { %v1461_v26 = vpop.f32.mrb[44].mxu1  ;;  %v1249_v30 = vrot.slane %v1248_v28, 1  ;;  %v1254_v36 = vrot.slane %v1253_v27, 2  ;;  %v589_v10 = vpop.f32.mrb[45].mxu0  ;;  %v1243_v48 = vmax.f32 %v1241_v20, %v1242_v59  ;;  %v5798_v20 = vld [vmem:[%s5270_s15 + $0x30] sm:$0xff]  }
 0x16c   : > { %v1463_v11 = vpop.f32.mrb[45].mxu1  ;;  %v1260_v12 = vmax.f32 %v1258_v29, %v1259_v63  ;;  %v1112_v44 = vmax.f32 %v1080_v19, 0.0  ;;  %v1081_v16 = vadd.f32 %v5561_v53, %v1042_v54  ;;  %v851_v9 = vrot.slane %v589_v10, 1  ;;  %v591_v7 = vpop.f32.mrb[46].mxu0 }
 0x16d   : > { %v1465_v25 = vpop.f32.mrb[46].mxu1  ;;  %v1250_v34 = vmax.f32 %v1248_v28, %v1249_v30  ;;  %v1255_v39 = vmax.f32 %v1253_v27, %v1254_v36  ;;  %v1821_v38 = vrot.slane %v1463_v11, 1  ;;  %v593_v55 = vpop.f32.mrb[47].mxu0 }
 0x16e   : > { %v1467_v17 = vpop.f32.mrb[47].mxu1  ;;  %v1261_v41 = vrot.slane %v1260_v12, 2  ;;  %v1265_v32 = vsel %vm1124_vm1, %v1112_v44, -inf  ;;  %v1113_v47 = vmax.f32 %v1081_v16, 0.0  ;;  %v915_v15 = vadd.f32 %v851_v9, %v587_v21 }
 0x16f   : > { %v1256_v50 = vrot.slane %v1255_v39, 1  ;;  %v1266_v5 = vrot.slane %v1265_v32, 4  ;;  %v5790_v51 = vadd.f32 %v1821_v38, %v1461_v26  ;;  %v852_v13 = vrot.slane %v593_v55, 1  ;;  %4653 = vmatmul.mubr.msk.bf16.gmra.mrb[152].mxu0 %vm394_vm0, %v5798_v20 }
 0x170   : > { %4645 = vmatmul.mubr.msk.bf16.gmra.mrb[152].mxu1 %vm394_vm0, %v5793_v4  ;;  %v1262_v57 = vmax.f32 %v1260_v12, %v1261_v41  ;;  %v1272_v59 = vsel %vm1124_vm1, %v1113_v47, -inf  ;;  %v1043_v28 = vadd.f32 %v979_v31, %v915_v15  ;;  %v1822_v27 = vrot.slane %v1467_v17, 1  ;;  %2822 = vmatprep.mubr.bf16.mxu0 %v5139_v0 }
 0x171   : > { %2709 = vmatprep.mubr.bf16.mxu1 %v5139_v0  ;;  %v1257_v29 = vmax.f32 %v1255_v39, %v1256_v50  ;;  %v1267_v63 = vmax.f32 %v1265_v32, %v1266_v5  ;;  %v1273_v19 = vrot.slane %v1272_v59, 4  ;;  %v916_v54 = vadd.f32 %v852_v13, %v591_v7 }
 0x172   : > { %v1263_v21 = vrot.slane %v1262_v57, 1  ;;  %v1082_v26 = vadd.f32 %v5561_v53, %v1043_v28  ;;  %v5808_v30 = vadd.f32 %v1822_v27, %v1465_v25  ;;  %v597_v36 = vpop.f32.mrb[48].mxu0  ;;  %v3935_v11 = vsel %vm3914_vm2, %v1250_v34, %v1243_v48 }
 0x173   : > { %v1471_v10 = vpop.f32.mrb[48].mxu1  ;;  %v1268_v45 = vrot.slane %v1267_v63, 2  ;;  %v1274_v31 = vmax.f32 %v1272_v59, %v1273_v19  ;;  %v1044_v12 = vadd.f32 %v980_v3, %v916_v54  ;;  %v599_v44 = vpop.f32.mrb[49].mxu0  ;;  %v3936_v9 = vsel %vm3916_vm3, %v1257_v29, %v3935_v11  ;;  %v5818_v29 = vld [vmem:[%s5270_s15 + $0x78] sm:$0xff]   ;;  %v5031_v54 = vld [vmem:[%s5270_s15] sm:$0xff]  }
 0x174   : > { %v1473_v16 = vpop.f32.mrb[49].mxu1  ;;  %v1264_v39 = vmax.f32 %v1262_v57, %v1263_v21  ;;  %v1114_v38 = vmax.f32 %v1082_v26, 0.0  ;;  %v853_v55 = vrot.slane %v599_v44, 1  ;;  %v601_v17 = vpop.f32.mrb[50].mxu0  ;;  %v982_v25 = vrot.slane %v5675_v46, 2  ;;  %v5823_v46 = vld [vmem:[%s5270_s15 + $0x38] sm:$0xff]  }
 0x175   : > { %v1823_v7 = vrot.slane %v1473_v16, 1  ;;  %v1475_v41 = vpop.f32.mrb[50].mxu1  ;;  %v1269_v32 = vmax.f32 %v1267_v63, %v1268_v45  ;;  %v1275_v47 = vrot.slane %v1274_v31, 2  ;;  %v1083_v48 = vadd.f32 %v5561_v53, %v1044_v12  ;;  %v603_v34 = vpop.f32.mrb[51].mxu0 }
 0x176   : > { %v1477_v3 = vpop.f32.mrb[51].mxu1  ;;  %v1279_v15 = vsel %vm1124_vm1, %v1114_v38, -inf  ;;  %v917_v50 = vadd.f32 %v853_v55, %v597_v36  ;;  %v854_v13 = vrot.slane %v603_v34, 1  ;;  %v3937_v21 = vsel %vm3918_vm4, %v1264_v39, %v3936_v9 }
 0x177   : > { %v5815_v5 = vadd.f32 %v1823_v7, %v1471_v10  ;;  %v1270_v57 = vrot.slane %v1269_v32, 1  ;;  %v1276_v59 = vmax.f32 %v1274_v31, %v1275_v47  ;;  %v1280_v28 = vrot.slane %v1279_v15, 4  ;;  %4654 = vmatmul.mubr.msk.bf16.gmra.mrb[156].mxu0 %vm394_vm0, %v5823_v46 }
 0x178   : > { %v1115_v27 = vmax.f32 %v1083_v48, 0.0  ;;  %4646 = vmatmul.mubr.msk.bf16.gmra.mrb[156].mxu1 %vm394_vm0, %v5818_v29  ;;  %v1045_v53 = vadd.f32 %v981_v8, %v917_v50  ;;  %v918_v63 = vadd.f32 %v854_v13, %v601_v17  ;;  %v1824_v19 = vrot.slane %v1477_v3, 1  ;;  %2832 = vmatprep.mubr.bf16.mxu0 %v5139_v0 }
 0x179   : > { %4825 = vmatprep.mubr.msk.bf16.mxu1 %vm394_vm0, %v5031_v54  ;;  %v1271_v26 = vmax.f32 %v1269_v32, %v1270_v57  ;;  %v1277_v36 = vrot.slane %v1276_v59, 1  ;;  %v1281_v10 = vmax.f32 %v1279_v15, %v1280_v28  ;;  %v983_v9 = vrot.slane %v5667_v23, 2 }
 0x17a   : > { %v1286_v11 = vsel %vm1124_vm1, %v1115_v27, -inf  ;;  %v1084_v8 = vadd.f32 %v5837_v35, %v1045_v53  ;;  %v1046_v31 = vadd.f32 %v982_v25, %v918_v63  ;;  %v5840_v12 = vadd.f32 %v1824_v19, %v1475_v41  ;;  %v607_v44 = vpop.f32.mrb[52].mxu0 }
 0x17b   : > { %v1287_v45 = vrot.slane %v1286_v11, 4  ;;  %v1481_v16 = vpop.f32.mrb[52].mxu1  ;;  %v1282_v39 = vrot.slane %v1281_v10, 2  ;;  %v609_v38 = vpop.f32.mrb[53].mxu0  ;;  %v1278_v7 = vmax.f32 %v1276_v59, %v1277_v36  ;;  %v3938_v17 = vsel %vm3920_vm5, %v1271_v26, %v3937_v21  ;;  %v5851_v26 = vld [vmem:[%s5270_s15 + $0x40] sm:$0xff]  }
 0x17c   : > { %v1483_v55 = vpop.f32.mrb[53].mxu1  ;;  %v1116_v47 = vmax.f32 %v1084_v8, 0.0  ;;  %v1085_v48 = vadd.f32 %v5837_v35, %v1046_v31  ;;  %v855_v34 = vrot.slane %v609_v38, 1  ;;  %v611_v3 = vpop.f32.mrb[54].mxu0  ;;  %v984_v41 = vrot.slane %v5672_v42, 2  ;;  %v5034_v42 = vld [vmem:[%s5270_s15 + $0x8] sm:$0xff]  }
 0x17d   : > { %v1288_v32 = vmax.f32 %v1286_v11, %v1287_v45  ;;  %v1485_v25 = vpop.f32.mrb[54].mxu1  ;;  %v1283_v15 = vmax.f32 %v1281_v10, %v1282_v39  ;;  %v1825_v50 = vrot.slane %v1483_v55, 1  ;;  %v613_v23 = vpop.f32.mrb[55].mxu0  ;;  %v3939_v57 = vsel %vm3922_vm6, %v1278_v7, %v3938_v17 }
 0x17e   : > { %v1487_v13 = vpop.f32.mrb[55].mxu1  ;;  %v1293_v28 = vsel %vm1124_vm1, %v1116_v47, -inf  ;;  %v1117_v27 = vmax.f32 %v1085_v48, 0.0  ;;  %v919_v53 = vadd.f32 %v855_v34, %v607_v44  ;;  %v856_v54 = vrot.slane %v613_v23, 1 }
 0x17f   : > { %v1289_v59 = vrot.slane %v1288_v32, 2  ;;  %v1294_v63 = vrot.slane %v1293_v28, 4  ;;  %v5848_v19 = vadd.f32 %v1825_v50, %v1481_v16  ;;  %v1826_v21 = vrot.slane %v1487_v13, 1  ;;  %4655 = vmatmul.mubr.msk.bf16.gmra.mrb[160].mxu0 %vm394_vm0, %v5851_v26 }
 0x180   : > { %4826 = vmatmul.mubr.msk.bf16.vlgmr.msra.gmra.mrb[160].mxu1 %vm394_vm0, %v5034_v42  ;;  %v1300_v36 = vsel %vm1124_vm1, %v1117_v27, -inf  ;;  %v1047_v10 = vadd.f32 %v983_v9, %v919_v53  ;;  %2842 = vmatprep.mubr.bf16.mxu0 %v5139_v0  ;;  %v1284_v11 = vrot.slane %v1283_v15, 1  ;;  %v920_v44 = vadd.f32 %v856_v54, %v611_v3 }
 0x181   : > { %4829 = vmatprep.mubr.msk.bf16.mxu1 %vm394_vm0, %v5706_v43  ;;  %v1290_v45 = vmax.f32 %v1288_v32, %v1289_v59  ;;  %v1295_v8 = vmax.f32 %v1293_v28, %v1294_v63  ;;  %v1301_v31 = vrot.slane %v1300_v36, 4  ;;  %v5861_v16 = vadd.f32 %v1826_v21, %v1485_v25 }
 0x182   : > { %v985_v39 = vrot.slane %v5693_v14, 2  ;;  %v1086_v38 = vadd.f32 %v5837_v35, %v1047_v10  ;;  %v617_v55 = vpop.f32.mrb[56].mxu0  ;;  %v1285_v17 = vmax.f32 %v1283_v15, %v1284_v11  ;;  %v986_v47 = vrot.slane %v5699_v40, 2 }
 0x183   : > { %v1491_v7 = vpop.f32.mrb[56].mxu1  ;;  %v1291_v9 = vrot.slane %v1290_v45, 1  ;;  %v1296_v48 = vrot.slane %v1295_v8, 2  ;;  %v1302_v34 = vmax.f32 %v1300_v36, %v1301_v31  ;;  %v1048_v43 = vadd.f32 %v984_v41, %v920_v44  ;;  %v619_v50 = vpop.f32.mrb[57].mxu0  ;;  %v5872_v44 = vld [vmem:[%s5270_s15 + $0x48] sm:$0xff]  }
 0x184   : > { %v1493_v32 = vpop.f32.mrb[57].mxu1  ;;  %v1118_v23 = vmax.f32 %v1086_v38, 0.0  ;;  %v857_v13 = vrot.slane %v619_v50, 1  ;;  %v621_v25 = vpop.f32.mrb[58].mxu0  ;;  %v3940_v40 = vsel %vm3924_vm7, %v1285_v17, %v3939_v57 }
 0x185   : > { %v1827_v3 = vrot.slane %v1493_v32, 1  ;;  %v1495_v59 = vpop.f32.mrb[58].mxu1  ;;  %v1292_v14 = vmax.f32 %v1290_v45, %v1291_v9  ;;  %v1297_v28 = vmax.f32 %v1295_v8, %v1296_v48  ;;  %v1303_v27 = vrot.slane %v1302_v34, 2  ;;  %v623_v15 = vpop.f32.mrb[59].mxu0 }
 0x186   : > { %v1087_v53 = vadd.f32 %v5837_v35, %v1048_v43  ;;  %v1497_v63 = vpop.f32.mrb[59].mxu1  ;;  %v1307_v54 = vsel %vm1124_vm1, %v1118_v23, -inf  ;;  %v921_v41 = vadd.f32 %v857_v13, %v617_v55  ;;  %v858_v42 = vrot.slane %v623_v15, 1 }
 0x187   : > { %v5869_v21 = vadd.f32 %v1827_v3, %v1491_v7  ;;  %v1298_v36 = vrot.slane %v1297_v28, 1  ;;  %v1304_v10 = vmax.f32 %v1302_v34, %v1303_v27  ;;  %v1308_v11 = vrot.slane %v1307_v54, 4  ;;  %4656 = vmatmul.mubr.msk.bf16.gmra.mrb[164].mxu0 %vm394_vm0, %v5872_v44 }
 0x188   : > { %v1119_v31 = vmax.f32 %v1087_v53, 0.0  ;;  %4830 = vmatmul.mubr.msk.bf16.gmra.mrb[164].mxu1 %vm394_vm0, %v5725_v52  ;;  %v1049_v45 = vadd.f32 %v985_v39, %v921_v41  ;;  %v922_v57 = vadd.f32 %v858_v42, %v621_v25  ;;  %v1828_v8 = vrot.slane %v1497_v63, 1  ;;  %2852 = vmatprep.mubr.bf16.mxu0 %v5139_v0 }
 0x189   : > { %4833 = vmatprep.mubr.msk.bf16.mxu1 %vm394_vm0, %v5747_v62  ;;  %v5882_v38 = vsel %vm3926_vm8, %v1292_v14, %v3940_v40  ;;  %v1305_v55 = vrot.slane %v1304_v10, 1  ;;  %v1309_v7 = vmax.f32 %v1307_v54, %v1308_v11  ;;  %v1299_v50 = vmax.f32 %v1297_v28, %v1298_v36 }
 0x18a   : > { %v1314_v17 = vsel %vm1124_vm1, %v1119_v31, -inf  ;;  %v1088_v48 = vadd.f32 %v5837_v35, %v1049_v45  ;;  %v1050_v34 = vadd.f32 %v986_v47, %v922_v57  ;;  %v5886_v52 = vadd.f32 %v1828_v8, %v1495_v59  ;;  %v627_v39 = vpop.f32.mrb[60].mxu0  ;;  %v5897_v8 = vld [vmem:[%s5270_s15 + $0x50] sm:$0xff]  }
 0x18b   : > { %v1315_v9 = vrot.slane %v1314_v17, 4  ;;  %v1501_v43 = vpop.f32.mrb[60].mxu1  ;;  %v1306_v32 = vmax.f32 %v1304_v10, %v1305_v55  ;;  %v1310_v23 = vrot.slane %v1309_v7, 2  ;;  %v629_v13 = vpop.f32.mrb[61].mxu0  ;;  %v987_v63 = vrot.slane %v5691_v18, 2 }
 0x18c   : > { %v1503_v62 = vpop.f32.mrb[61].mxu1  ;;  %v1120_v25 = vmax.f32 %v1088_v48, 0.0  ;;  %v1089_v14 = vadd.f32 %v5837_v35, %v1050_v34  ;;  %v859_v27 = vrot.slane %v629_v13, 1  ;;  %v631_v53 = vpop.f32.mrb[62].mxu0 }
 0x18d   : > { %v1316_v3 = vmax.f32 %v1314_v17, %v1315_v9  ;;  %v1505_v15 = vpop.f32.mrb[62].mxu1  ;;  %v1311_v47 = vmax.f32 %v1309_v7, %v1310_v23  ;;  %v1829_v59 = vrot.slane %v1503_v62, 1  ;;  %v633_v40 = vpop.f32.mrb[63].mxu0  ;;  %v5891_v28 = vsel %vm3914_vm2, %v1306_v32, %v1299_v50 }
 0x18e   : > { %v1507_v54 = vpop.f32.mrb[63].mxu1  ;;  %v1321_v42 = vsel %vm1124_vm1, %v1120_v25, -inf  ;;  %v1121_v36 = vmax.f32 %v1089_v14, 0.0  ;;  %v923_v10 = vadd.f32 %v859_v27, %v627_v39  ;;  %v860_v57 = vrot.slane %v633_v40, 1 }
 0x18f   : > { %v1317_v41 = vrot.slane %v1316_v3, 2  ;;  %v1312_v11 = vrot.slane %v1311_v47, 1  ;;  %v1322_v31 = vrot.slane %v1321_v42, 4  ;;  %v5894_v45 = vadd.f32 %v1829_v59, %v1501_v43  ;;  %4657 = vmatmul.mubr.msk.bf16.gmra.mrb[168].mxu0 %vm394_vm0, %v5897_v8 }
 0x190   : > { %4834 = vmatmul.mubr.msk.bf16.gmra.mrb[168].mxu1 %vm394_vm0, %v5774_v56  ;;  %v1328_v55 = vsel %vm1124_vm1, %v1121_v36, -inf  ;;  %v1051_v7 = vadd.f32 %v987_v63, %v923_v10  ;;  %v1830_v17 = vrot.slane %v1507_v54, 1  ;;  %2862 = vmatprep.mubr.bf16.mxu0 %v5139_v0  ;;  %v988_v9 = vrot.slane %v5697_v22, 2 }
 0x191   : > { %v1318_v18 = vmax.f32 %v1316_v3, %v1317_v41  ;;  %4837 = vmatprep.mubr.msk.bf16.mxu1 %vm394_vm0, %v5798_v20  ;;  %v1323_v48 = vmax.f32 %v1321_v42, %v1322_v31  ;;  %v1329_v34 = vrot.slane %v1328_v55, 4  ;;  %v924_v39 = vadd.f32 %v860_v57, %v631_v53 }
 0x192   : > { %v1313_v43 = vmax.f32 %v1311_v47, %v1312_v11  ;;  %v1090_v32 = vadd.f32 %v5837_v35, %v1051_v7  ;;  %v5909_v56 = vadd.f32 %v1830_v17, %v1505_v15  ;;  %v1624_v13 = vpop.f32.mrb[64].mxu0 }
 0x193   : > { %v1319_v50 = vrot.slane %v1318_v18, 1  ;;  %v1511_v23 = vpop.f32.mrb[64].mxu1  ;;  %v1324_v62 = vrot.slane %v1323_v48, 2  ;;  %v1330_v3 = vmax.f32 %v1328_v55, %v1329_v34  ;;  %v1052_v25 = vadd.f32 %v988_v9, %v924_v39  ;;  %v1626_v63 = vpop.f32.mrb[65].mxu0 }
 0x194   : > { %v1943_v14 = vrot.slane %v1624_v13, 2  ;;  %v1513_v27 = vpop.f32.mrb[65].mxu1  ;;  %v1122_v22 = vmax.f32 %v1090_v32, 0.0  ;;  %v2071_v40 = vrot.slane %v1626_v63, 3  ;;  %v1628_v47 = vpop.f32.mrb[66].mxu0 }
 0x195   : > { %v1320_v20 = vmax.f32 %v1318_v18, %v1319_v50  ;;  %v1831_v59 = vrot.slane %v1513_v27, 1  ;;  %v1515_v53 = vpop.f32.mrb[66].mxu1  ;;  %v1325_v54 = vmax.f32 %v1323_v48, %v1324_v62  ;;  %v1331_v41 = vrot.slane %v1330_v3, 2  ;;  %v1630_v10 = vpop.f32.mrb[67].mxu0  ;;  %v5919_v48 = vld [vmem:[%s6661_s2 + $0x1] ss:$0 sm:$0xff] }
 0x196   : > { %v1091_v15 = vadd.f32 %v5837_v35, %v1052_v25  ;;  %v2007_v42 = vadd.f32 %v1943_v14, %v5720_v60  ;;  %v1517_v36 = vpop.f32.mrb[67].mxu1  ;;  %v1335_v11 = vsel %vm1124_vm1, %v1122_v22, -inf  ;;  %v1944_v57 = vrot.slane %v1628_v47, 2  ;;  %v5922_v35 = vld [vmem:[%s5270_s15 + $0x58] sm:$0xff]  }
 0x197   : > { %v5914_v31 = vadd.f32 %v1831_v59, %v1511_v23  ;;  %v1832_v18 = vrot.slane %v1517_v36, 1  ;;  %v1326_v55 = vrot.slane %v1325_v54, 1  ;;  %v1332_v7 = vmax.f32 %v1330_v3, %v1331_v41  ;;  %4658 = vmatmul.mubr.msk.bf16.gmra.mrb[172].mxu0 %vm394_vm0, %v5922_v35 }
 0x198   : > { %v1336_v17 = vrot.slane %v1335_v11, 4  ;;  %v1123_v9 = vmax.f32 %v1091_v15, 0.0  ;;  %4838 = vmatmul.mubr.msk.bf16.gmra.mrb[172].mxu1 %vm394_vm0, %v5823_v46  ;;  %v2135_v60 = vadd.f32 %v2071_v40, %v2007_v42  ;;  %v2008_v34 = vadd.f32 %v1944_v57, %v5735_v1  ;;  %2872 = vmatprep.mubr.bf16.mxu0 %v5139_v0 }
 0x199   : > { %v5929_v39 = vadd.f32 %v1832_v18, %v1515_v53  ;;  %v2072_v50 = vrot.slane %v1630_v10, 3  ;;  %4841 = vmatprep.mubr.msk.bf16.mxu1 %vm394_vm0, %v5851_v26  ;;  %v1327_v32 = vmax.f32 %v1325_v54, %v1326_v55  ;;  %v1333_v23 = vrot.slane %v1332_v7, 1 }
 0x19a   : > { %v1337_v13 = vmax.f32 %v1335_v11, %v1336_v17  ;;  %v1342_v62 = vsel %vm1124_vm1, %v1123_v9, -inf  ;;  %v2174_v25 = vadd.f32 %v5919_v48, %v2135_v60  ;;  %v1634_v27 = vpop.f32.mrb[68].mxu0  ;;  %v3943_v1 = vsel %vm3916_vm3, %v1313_v43, %v5891_v28 }
 0x19b   : > { %v1343_v3 = vrot.slane %v1342_v62, 4  ;;  %v2136_v46 = vadd.f32 %v2072_v50, %v2008_v34  ;;  %v1521_v14 = vpop.f32.mrb[68].mxu1  ;;  %v1945_v22 = vrot.slane %v1634_v27, 2  ;;  %v1636_v40 = vpop.f32.mrb[69].mxu0  ;;  %v5938_v53 = vmax.f32 %v1332_v7, %v1333_v23  ;;  %v5038_v23 = vld [vmem:[%s5270_s15 + $0x60] sm:$0xff]   ;;  %s5072_s15 = sshll.u32 %s5140_s22, 4  ;;  %s5073_s15 = int_to_ptr.vmem [resolvable:$false] %s5072_s15 }
 0x19c   : > { %v1338_v63 = vrot.slane %v1337_v13, 2  ;;  %v1523_v59 = vpop.f32.mrb[69].mxu1  ;;  %v3944_v26 = vsel %vm3918_vm4, %v1320_v20, %v3943_v1  ;;  %v2206_v54 = vmax.f32 %v2174_v25, 0.0  ;;  %v1638_v36 = vpop.f32.mrb[70].mxu0  ;;  %v2073_v28 = vrot.slane %v1636_v40, 3  ;;  %s5074_s25 = scalar_lea.vmem %s5073_s15, 1024  ;;  %p5075_p2 = scmp.lt.s32.totalorder %s6611_s11, %s5073_s15 }
 0x19d   : > { %v1344_v47 = vmax.f32 %v1342_v62, %v1343_v3  ;;  %v2175_v41 = vadd.f32 %v5919_v48, %v2136_v46  ;;  %v1833_v15 = vrot.slane %v1523_v59, 1  ;;  %v1525_v42 = vpop.f32.mrb[70].mxu1  ;;  %v2009_v11 = vadd.f32 %v1945_v22, %v5742_v24  ;;  %v1640_v18 = vpop.f32.mrb[71].mxu0  ;;  %p5076_p3 = scmp.lt.s32.totalorder %s5074_s25, %s5068_s23 }
 0x19e   : > { %v1339_v10 = vmax.f32 %v1337_v13, %v1338_v63  ;;  %v1946_v43 = vrot.slane %v1638_v36, 2  ;;  %v1527_v57 = vpop.f32.mrb[71].mxu1  ;;  %v2239_v7 = vsel %vm2238_vm9, %v2206_v54, -inf  ;;  %v2074_v13 = vrot.slane %v1640_v18, 3 }
 0x19f   : > { %v1345_v55 = vrot.slane %v1344_v47, 2  ;;  %v2207_v17 = vmax.f32 %v2175_v41, 0.0  ;;  %v5944_v20 = vadd.f32 %v1833_v15, %v1521_v14  ;;  %v2240_v9 = vrot.slane %v2239_v7, 4  ;;  %4659 = vmatmul.mubr.msk.bf16.gmra.mrb[176].mxu0 %vm394_vm0, %v5038_v23  ;;  %p5077_p4 = por %p5076_p3, %p5075_p2 }
 0x1a0   : > { %v2137_v60 = vadd.f32 %v2073_v28, %v2009_v11  ;;  %v2010_v34 = vadd.f32 %v1946_v43, %v5757_v2  ;;  %v1834_v50 = vrot.slane %v1527_v57, 1  ;;  %4842 = vmatmul.mubr.msk.bf16.gmra.mrb[176].mxu1 %vm394_vm0, %v5872_v44  ;;  %2882 = vmatprep.mubr.bf16.mxu0 %v5139_v0  ;;  %v1340_v62 = vrot.slane %v1339_v10, 1 }
 0x1a1   : > { %v2246_v24 = vsel %vm2238_vm9, %v2207_v17, -inf  ;;  %4845 = vmatprep.mubr.msk.bf16.mxu1 %vm394_vm0, %v5897_v8  ;;  %v1346_v3 = vmax.f32 %v1344_v47, %v1345_v55  ;;  %v2241_v25 = vmax.f32 %v2239_v7, %v2240_v9  ;;  %v3945_v59 = vsel %vm3920_vm5, %v1327_v32, %v3944_v26  ;;  %p5078_p7 = pnand %p5077_p4, %p5071_p12 }
 0x1a2   : > { %v2247_v46 = vrot.slane %v2246_v24, 4  ;;  %v2176_v2 = vadd.f32 %v5919_v48, %v2137_v60  ;;  %v5956_v14 = vadd.f32 %v1834_v50, %v1525_v42  ;;  %v2138_v27 = vadd.f32 %v2074_v13, %v2010_v34  ;;  %v1644_v63 = vpop.f32.mrb[72].mxu0 }
 0x1a3   : > { %v1531_v1 = vpop.f32.mrb[72].mxu1  ;;  %v5958_v44 = vmax.f32 %v1339_v10, %v1340_v62  ;;  %v1347_v22 = vrot.slane %v1346_v3, 1  ;;  %v2242_v40 = vrot.slane %v2241_v25, 2  ;;  %v1947_v8 = vrot.slane %v1644_v63, 2  ;;  %v1646_v47 = vpop.f32.mrb[73].mxu0 }
 0x1a4   : > { %v2248_v54 = vmax.f32 %v2246_v24, %v2247_v46  ;;  %v2208_v41 = vmax.f32 %v2176_v2, 0.0  ;;  %v1533_v15 = vpop.f32.mrb[73].mxu1  ;;  %v2177_v36 = vadd.f32 %v5919_v48, %v2138_v27  ;;  %v2075_v28 = vrot.slane %v1646_v47, 3  ;;  %v1648_v43 = vpop.f32.mrb[74].mxu0 }
 0x1a5   : > { %v1835_v11 = vrot.slane %v1533_v15, 1  ;;  %v1535_v42 = vpop.f32.mrb[74].mxu1  ;;  %v5962_v57 = vmax.f32 %v1346_v3, %v1347_v22  ;;  %v2243_v18 = vmax.f32 %v2241_v25, %v2242_v40  ;;  %v2011_v32 = vadd.f32 %v1947_v8, %v5765_v6  ;;  %v1650_v7 = vpop.f32.mrb[75].mxu0 }
 0x1a6   : > { %v2249_v10 = vrot.slane %v2248_v54, 2  ;;  %v2253_v55 = vsel %vm2238_vm9, %v2208_v41, -inf  ;;  %v1537_v26 = vpop.f32.mrb[75].mxu1  ;;  %v2209_v9 = vmax.f32 %v2177_v36, 0.0  ;;  %v1948_v34 = vrot.slane %v1648_v43, 2 }
 0x1a7   : > { %v2254_v17 = vrot.slane %v2253_v55, 4  ;;  %v5966_v60 = vadd.f32 %v1835_v11, %v1531_v1  ;;  %v2244_v50 = vrot.slane %v2243_v18, 1  ;;  %v2139_v13 = vadd.f32 %v2075_v28, %v2011_v32  ;;  %4660 = vmatmul.mubr.msk.bf16.gmra.mrb[180].mxu0 %vm394_vm0, %v5769_v49 }
 0x1a8   : > { %v2250_v24 = vmax.f32 %v2248_v54, %v2249_v10  ;;  %v1836_v62 = vrot.slane %v1537_v26, 1  ;;  %4846 = vmatmul.mubr.msk.bf16.gmra.mrb[180].mxu1 %vm394_vm0, %v5922_v35  ;;  %v2260_v6 = vsel %vm2238_vm9, %v2209_v9, -inf  ;;  %v2012_v25 = vadd.f32 %v1948_v34, %v5784_v37  ;;  %2892 = vmatprep.mubr.bf16.mxu0 %v5139_v0 }
 0x1a9   : > { %v2255_v3 = vmax.f32 %v2253_v55, %v2254_v17  ;;  %v2076_v46 = vrot.slane %v1650_v7, 3  ;;  %4849 = vmatprep.mubr.msk.bf16.mxu1 %vm394_vm0, %v5038_v23  ;;  %v2245_v2 = vmax.f32 %v2243_v18, %v2244_v50  ;;  %v2261_v1 = vrot.slane %v2260_v6, 4 }
 0x1aa   : > { %v2251_v27 = vrot.slane %v2250_v24, 1  ;;  %v2178_v63 = vadd.f32 %v5919_v48, %v2139_v13  ;;  %v5977_v40 = vadd.f32 %v1836_v62, %v1535_v42  ;;  %v1654_v41 = vpop.f32.mrb[76].mxu0  ;;  %v3946_v8 = vsel %vm3922_vm6, %v5938_v53, %v3945_v59 }
 0x1ab   : > { %v2256_v22 = vrot.slane %v2255_v3, 2  ;;  %v2140_v54 = vadd.f32 %v2076_v46, %v2012_v25  ;;  %v1541_v35 = vpop.f32.mrb[76].mxu1  ;;  %v2262_v15 = vmax.f32 %v2260_v6, %v2261_v1  ;;  %v1949_v36 = vrot.slane %v1654_v41, 2  ;;  %v1656_v23 = vpop.f32.mrb[77].mxu0 }
 0x1ac   : > { %v2252_v37 = vmax.f32 %v2250_v24, %v2251_v27  ;;  %v2210_v47 = vmax.f32 %v2178_v63, 0.0  ;;  %v1543_v11 = vpop.f32.mrb[77].mxu1  ;;  %v2077_v10 = vrot.slane %v1656_v23, 3  ;;  %v1658_v42 = vpop.f32.mrb[78].mxu0 }
 0x1ad   : > { %v2257_v28 = vmax.f32 %v2255_v3, %v2256_v22  ;;  %v2179_v43 = vadd.f32 %v5919_v48, %v2140_v54  ;;  %v1837_v18 = vrot.slane %v1543_v11, 1  ;;  %v1545_v55 = vpop.f32.mrb[78].mxu1  ;;  %v2263_v26 = vrot.slane %v2262_v15, 2  ;;  %v1660_v17 = vpop.f32.mrb[79].mxu0 }
 0x1ae   : > { %v3985_v32 = vsel %vm3914_vm2, %v2252_v37, %v2245_v2  ;;  %v2267_v7 = vsel %vm2238_vm9, %v2210_v47, -inf  ;;  %v2013_v53 = vadd.f32 %v1949_v36, %v5790_v51  ;;  %v1547_v59 = vpop.f32.mrb[79].mxu1  ;;  %v1950_v3 = vrot.slane %v1658_v42, 2 }
 0x1af   : > { %v2258_v9 = vrot.slane %v2257_v28, 1  ;;  %v2268_v34 = vrot.slane %v2267_v7, 4  ;;  %v2211_v50 = vmax.f32 %v2179_v43, 0.0  ;;  %v5985_v24 = vadd.f32 %v1837_v18, %v1541_v35  ;;  %4661 = vmatmul.mubr.msk.bf16.gmra.mrb[184].mxu0 %vm394_vm0, %v5793_v4 }
 0x1b0   : > { %v2264_v13 = vmax.f32 %v2262_v15, %v2263_v26  ;;  %v2141_v62 = vadd.f32 %v2077_v10, %v2013_v53  ;;  %v1838_v6 = vrot.slane %v1547_v59, 1  ;;  %4850 = vmatmul.mubr.msk.bf16.gmra.mrb[184].mxu1 %vm394_vm0, %v5769_v49  ;;  %v2078_v2 = vrot.slane %v1660_v17, 3  ;;  %2902 = vmatprep.mubr.bf16.mxu0 %v5139_v0 }
 0x1b1   : > { %v2259_v25 = vmax.f32 %v2257_v28, %v2258_v9  ;;  %v2269_v46 = vmax.f32 %v2267_v7, %v2268_v34  ;;  %v2274_v51 = vsel %vm2238_vm9, %v2211_v50, -inf  ;;  %4853 = vmatprep.mubr.msk.bf16.mxu1 %vm394_vm0, %v5793_v4  ;;  %v2014_v22 = vadd.f32 %v1950_v3, %v5808_v30 }
 0x1b2   : > { %v2265_v27 = vrot.slane %v2264_v13, 1  ;;  %v2275_v1 = vrot.slane %v2274_v51, 4  ;;  %v2180_v63 = vadd.f32 %v5919_v48, %v2141_v62  ;;  %v5997_v35 = vadd.f32 %v1838_v6, %v1545_v55  ;;  %v1664_v41 = vpop.f32.mrb[80].mxu0 }
 0x1b3   : > { %v2270_v54 = vrot.slane %v2269_v46, 2  ;;  %v1551_v49 = vpop.f32.mrb[80].mxu1  ;;  %v3986_v37 = vsel %vm3916_vm3, %v2259_v25, %v3985_v32  ;;  %v3947_v15 = vsel %vm3924_vm7, %v5958_v44, %v3946_v8  ;;  %v2142_v4 = vadd.f32 %v2078_v2, %v2014_v22  ;;  %v1666_v23 = vpop.f32.mrb[81].mxu0 }
 0x1b4   : > { %v2266_v0 = vmax.f32 %v2264_v13, %v2265_v27  ;;  %v2276_v47 = vmax.f32 %v2274_v51, %v2275_v1  ;;  %v2212_v36 = vmax.f32 %v2180_v63, 0.0  ;;  %v1553_v11 = vpop.f32.mrb[81].mxu1  ;;  %v1951_v43 = vrot.slane %v1664_v41, 2  ;;  %v1668_v55 = vpop.f32.mrb[82].mxu0 }
 0x1b5   : > { %v2271_v28 = vmax.f32 %v2269_v46, %v2270_v54  ;;  %v1839_v18 = vrot.slane %v1553_v11, 1  ;;  %v2079_v30 = vrot.slane %v1666_v23, 3  ;;  %v1555_v10 = vpop.f32.mrb[82].mxu1  ;;  %v2181_v32 = vadd.f32 %v5919_v48, %v2142_v4  ;;  %v1670_v44 = vpop.f32.mrb[83].mxu0 }
 0x1b6   : > { %v2277_v42 = vrot.slane %v2276_v47, 2  ;;  %v2281_v26 = vsel %vm2238_vm9, %v2212_v36, -inf  ;;  %v1952_v7 = vrot.slane %v1668_v55, 2  ;;  %v1557_v53 = vpop.f32.mrb[83].mxu1  ;;  %v2015_v17 = vadd.f32 %v1951_v43, %v5815_v5 }
 0x1b7   : > { %v2272_v8 = vrot.slane %v2271_v28, 1  ;;  %v2282_v59 = vrot.slane %v2281_v26, 4  ;;  %v6005_v9 = vadd.f32 %v1839_v18, %v1551_v49  ;;  %v2213_v50 = vmax.f32 %v2181_v32, 0.0  ;;  %4662 = vmatmul.mubr.msk.bf16.gmra.mrb[188].mxu0 %vm394_vm0, %v5818_v29 }
 0x1b8   : > { %v2278_v34 = vmax.f32 %v2276_v47, %v2277_v42  ;;  %v2016_v13 = vadd.f32 %v1952_v7, %v5840_v12  ;;  %v1840_v62 = vrot.slane %v1557_v53, 1  ;;  %4854 = vmatmul.mubr.msk.bf16.gmra.mrb[188].mxu1 %vm394_vm0, %v5818_v29  ;;  %v2143_v25 = vadd.f32 %v2079_v30, %v2015_v17 }
 0x1b9   : > { %v2273_v3 = vmax.f32 %v2271_v28, %v2272_v8  ;;  %v2283_v6 = vmax.f32 %v2281_v26, %v2282_v59  ;;  %v2080_v46 = vrot.slane %v1670_v44, 3  ;;  %v2288_v5 = vsel %vm2238_vm9, %v2213_v50, -inf }
 0x1ba   : > { %v2279_v51 = vrot.slane %v2278_v34, 1  ;;  %v6013_v2 = vadd.f32 %v1840_v62, %v1555_v10  ;;  %v3987_v27 = vsel %vm3918_vm4, %v2266_v0, %v3986_v37  ;;  %v2289_v12 = vrot.slane %v2288_v5, 4  ;;  %v1674_v49 = vpop.f32.mrb[84].mxu0 }
 0x1bb   : > { %v2284_v1 = vrot.slane %v2283_v6, 2  ;;  %v2182_v63 = vadd.f32 %v5919_v48, %v2143_v25  ;;  %v2144_v22 = vadd.f32 %v2080_v46, %v2016_v13  ;;  %v1561_v54 = vpop.f32.mrb[84].mxu1  ;;  %v1953_v29 = vrot.slane %v1674_v49, 2  ;;  %v1676_v36 = vpop.f32.mrb[85].mxu0 }
 0x1bc   : > { %v2280_v41 = vmax.f32 %v2278_v34, %v2279_v51  ;;  %v1563_v47 = vpop.f32.mrb[85].mxu1  ;;  %v3988_v4 = vsel %vm3920_vm5, %v2273_v3, %v3987_v27  ;;  %v6020_v11 = vsel %vm3926_vm8, %v5962_v57, %v3947_v15  ;;  %v2290_v28 = vmax.f32 %v2288_v5, %v2289_v12  ;;  %v1678_v18 = vpop.f32.mrb[86].mxu0 }
 0x1bd   : > { %v2285_v23 = vmax.f32 %v2283_v6, %v2284_v1  ;;  %v2214_v37 = vmax.f32 %v2182_v63, 0.0  ;;  %v2183_v0 = vadd.f32 %v5919_v48, %v2144_v22  ;;  %v1565_v43 = vpop.f32.mrb[86].mxu1  ;;  %v2017_v30 = vadd.f32 %v1953_v29, %v5848_v19  ;;  %v1680_v32 = vpop.f32.mrb[87].mxu0 }
 0x1be   : > { %v1841_v10 = vrot.slane %v1563_v47, 1  ;;  %v2081_v55 = vrot.slane %v1676_v36, 3  ;;  %v1954_v42 = vrot.slane %v1678_v18, 2  ;;  %v1567_v26 = vpop.f32.mrb[87].mxu1  ;;  %v2291_v53 = vrot.slane %v2290_v28, 2 }
 0x1bf   : > { %v2286_v7 = vrot.slane %v2285_v23, 1  ;;  %v2295_v44 = vsel %vm2238_vm9, %v2214_v37, -inf  ;;  %v2215_v57 = vmax.f32 %v2183_v0, 0.0  ;;  %v1842_v19 = vrot.slane %v1567_v26, 1 }
 0x1c0   : > { %v2296_v15 = vrot.slane %v2295_v44, 4  ;;  %v6025_v8 = vadd.f32 %v1841_v10, %v1561_v54  ;;  %v2145_v59 = vadd.f32 %v2081_v55, %v2017_v30  ;;  %v2018_v17 = vadd.f32 %v1954_v42, %v5861_v16 }
 0x1c1   : > { %v2292_v34 = vmax.f32 %v2290_v28, %v2291_v53  ;;  %v2302_v50 = vsel %vm2238_vm9, %v2215_v57, -inf  ;;  %v2082_v13 = vrot.slane %v1680_v32, 3  ;;  %v2287_v25 = vmax.f32 %v2285_v23, %v2286_v7 }
 0x1c2   : > { %v2297_v62 = vmax.f32 %v2295_v44, %v2296_v15  ;;  %v2303_v3 = vrot.slane %v2302_v50, 4  ;;  %v2184_v6 = vadd.f32 %v5919_v48, %v2145_v59  ;;  %v6030_v46 = vadd.f32 %v1842_v19, %v1565_v43  ;;  %v1684_v27 = vpop.f32.mrb[88].mxu0 }
 0x1c3   : > { %v2146_v51 = vadd.f32 %v2082_v13, %v2018_v17  ;;  %v1571_v5 = vpop.f32.mrb[88].mxu1  ;;  %v2293_v1 = vrot.slane %v2292_v34, 1  ;;  %v3989_v12 = vsel %vm3922_vm6, %v2280_v41, %v3988_v4  ;;  %v1955_v54 = vrot.slane %v1684_v27, 2  ;;  %v1686_v29 = vpop.f32.mrb[89].mxu0 }
 0x1c4   : > { %v2298_v63 = vrot.slane %v2297_v62, 2  ;;  %v2304_v16 = vmax.f32 %v2302_v50, %v2303_v3  ;;  %v2216_v22 = vmax.f32 %v2184_v6, 0.0  ;;  %v1573_v49 = vpop.f32.mrb[89].mxu1  ;;  %v2083_v28 = vrot.slane %v1686_v29, 3  ;;  %v1688_v23 = vpop.f32.mrb[90].mxu0 }
 0x1c5   : > { %v2185_v47 = vadd.f32 %v5919_v48, %v2146_v51  ;;  %v1843_v36 = vrot.slane %v1573_v49, 1  ;;  %v1575_v37 = vpop.f32.mrb[90].mxu1  ;;  %v6034_v0 = vmax.f32 %v2292_v34, %v2293_v1  ;;  %v2019_v41 = vadd.f32 %v1955_v54, %v5869_v21  ;;  %v1690_v10 = vpop.f32.mrb[91].mxu0 }
 0x1c6   : > { %v2299_v43 = vmax.f32 %v2297_v62, %v2298_v63  ;;  %v2305_v18 = vrot.slane %v2304_v16, 2  ;;  %v2309_v30 = vsel %vm2238_vm9, %v2216_v22, -inf  ;;  %v1577_v4 = vpop.f32.mrb[91].mxu1  ;;  %v1956_v32 = vrot.slane %v1688_v23, 2 }
 0x1c7   : > { %v2310_v55 = vrot.slane %v2309_v30, 4  ;;  %v2217_v42 = vmax.f32 %v2185_v47, 0.0  ;;  %v6038_v26 = vadd.f32 %v1843_v36, %v1571_v5  ;;  %v2147_v44 = vadd.f32 %v2083_v28, %v2019_v41 }
 0x1c8   : > { %v2300_v7 = vrot.slane %v2299_v43, 1  ;;  %v2306_v53 = vmax.f32 %v2304_v16, %v2305_v18  ;;  %v1844_v57 = vrot.slane %v1577_v4, 1  ;;  %v2020_v17 = vadd.f32 %v1956_v32, %v5886_v52 }
 0x1c9   : > { %v2311_v15 = vmax.f32 %v2309_v30, %v2310_v55  ;;  %v2316_v59 = vsel %vm2238_vm9, %v2217_v42, -inf  ;;  %v2084_v34 = vrot.slane %v1690_v10, 3  ;;  %v2186_v13 = vadd.f32 %v5919_v48, %v2147_v44 }
 0x1ca   : > { %v2301_v50 = vmax.f32 %v2299_v43, %v2300_v7  ;;  %v2307_v19 = vrot.slane %v2306_v53, 1  ;;  %v2317_v21 = vrot.slane %v2316_v59, 4  ;;  %v6043_v3 = vadd.f32 %v1844_v57, %v1575_v37  ;;  %v1694_v5 = vpop.f32.mrb[92].mxu0 }
 0x1cb   : > { %v2312_v62 = vrot.slane %v2311_v15, 2  ;;  %v2148_v6 = vadd.f32 %v2084_v34, %v2020_v17  ;;  %v1581_v51 = vpop.f32.mrb[92].mxu1  ;;  %v3990_v27 = vsel %vm3924_vm7, %v2287_v25, %v3989_v12  ;;  %v2218_v16 = vmax.f32 %v2186_v13, 0.0  ;;  %v1696_v52 = vpop.f32.mrb[93].mxu0 }
 0x1cc   : > { %v2308_v1 = vmax.f32 %v2306_v53, %v2307_v19  ;;  %v2318_v63 = vmax.f32 %v2316_v59, %v2317_v21  ;;  %v1957_v22 = vrot.slane %v1694_v5, 2  ;;  %v1583_v54 = vpop.f32.mrb[93].mxu1  ;;  %v2085_v36 = vrot.slane %v1696_v52, 3  ;;  %v1698_v23 = vpop.f32.mrb[94].mxu0 }
 0x1cd   : > { %v2313_v49 = vmax.f32 %v2311_v15, %v2312_v62  ;;  %v2187_v29 = vadd.f32 %v5919_v48, %v2148_v6  ;;  %v1845_v47 = vrot.slane %v1583_v54, 1  ;;  %v1585_v28 = vpop.f32.mrb[94].mxu1  ;;  %v2323_v18 = vsel %vm2238_vm9, %v2218_v16, -inf  ;;  %v1700_v30 = vpop.f32.mrb[95].mxu0 }
 0x1ce   : > { %v3992_v37 = vsel %vm3914_vm2, %v2308_v1, %v2301_v50  ;;  %v2319_v43 = vrot.slane %v2318_v63, 2  ;;  %v2021_v25 = vadd.f32 %v1957_v22, %v5894_v45  ;;  %v1587_v12 = vpop.f32.mrb[95].mxu1  ;;  %v2324_v4 = vrot.slane %v2323_v18, 4 }
 0x1cf   : > { %v2314_v41 = vrot.slane %v2313_v49, 1  ;;  %v2219_v10 = vmax.f32 %v2187_v29, 0.0  ;;  %v6050_v55 = vadd.f32 %v1845_v47, %v1581_v51  ;;  %v1958_v7 = vrot.slane %v1698_v23, 2 }
 0x1d0   : > { %v2320_v42 = vmax.f32 %v2318_v63, %v2319_v43  ;;  %v2149_v32 = vadd.f32 %v2085_v36, %v2021_v25  ;;  %v1846_v53 = vrot.slane %v1587_v12, 1  ;;  %v2325_v57 = vmax.f32 %v2323_v18, %v2324_v4 }
 0x1d1   : > { %v2315_v44 = vmax.f32 %v2313_v49, %v2314_v41  ;;  %v2330_v15 = vsel %vm2238_vm9, %v2219_v10, -inf  ;;  %v2086_v59 = vrot.slane %v1700_v30, 3  ;;  %v2022_v50 = vadd.f32 %v1958_v7, %v5909_v56 }
 0x1d2   : > { %v2321_v17 = vrot.slane %v2320_v42, 1  ;;  %v2331_v34 = vrot.slane %v2330_v15, 4  ;;  %v2188_v45 = vadd.f32 %v5919_v48, %v2149_v32  ;;  %v2326_v19 = vrot.slane %v2325_v57, 2  ;;  %v1704_v13 = vpop.f32.mrb[96].mxu0 }
 0x1d3   : > { %v6055_v21 = vadd.f32 %v1846_v53, %v1585_v28  ;;  %v2561_v62 = vpop.f32.mrb[96].mxu1  ;;  %v6059_v6 = vsel %vm3926_vm8, %v6034_v0, %v3990_v27  ;;  %v3993_v51 = vsel %vm3916_vm3, %v2315_v44, %v3992_v37  ;;  %v2150_v16 = vadd.f32 %v2086_v59, %v2022_v50  ;;  %v1706_v22 = vpop.f32.mrb[97].mxu0 }
 0x1d4   : > { %v2322_v5 = vmax.f32 %v2320_v42, %v2321_v17  ;;  %v2332_v1 = vmax.f32 %v2330_v15, %v2331_v34  ;;  %v2220_v63 = vmax.f32 %v2188_v45, 0.0  ;;  %v2563_v54 = vpop.f32.mrb[97].mxu1  ;;  %v2327_v52 = vmax.f32 %v2325_v57, %v2326_v19  ;;  %v1708_v47 = vpop.f32.mrb[98].mxu0 }
 0x1d5   : > { %v1959_v49 = vrot.slane %v1704_v13, 2  ;;  %v2087_v56 = vrot.slane %v1706_v22, 3  ;;  %v3106_v29 = vrot.slane %v2563_v54, 1  ;;  %v2565_v36 = vpop.f32.mrb[98].mxu1  ;;  %v2189_v0 = vadd.f32 %v5919_v48, %v2150_v16  ;;  %v1710_v43 = vpop.f32.mrb[99].mxu0 }
 0x1d6   : > { %v2333_v28 = vrot.slane %v2332_v1, 2  ;;  %v2337_v23 = vsel %vm2238_vm9, %v2220_v63, -inf  ;;  %v1960_v27 = vrot.slane %v1708_v47, 2  ;;  %v2567_v37 = vpop.f32.mrb[99].mxu1  ;;  %v2328_v18 = vrot.slane %v2327_v52, 1 }
 0x1d7   : > { %v2338_v25 = vrot.slane %v2337_v23, 4  ;;  %v2023_v12 = vadd.f32 %v1959_v49, %v5914_v31  ;;  %v6065_v30 = vadd.f32 %v3106_v29, %v2561_v62  ;;  %v2221_v4 = vmax.f32 %v2189_v0, 0.0 }
 0x1d8   : > { %v2334_v41 = vmax.f32 %v2332_v1, %v2333_v28  ;;  %v2024_v10 = vadd.f32 %v1960_v27, %v5929_v39  ;;  %v2088_v42 = vrot.slane %v1710_v43, 3  ;;  %v2329_v32 = vmax.f32 %v2327_v52, %v2328_v18 }
 0x1d9   : > { %v2339_v7 = vmax.f32 %v2337_v23, %v2338_v25  ;;  %v2151_v53 = vadd.f32 %v2087_v56, %v2023_v12  ;;  %v3107_v44 = vrot.slane %v2567_v37, 1  ;;  %v2344_v15 = vsel %vm2238_vm9, %v2221_v4, -inf }
 0x1da   : > { %v2335_v57 = vrot.slane %v2334_v41, 1  ;;  %v2152_v59 = vadd.f32 %v2088_v42, %v2024_v10  ;;  %v3994_v17 = vsel %vm3918_vm4, %v2322_v5, %v3993_v51  ;;  %v2345_v45 = vrot.slane %v2344_v15, 4  ;;  %v1714_v19 = vpop.f32.mrb[100].mxu0 }
 0x1db   : > { %v2340_v34 = vrot.slane %v2339_v7, 2  ;;  %v2190_v31 = vadd.f32 %v5919_v48, %v2151_v53  ;;  %v6071_v50 = vadd.f32 %v3107_v44, %v2565_v36  ;;  %v2571_v13 = vpop.f32.mrb[100].mxu1  ;;  %v1961_v1 = vrot.slane %v1714_v19, 2  ;;  %v1716_v63 = vpop.f32.mrb[101].mxu0 }
 0x1dc   : > { %v2336_v39 = vmax.f32 %v2334_v41, %v2335_v57  ;;  %v2191_v62 = vadd.f32 %v5919_v48, %v2152_v59  ;;  %v2573_v16 = vpop.f32.mrb[101].mxu1  ;;  %v3995_v22 = vsel %vm3920_vm5, %v2329_v32, %v3994_v17  ;;  %v2346_v52 = vmax.f32 %v2344_v15, %v2345_v45  ;;  %v1718_v5 = vpop.f32.mrb[102].mxu0 }
 0x1dd   : > { %v2341_v54 = vmax.f32 %v2339_v7, %v2340_v34  ;;  %v2222_v49 = vmax.f32 %v2190_v31, 0.0  ;;  %v2089_v51 = vrot.slane %v1716_v63, 3  ;;  %v2575_v56 = vpop.f32.mrb[102].mxu1  ;;  %v2025_v47 = vadd.f32 %v1961_v1, %v5944_v20  ;;  %v1720_v23 = vpop.f32.mrb[103].mxu0 }
 0x1de   : > { %v2223_v29 = vmax.f32 %v2191_v62, 0.0  ;;  %v3108_v36 = vrot.slane %v2573_v16, 1  ;;  %v1962_v28 = vrot.slane %v1718_v5, 2  ;;  %v2577_v0 = vpop.f32.mrb[103].mxu1  ;;  %v2347_v43 = vrot.slane %v2346_v52, 2 }
 0x1df   : > { %v2342_v27 = vrot.slane %v2341_v54, 1  ;;  %v2351_v37 = vsel %vm2238_vm9, %v2222_v49, -inf  ;;  %v2090_v18 = vrot.slane %v1720_v23, 3  ;;  %v2153_v41 = vadd.f32 %v2089_v51, %v2025_v47 }
 0x1e0   : > { %v2352_v25 = vrot.slane %v2351_v37, 4  ;;  %v2358_v12 = vsel %vm2238_vm9, %v2223_v29, -inf  ;;  %v6078_v4 = vadd.f32 %v3108_v36, %v2571_v13  ;;  %v2348_v10 = vmax.f32 %v2346_v52, %v2347_v43 }
 0x1e1   : > { %v2359_v42 = vrot.slane %v2358_v12, 4  ;;  %v2026_v32 = vadd.f32 %v1962_v28, %v5956_v14  ;;  %v3109_v20 = vrot.slane %v2577_v0, 1  ;;  %v2192_v53 = vadd.f32 %v5919_v48, %v2153_v41 }
 0x1e2   : > { %v2353_v7 = vmax.f32 %v2351_v37, %v2352_v25  ;;  %v2343_v44 = vmax.f32 %v2341_v54, %v2342_v27  ;;  %v3996_v57 = vsel %vm3922_vm6, %v2336_v39, %v3995_v22  ;;  %v1724_v34 = vpop.f32.mrb[104].mxu0  ;;  %v2349_v31 = vrot.slane %v2348_v10, 1 }
 0x1e3   : > { %v2360_v15 = vmax.f32 %v2358_v12, %v2359_v42  ;;  %v2154_v59 = vadd.f32 %v2090_v18, %v2026_v32  ;;  %v6083_v17 = vadd.f32 %v3109_v20, %v2575_v56  ;;  %v2581_v45 = vpop.f32.mrb[104].mxu1  ;;  %v2224_v13 = vmax.f32 %v2192_v53, 0.0  ;;  %v1726_v1 = vpop.f32.mrb[105].mxu0 }
 0x1e4   : > { %v2354_v19 = vrot.slane %v2353_v7, 2  ;;  %v1963_v62 = vrot.slane %v1724_v34, 2  ;;  %v2583_v63 = vpop.f32.mrb[105].mxu1  ;;  %v3997_v14 = vsel %vm3924_vm7, %v2343_v44, %v3996_v57  ;;  %v2091_v54 = vrot.slane %v1726_v1, 3  ;;  %v1728_v39 = vpop.f32.mrb[106].mxu0 }
 0x1e5   : > { %v2361_v16 = vrot.slane %v2360_v15, 2  ;;  %v2193_v52 = vadd.f32 %v5919_v48, %v2154_v59  ;;  %v3110_v49 = vrot.slane %v2583_v63, 1  ;;  %v2585_v22 = vpop.f32.mrb[106].mxu1  ;;  %v2365_v5 = vsel %vm2238_vm9, %v2224_v13, -inf  ;;  %v1730_v47 = vpop.f32.mrb[107].mxu0 }
 0x1e6   : > { %v2355_v51 = vmax.f32 %v2353_v7, %v2354_v19  ;;  %v2027_v56 = vadd.f32 %v1963_v62, %v5966_v60  ;;  %v1964_v29 = vrot.slane %v1728_v39, 2  ;;  %v2587_v36 = vpop.f32.mrb[107].mxu1  ;;  %v2366_v23 = vrot.slane %v2365_v5, 4 }
 0x1e7   : > { %v2362_v28 = vmax.f32 %v2360_v15, %v2361_v16  ;;  %v2225_v0 = vmax.f32 %v2193_v52, 0.0  ;;  %v6089_v27 = vadd.f32 %v3110_v49, %v2581_v45  ;;  %v2092_v25 = vrot.slane %v1730_v47, 3 }
 0x1e8   : > { %v2356_v43 = vrot.slane %v2355_v51, 1  ;;  %v2155_v37 = vadd.f32 %v2091_v54, %v2027_v56  ;;  %v2028_v18 = vadd.f32 %v1964_v29, %v5977_v40  ;;  %v2367_v41 = vmax.f32 %v2365_v5, %v2366_v23 }
 0x1e9   : > { %v2363_v12 = vrot.slane %v2362_v28, 1  ;;  %v2372_v42 = vsel %vm2238_vm9, %v2225_v0, -inf  ;;  %v3111_v32 = vrot.slane %v2587_v36, 1  ;;  %v2350_v59 = vmax.f32 %v2348_v10, %v2349_v31 }
 0x1ea   : > { %v2357_v20 = vmax.f32 %v2355_v51, %v2356_v43  ;;  %v2373_v60 = vrot.slane %v2372_v42, 4  ;;  %v2194_v7 = vadd.f32 %v5919_v48, %v2155_v37  ;;  %v2156_v53 = vadd.f32 %v2092_v25, %v2028_v18  ;;  %v1734_v34 = vpop.f32.mrb[108].mxu0 }
 0x1eb   : > { %v2364_v44 = vmax.f32 %v2362_v28, %v2363_v12  ;;  %v2368_v57 = vrot.slane %v2367_v41, 2  ;;  %v6094_v15 = vadd.f32 %v3111_v32, %v2585_v22  ;;  %v2591_v45 = vpop.f32.mrb[108].mxu1  ;;  %v1965_v62 = vrot.slane %v1734_v34, 2  ;;  %v1736_v1 = vpop.f32.mrb[109].mxu0 }
 0x1ec   : > { %v2374_v19 = vmax.f32 %v2372_v42, %v2373_v60  ;;  %v2226_v40 = vmax.f32 %v2194_v7, 0.0  ;;  %v2195_v13 = vadd.f32 %v5919_v48, %v2156_v53  ;;  %v2593_v63 = vpop.f32.mrb[109].mxu1  ;;  %v3998_v54 = vsel %vm3926_vm8, %v2350_v59, %v3997_v14  ;;  %v1738_v39 = vpop.f32.mrb[110].mxu0 }
 0x1ed   : > { %v3999_v16 = vsel %vm3914_vm2, %v2364_v44, %v2357_v20  ;;  %v2369_v52 = vmax.f32 %v2367_v41, %v2368_v57  ;;  %v2093_v49 = vrot.slane %v1736_v1, 3  ;;  %v2595_v51 = vpop.f32.mrb[110].mxu1  ;;  %v4082_v5 = vpack.c.bf16 %v3998_v54, %v6059_v6  ;;  %v1740_v56 = vpop.f32.mrb[111].mxu0 }
 0x1ee   : > { %v2375_v22 = vrot.slane %v2374_v19, 2  ;;  %v2379_v10 = vsel %vm2238_vm9, %v2226_v40, -inf  ;;  %v2227_v31 = vmax.f32 %v2195_v13, 0.0  ;;  %v2597_v29 = vpop.f32.mrb[111].mxu1  ;;  %v2029_v28 = vadd.f32 %v1965_v62, %v5985_v24 }
 0x1ef   : > { %v2370_v47 = vrot.slane %v2369_v52, 1  ;;  %v2380_v36 = vrot.slane %v2379_v10, 4  ;;  %v3112_v23 = vrot.slane %v2593_v63, 1  ;;  %4318 = vmatprep.mubr.bf16.mxu0 %v4082_v5  ;;  %v1966_v14 = vrot.slane %v1738_v39, 2 }
 0x1f0   : > { %v2376_v0 = vmax.f32 %v2374_v19, %v2375_v22  ;;  %v2386_v43 = vsel %vm2238_vm9, %v2227_v31, -inf  ;;  %v2094_v37 = vrot.slane %v1740_v56, 3  ;;  %4319 = vmatmul.mubr.bf16.vlgmr.msra.gmra.mrb[192].mxu0 %v4081_v58  ;;  %v2157_v6 = vadd.f32 %v2093_v49, %v2029_v28 }
 0x1f1   : > { %v2371_v18 = vmax.f32 %v2369_v52, %v2370_v47  ;;  %v2381_v25 = vmax.f32 %v2379_v10, %v2380_v36  ;;  %v2387_v12 = vrot.slane %v2386_v43, 4  ;;  %v6106_v42 = vadd.f32 %v3112_v23, %v2591_v45 }
 0x1f2   : > { %v2377_v41 = vrot.slane %v2376_v0, 1  ;;  %v2030_v24 = vadd.f32 %v1966_v14, %v5997_v35  ;;  %v3113_v32 = vrot.slane %v2597_v29, 1  ;;  %v2196_v7 = vadd.f32 %v5919_v48, %v2157_v6  ;;  %v1744_v53 = vpop.f32.mrb[112].mxu0 }
 0x1f3   : > { %v2382_v20 = vrot.slane %v2381_v25, 2  ;;  %v2388_v60 = vmax.f32 %v2386_v43, %v2387_v12  ;;  %v2601_v44 = vpop.f32.mrb[112].mxu1  ;;  %v4000_v57 = vsel %vm3916_vm3, %v2371_v18, %v3999_v16  ;;  %v1967_v61 = vrot.slane %v1744_v53, 2  ;;  %v1746_v33 = vpop.f32.mrb[113].mxu0 }
 0x1f4   : > { %v2378_v59 = vmax.f32 %v2376_v0, %v2377_v41  ;;  %v2158_v34 = vadd.f32 %v2094_v37, %v2030_v24  ;;  %v6111_v19 = vadd.f32 %v3113_v32, %v2595_v51  ;;  %v2603_v58 = vpop.f32.mrb[113].mxu1  ;;  %v2228_v13 = vmax.f32 %v2196_v7, 0.0  ;;  %v1748_v62 = vpop.f32.mrb[114].mxu0 }
 0x1f5   : > { %v2383_v45 = vmax.f32 %v2381_v25, %v2382_v20  ;;  %v2389_v40 = vrot.slane %v2388_v60, 2  ;;  %v2095_v35 = vrot.slane %v1746_v33, 3  ;;  %v2605_v1 = vpop.f32.mrb[114].mxu1  ;;  %v2031_v52 = vadd.f32 %v1967_v61, %v6005_v9  ;;  %v1750_v16 = vpop.f32.mrb[115].mxu0 }
 0x1f6   : > { %v2197_v63 = vadd.f32 %v5919_v48, %v2158_v34  ;;  %v3114_v54 = vrot.slane %v2603_v58, 1  ;;  %v1968_v49 = vrot.slane %v1748_v62, 2  ;;  %v2607_v39 = vpop.f32.mrb[115].mxu1  ;;  %v2393_v10 = vsel %vm2238_vm9, %v2228_v13, -inf }
 0x1f7   : > { %v2384_v22 = vrot.slane %v2383_v45, 1  ;;  %v2390_v51 = vmax.f32 %v2388_v60, %v2389_v40  ;;  %v2096_v31 = vrot.slane %v1750_v16, 3  ;;  %v2394_v5 = vrot.slane %v2393_v10, 4 }
 0x1f8   : > { %v2229_v56 = vmax.f32 %v2197_v63, 0.0  ;;  %v2159_v29 = vadd.f32 %v2095_v35, %v2031_v52  ;;  %v6116_v47 = vadd.f32 %v3114_v54, %v2601_v44  ;;  %v2032_v23 = vadd.f32 %v1968_v49, %v6013_v2 }
 0x1f9   : > { %v2385_v36 = vmax.f32 %v2383_v45, %v2384_v22  ;;  %v2391_v28 = vrot.slane %v2390_v51, 1  ;;  %v3115_v0 = vrot.slane %v2607_v39, 1  ;;  %v2395_v9 = vmax.f32 %v2393_v10, %v2394_v5 }
 0x1fa   : > { %v2400_v43 = vsel %vm2238_vm9, %v2229_v56, -inf  ;;  %v2198_v14 = vadd.f32 %v5919_v48, %v2159_v29  ;;  %v4001_v37 = vsel %vm3918_vm4, %v2378_v59, %v4000_v57  ;;  %v2160_v12 = vadd.f32 %v2096_v31, %v2032_v23  ;;  %v1754_v41 = vpop.f32.mrb[116].mxu0  ;;  %v6128_v48 = vld [vmem:[%s6661_s2 + $0x1] ss:$0 sm:$0xff] }
 0x1fb   : > { %v2392_v18 = vmax.f32 %v2390_v51, %v2391_v28  ;;  %v2401_v25 = vrot.slane %v2400_v43, 4  ;;  %v6122_v6 = vadd.f32 %v3115_v0, %v2605_v1  ;;  %v2611_v24 = vpop.f32.mrb[116].mxu1  ;;  %v2396_v32 = vrot.slane %v2395_v9, 2  ;;  %v1756_v7 = vpop.f32.mrb[117].mxu0 }
 0x1fc   : > { %v2230_v20 = vmax.f32 %v2198_v14, 0.0  ;;  %v1969_v60 = vrot.slane %v1754_v41, 2  ;;  %v2613_v2 = vpop.f32.mrb[117].mxu1  ;;  %v4002_v53 = vsel %vm3920_vm5, %v2385_v36, %v4001_v37  ;;  %v2199_v57 = vadd.f32 %v6128_v48, %v2160_v12  ;;  %v1758_v61 = vpop.f32.mrb[118].mxu0 }
 0x1fd   : > { %v2402_v44 = vmax.f32 %v2400_v43, %v2401_v25  ;;  %v2097_v59 = vrot.slane %v1756_v7, 3  ;;  %v3116_v34 = vrot.slane %v2613_v2, 1  ;;  %v2615_v33 = vpop.f32.mrb[118].mxu1  ;;  %v2397_v58 = vmax.f32 %v2395_v9, %v2396_v32  ;;  %v1760_v35 = vpop.f32.mrb[119].mxu0 }
 0x1fe   : > { %v2407_v45 = vsel %vm2238_vm9, %v2230_v20, -inf  ;;  %v2033_v40 = vadd.f32 %v1969_v60, %v6025_v8  ;;  %v1970_v13 = vrot.slane %v1758_v61, 2  ;;  %v2617_v62 = vpop.f32.mrb[119].mxu1  ;;  %v2231_v52 = vmax.f32 %v2199_v57, 0.0 }
 0x1ff   : > { %v2403_v1 = vrot.slane %v2402_v44, 2  ;;  %v2408_v63 = vrot.slane %v2407_v45, 4  ;;  %v6133_v54 = vadd.f32 %v3116_v34, %v2611_v24  ;;  %v2398_v49 = vrot.slane %v2397_v58, 1 }
 0x200   : > { %v2161_v16 = vadd.f32 %v2097_v59, %v2033_v40  ;;  %v2034_v39 = vadd.f32 %v1970_v13, %v6030_v46  ;;  %v2098_v22 = vrot.slane %v1760_v35, 3  ;;  %v2414_v31 = vsel %vm2238_vm9, %v2231_v52, -inf }
 0x201   : > { %v2404_v51 = vmax.f32 %v2402_v44, %v2403_v1  ;;  %v2409_v10 = vmax.f32 %v2407_v45, %v2408_v63  ;;  %v3117_v5 = vrot.slane %v2617_v62, 1  ;;  %v2415_v56 = vrot.slane %v2414_v31, 4  ;;  %v4998_v63 = vld [vmem:[#allocation2 + $0x80] sm:$0xff]  }
 0x202   : > { %v2200_v8 = vadd.f32 %v6128_v48, %v2161_v16  ;;  %v2162_v29 = vadd.f32 %v2098_v22, %v2034_v39  ;;  %v2399_v36 = vmax.f32 %v2397_v58, %v2398_v49  ;;  %v1764_v0 = vpop.f32.mrb[120].mxu0  ;;  %v4003_v14 = vsel %vm3922_vm6, %v2392_v18, %v4002_v53  ;;  %4857 = vmatprep.subr.bf16.mxu1 %v4998_v63 }
 0x203   : > { %v2410_v28 = vrot.slane %v2409_v10, 2  ;;  %v6138_v23 = vadd.f32 %v3117_v5, %v2615_v33  ;;  %v2621_v9 = vpop.f32.mrb[120].mxu1  ;;  %v2405_v43 = vrot.slane %v2404_v51, 1  ;;  %v2416_v46 = vmax.f32 %v2414_v31, %v2415_v56  ;;  %v1766_v41 = vpop.f32.mrb[121].mxu0  ;;  %4858 = vmatpush3.bf16.msra.mxu1 %v4998_v63 }
 0x204   : > { %v2232_v37 = vmax.f32 %v2200_v8, 0.0  ;;  %v2201_v25 = vadd.f32 %v6128_v48, %v2162_v29  ;;  %v1971_v12 = vrot.slane %v1764_v0, 2  ;;  %v2623_v24 = vpop.f32.mrb[121].mxu1  ;;  %v2099_v20 = vrot.slane %v1766_v41, 3  ;;  %v1768_v7 = vpop.f32.mrb[122].mxu0 }
 0x205   : > { %v2411_v32 = vmax.f32 %v2409_v10, %v2410_v28  ;;  %v3118_v60 = vrot.slane %v2623_v24, 1  ;;  %v2625_v2 = vpop.f32.mrb[122].mxu1  ;;  %v2406_v44 = vmax.f32 %v2404_v51, %v2405_v43  ;;  %v2417_v57 = vrot.slane %v2416_v46, 2  ;;  %v1770_v18 = vpop.f32.mrb[123].mxu0 }
 0x206   : > { %v2421_v59 = vsel %vm2238_vm9, %v2232_v37, -inf  ;;  %v2233_v34 = vmax.f32 %v2201_v25, 0.0  ;;  %v2035_v61 = vadd.f32 %v1971_v12, %v6038_v26  ;;  %v2627_v53 = vpop.f32.mrb[123].mxu1  ;;  %v1972_v40 = vrot.slane %v1768_v7, 2 }
 0x207   : > { %v2412_v33 = vrot.slane %v2411_v32, 1  ;;  %v2422_v58 = vrot.slane %v2421_v59, 4  ;;  %v6144_v45 = vadd.f32 %v3118_v60, %v2621_v9  ;;  %v2418_v13 = vmax.f32 %v2416_v46, %v2417_v57 }
 0x208   : > { %v2428_v35 = vsel %vm2238_vm9, %v2233_v34, -inf  ;;  %v2163_v62 = vadd.f32 %v2099_v20, %v2035_v61  ;;  %v2100_v1 = vrot.slane %v1770_v18, 3  ;;  %v2036_v39 = vadd.f32 %v1972_v40, %v6043_v3 }
 0x209   : > { %v2413_v52 = vmax.f32 %v2411_v32, %v2412_v33  ;;  %v2423_v49 = vmax.f32 %v2421_v59, %v2422_v58  ;;  %v2429_v16 = vrot.slane %v2428_v35, 4  ;;  %v2419_v22 = vrot.slane %v2418_v13, 1 }
 0x20a   : > { %v2202_v26 = vadd.f32 %v6128_v48, %v2163_v62  ;;  %v3119_v51 = vrot.slane %v2627_v53, 1  ;;  %v4004_v10 = vsel %vm3924_vm7, %v2399_v36, %v4003_v14  ;;  %v2164_v56 = vadd.f32 %v2100_v1, %v2036_v39  ;;  %v1774_v8 = vpop.f32.mrb[124].mxu0 }
 0x20b   : > { %v2424_v31 = vrot.slane %v2423_v49, 2  ;;  %v2430_v5 = vmax.f32 %v2428_v35, %v2429_v16  ;;  %v2631_v29 = vpop.f32.mrb[124].mxu1  ;;  %v6151_v28 = vsel %vm3926_vm8, %v2406_v44, %v4004_v10  ;;  %v2420_v0 = vmax.f32 %v2418_v13, %v2419_v22  ;;  %v1776_v46 = vpop.f32.mrb[125].mxu0 }
 0x20c   : > { %v2234_v9 = vmax.f32 %v2202_v26, 0.0  ;;  %v6153_v43 = vadd.f32 %v3119_v51, %v2625_v2  ;;  %v1973_v3 = vrot.slane %v1774_v8, 2  ;;  %v2633_v37 = vpop.f32.mrb[125].mxu1  ;;  %v2203_v36 = vadd.f32 %v6128_v48, %v2164_v56  ;;  %v1778_v41 = vpop.f32.mrb[126].mxu0 }
 0x20d   : > { %v2425_v25 = vmax.f32 %v2423_v49, %v2424_v31  ;;  %v2431_v12 = vrot.slane %v2430_v5, 2  ;;  %v2101_v14 = vrot.slane %v1776_v46, 3  ;;  %v2635_v24 = vpop.f32.mrb[126].mxu1  ;;  %v4006_v32 = vsel %vm3914_vm2, %v2420_v0, %v2413_v52  ;;  %v1780_v44 = vpop.f32.mrb[127].mxu0  ;;  %v4999_v0 = vld [vmem:[#allocation2 + $0x88] sm:$0xff]  }
 0x20e   : > { %v2435_v20 = vsel %vm2238_vm9, %v2234_v9, -inf  ;;  %v2037_v60 = vadd.f32 %v1973_v3, %v6050_v55  ;;  %v3120_v7 = vrot.slane %v2633_v37, 1  ;;  %v2637_v2 = vpop.f32.mrb[127].mxu1  ;;  %v2235_v61 = vmax.f32 %v2203_v36, 0.0  ;;  %4859 = vmatprep.subr.bf16.mxu1 %v4999_v0 }
 0x20f   : > { %v2426_v57 = vrot.slane %v2425_v25, 1  ;;  %v2432_v59 = vmax.f32 %v2430_v5, %v2431_v12  ;;  %v2436_v34 = vrot.slane %v2435_v20, 4  ;;  %v1974_v33 = vrot.slane %v1778_v41, 2  ;;  %4860 = vmatpush3.bf16.msra.mxu1 %v4999_v0 }
 0x210   : > { %v2165_v18 = vadd.f32 %v2101_v14, %v2037_v60  ;;  %v6159_v53 = vadd.f32 %v3120_v7, %v2631_v29  ;;  %v2102_v58 = vrot.slane %v1780_v44, 3  ;;  %v2442_v62 = vsel %vm2238_vm9, %v2235_v61, -inf }
 0x211   : > { %v2427_v40 = vmax.f32 %v2425_v25, %v2426_v57  ;;  %v2433_v13 = vrot.slane %v2432_v59, 1  ;;  %v2437_v35 = vmax.f32 %v2435_v20, %v2436_v34  ;;  %v2443_v1 = vrot.slane %v2442_v62, 4 }
 0x212   : > { %v2204_v55 = vadd.f32 %v6128_v48, %v2165_v18  ;;  %v2038_v63 = vadd.f32 %v1974_v33, %v6055_v21  ;;  %v3121_v52 = vrot.slane %v2637_v2, 1  ;;  %v2754_v22 = vpop.f32.mrb[128].mxu0  ;;  %v4084_v51 = vpack.c.bf16 %v6020_v11, %v5882_v38 }
 0x213   : > { %v2434_v49 = vmax.f32 %v2432_v59, %v2433_v13  ;;  %v2438_v16 = vrot.slane %v2437_v35, 2  ;;  %v2641_v39 = vpop.f32.mrb[128].mxu1  ;;  %v4007_v26 = vsel %vm3916_vm3, %v2427_v40, %v4006_v32  ;;  %v2444_v10 = vmax.f32 %v2442_v62, %v2443_v1  ;;  %v2756_v29 = vpop.f32.mrb[129].mxu0 }
 0x214   : > { %v2236_v31 = vmax.f32 %v2204_v55, 0.0  ;;  %v2166_v5 = vadd.f32 %v2102_v58, %v2038_v63  ;;  %v6167_v56 = vadd.f32 %v3121_v52, %v2635_v24  ;;  %v2643_v8 = vpop.f32.mrb[129].mxu1  ;;  %v3234_v21 = vrot.slane %v2754_v22, 2  ;;  %v2758_v25 = vpop.f32.mrb[130].mxu0 }
 0x215   : > { %v2439_v9 = vmax.f32 %v2437_v35, %v2438_v16  ;;  %v3122_v3 = vrot.slane %v2643_v8, 1  ;;  %v3362_v46 = vrot.slane %v2756_v29, 3  ;;  %v2645_v37 = vpop.f32.mrb[130].mxu1  ;;  %v2445_v12 = vrot.slane %v2444_v10, 2  ;;  %v2760_v20 = vpop.f32.mrb[131].mxu0 }
 0x216   : > { %v2449_v36 = vsel %vm2238_vm9, %v2236_v31, -inf  ;;  %v2205_v14 = vadd.f32 %v6128_v48, %v2166_v5  ;;  %v3235_v41 = vrot.slane %v2758_v25, 2  ;;  %v2647_v32 = vpop.f32.mrb[131].mxu1  ;;  %v3298_v7 = vadd.f32 %v3234_v21, %v6065_v30 }
 0x217   : > { %v2440_v24 = vrot.slane %v2439_v9, 1  ;;  %v2450_v60 = vrot.slane %v2449_v36, 4  ;;  %v6172_v44 = vadd.f32 %v3122_v3, %v2641_v39  ;;  %v2446_v2 = vmax.f32 %v2444_v10, %v2445_v12 }
 0x218   : > { %v2237_v57 = vmax.f32 %v2205_v14, 0.0  ;;  %v3299_v59 = vadd.f32 %v3235_v41, %v6071_v50  ;;  %v3123_v34 = vrot.slane %v2647_v32, 1  ;;  %v6175_v33 = vadd.f32 %v3362_v46, %v3298_v7 }
 0x219   : > { %v2441_v61 = vmax.f32 %v2439_v9, %v2440_v24  ;;  %v2451_v18 = vmax.f32 %v2449_v36, %v2450_v60  ;;  %v3363_v48 = vrot.slane %v2760_v20, 3  ;;  %v2447_v58 = vrot.slane %v2446_v2, 1 }
 0x21a   : > { %v2456_v40 = vsel %vm2238_vm9, %v2237_v57, -inf  ;;  %v6178_v13 = vadd.f32 %v3123_v34, %v2645_v37  ;;  %v4008_v30 = vsel %vm3918_vm4, %v2434_v49, %v4007_v26  ;;  %v2764_v63 = vpop.f32.mrb[132].mxu0 }
 0x21b   : > { %v2452_v35 = vrot.slane %v2451_v18, 2  ;;  %v2457_v62 = vrot.slane %v2456_v40, 4  ;;  %v6181_v1 = vadd.f32 %v3363_v48, %v3299_v59  ;;  %v2651_v55 = vpop.f32.mrb[132].mxu1  ;;  %v4009_v50 = vsel %vm3920_vm5, %v2441_v61, %v4008_v30  ;;  %v2766_v22 = vpop.f32.mrb[133].mxu0  ;;  %v5000_v59 = vld [vmem:[#allocation2 + $0x90] sm:$0xff]  }
 0x21c   : > { %v2448_v52 = vmax.f32 %v2446_v2, %v2447_v58  ;;  %v3236_v16 = vrot.slane %v2764_v63, 2  ;;  %v2653_v39 = vpop.f32.mrb[133].mxu1  ;;  %v3364_v8 = vrot.slane %v2766_v22, 3  ;;  %v2768_v0 = vpop.f32.mrb[134].mxu0  ;;  %4861 = vmatprep.subr.bf16.mxu1 %v5000_v59 }
 0x21d   : > { %v2453_v10 = vmax.f32 %v2451_v18, %v2452_v35  ;;  %v2458_v31 = vmax.f32 %v2456_v40, %v2457_v62  ;;  %v3124_v5 = vrot.slane %v2653_v39, 1  ;;  %v2655_v29 = vpop.f32.mrb[134].mxu1  ;;  %v3237_v26 = vrot.slane %v2768_v0, 2  ;;  %v2770_v21 = vpop.f32.mrb[135].mxu0  ;;  %4862 = vmatpush3.bf16.msra.mxu1 %v5000_v59 }
 0x21e   : > { %v3300_v49 = vadd.f32 %v3236_v16, %v6078_v4  ;;  %v2657_v9 = vpop.f32.mrb[135].mxu1  ;;  %v4010_v3 = vsel %vm3922_vm6, %v2448_v52, %v4009_v50  ;;  %v3365_v41 = vrot.slane %v2770_v21, 3 }
 0x21f   : > { %v2454_v46 = vrot.slane %v2453_v10, 1  ;;  %v2459_v37 = vrot.slane %v2458_v31, 2  ;;  %v6186_v25 = vadd.f32 %v3124_v5, %v2651_v55  ;;  %v3125_v12 = vrot.slane %v2657_v9, 1 }
 0x220   : > { %v6188_v36 = vadd.f32 %v3364_v8, %v3300_v49  ;;  %v3301_v14 = vadd.f32 %v3237_v26, %v6083_v17 }
 0x221   : > { %v2460_v32 = vmax.f32 %v2458_v31, %v2459_v37  ;;  %v6191_v20 = vadd.f32 %v3125_v12, %v2655_v29  ;;  %v2455_v24 = vmax.f32 %v2453_v10, %v2454_v46 }
 0x222   : > { %v6193_v4 = vadd.f32 %v3365_v41, %v3301_v14  ;;  %v2774_v7 = vpop.f32.mrb[136].mxu0  ;;  %v5001_v14 = vld [vmem:[#allocation2 + $0x98] sm:$0xff]  }
 0x223   : > { %v2661_v60 = vpop.f32.mrb[136].mxu1  ;;  %v2461_v2 = vrot.slane %v2460_v32, 1  ;;  %v4011_v57 = vsel %vm3924_vm7, %v2455_v24, %v4010_v3  ;;  %v3238_v34 = vrot.slane %v2774_v7, 2  ;;  %v2776_v18 = vpop.f32.mrb[137].mxu0  ;;  %4863 = vmatprep.subr.bf16.mxu1 %v5001_v14 }
 0x224   : > { %v2663_v61 = vpop.f32.mrb[137].mxu1  ;;  %v3366_v58 = vrot.slane %v2776_v18, 3  ;;  %v2778_v17 = vpop.f32.mrb[138].mxu0  ;;  %4864 = vmatpush3.bf16.msra.mxu1 %v5001_v14 }
 0x225   : > { %v3126_v48 = vrot.slane %v2663_v61, 1  ;;  %v2665_v40 = vpop.f32.mrb[138].mxu1  ;;  %v2462_v30 = vmax.f32 %v2460_v32, %v2461_v2  ;;  %v3302_v35 = vadd.f32 %v3238_v34, %v6089_v27  ;;  %v3239_v62 = vrot.slane %v2778_v17, 2  ;;  %v2780_v63 = vpop.f32.mrb[139].mxu0 }
 0x226   : > { %v2667_v55 = vpop.f32.mrb[139].mxu1  ;;  %v3367_v16 = vrot.slane %v2780_v63, 3 }
 0x227   : > { %v6197_v50 = vadd.f32 %v3126_v48, %v2661_v60  ;;  %v3127_v52 = vrot.slane %v2667_v55, 1  ;;  %v4012_v39 = vsel %vm3926_vm8, %v2462_v30, %v4011_v57  ;;  %v6200_v22 = vadd.f32 %v3366_v58, %v3302_v35 }
 0x228   : > { %v3303_v10 = vadd.f32 %v3239_v62, %v6094_v15  ;;  %v4085_v31 = vpack.c.bf16 %v4012_v39, %v6151_v28 }
 0x229   : > { %v6204_v5 = vadd.f32 %v3127_v52, %v2665_v40 }
 0x22a   : > { %v6206_v8 = vadd.f32 %v3367_v16, %v3303_v10  ;;  %4326 = vmatprep.mubr.bf16.mxu0 %v4085_v31  ;;  %v2784_v29 = vpop.f32.mrb[140].mxu0 }
 0x22b   : > { %4327 = vmatmul.mubr.bf16.gmra.mrb[196].mxu0 %v4084_v51  ;;  %v2671_v27 = vpop.f32.mrb[140].mxu1  ;;  %v3240_v0 = vrot.slane %v2784_v29, 2  ;;  %v2786_v26 = vpop.f32.mrb[141].mxu0 }
 0x22c   : > { %v2673_v49 = vpop.f32.mrb[141].mxu1  ;;  %v3368_v21 = vrot.slane %v2786_v26, 3  ;;  %v2788_v15 = vpop.f32.mrb[142].mxu0 }
 0x22d   : > { %v3128_v9 = vrot.slane %v2673_v49, 1  ;;  %v2675_v3 = vpop.f32.mrb[142].mxu1  ;;  %v3304_v28 = vadd.f32 %v3240_v0, %v6106_v42  ;;  %v3241_v46 = vrot.slane %v2788_v15, 2  ;;  %v2790_v12 = vpop.f32.mrb[143].mxu0 }
 0x22e   : > { %v2677_v37 = vpop.f32.mrb[143].mxu1  ;;  %v3369_v38 = vrot.slane %v2790_v12, 3 }
 0x22f   : > { %v6212_v41 = vadd.f32 %v3128_v9, %v2671_v27  ;;  %v3129_v32 = vrot.slane %v2677_v37, 1  ;;  %v6214_v11 = vadd.f32 %v3368_v21, %v3304_v28  ;;  %v3305_v51 = vadd.f32 %v3241_v46, %v6111_v19  ;;  %v5002_v37 = vld [vmem:[#allocation2 + $0xa0] sm:$0xff]  }
 0x230   : > { %4865 = vmatprep.subr.bf16.mxu1 %v5002_v37 }
 0x231   : > { %v6217_v24 = vadd.f32 %v3129_v32, %v2675_v3  ;;  %v6219_v60 = vadd.f32 %v3369_v38, %v3305_v51  ;;  %4866 = vmatpush3.bf16.msra.mxu1 %v5002_v37 }
 0x232   : > { %v2794_v42 = vpop.f32.mrb[144].mxu0 }
 0x233   : > { %v2681_v7 = vpop.f32.mrb[144].mxu1  ;;  %v3242_v2 = vrot.slane %v2794_v42, 2  ;;  %v2796_v59 = vpop.f32.mrb[145].mxu0 }
 0x234   : > { %v2683_v57 = vpop.f32.mrb[145].mxu1  ;;  %v3370_v61 = vrot.slane %v2796_v59, 3  ;;  %v2798_v48 = vpop.f32.mrb[146].mxu0 }
 0x235   : > { %v3130_v34 = vrot.slane %v2683_v57, 1  ;;  %v2685_v18 = vpop.f32.mrb[146].mxu1  ;;  %v3306_v58 = vadd.f32 %v3242_v2, %v6116_v47  ;;  %v3243_v40 = vrot.slane %v2798_v48, 2  ;;  %v2800_v19 = vpop.f32.mrb[147].mxu0 }
 0x236   : > { %v2687_v17 = vpop.f32.mrb[147].mxu1  ;;  %v3371_v62 = vrot.slane %v2800_v19, 3 }
 0x237   : > { %v6222_v30 = vadd.f32 %v3130_v34, %v2681_v7  ;;  %v3131_v35 = vrot.slane %v2687_v17, 1  ;;  %v6224_v55 = vadd.f32 %v3370_v61, %v3306_v58  ;;  %v3307_v63 = vadd.f32 %v3243_v40, %v6122_v6 }
 0x239   : > { %v6227_v52 = vadd.f32 %v3131_v35, %v2685_v18  ;;  %v6229_v16 = vadd.f32 %v3371_v62, %v3307_v63 }
 0x23a   : > { %v2804_v10 = vpop.f32.mrb[148].mxu0 }
 0x23b   : > { %v2691_v39 = vpop.f32.mrb[148].mxu1  ;;  %v3244_v31 = vrot.slane %v2804_v10, 2  ;;  %v2806_v47 = vpop.f32.mrb[149].mxu0 }
 0x23c   : > { %v2693_v27 = vpop.f32.mrb[149].mxu1  ;;  %v3372_v0 = vrot.slane %v2806_v47, 3  ;;  %v2808_v26 = vpop.f32.mrb[150].mxu0 }
 0x23d   : > { %v3132_v29 = vrot.slane %v2693_v27, 1  ;;  %v2695_v49 = vpop.f32.mrb[150].mxu1  ;;  %v3308_v9 = vadd.f32 %v3244_v31, %v6133_v54  ;;  %v3245_v21 = vrot.slane %v2808_v26, 2  ;;  %v2810_v15 = vpop.f32.mrb[151].mxu0 }
 0x23e   : > { %v2697_v3 = vpop.f32.mrb[151].mxu1  ;;  %v3373_v46 = vrot.slane %v2810_v15, 3 }
 0x23f   : > { %v6232_v28 = vadd.f32 %v3132_v29, %v2691_v39  ;;  %v3133_v6 = vrot.slane %v2697_v3, 1  ;;  %v6234_v12 = vadd.f32 %v3372_v0, %v3308_v9  ;;  %v3309_v14 = vadd.f32 %v3245_v21, %v6138_v23 }
 0x241   : > { %v6237_v32 = vadd.f32 %v3133_v6, %v2695_v49  ;;  %v6239_v38 = vadd.f32 %v3373_v46, %v3309_v14  ;;  %v5003_v6 = vld [vmem:[#allocation2 + $0xa8] sm:$0xff]  }
 0x242   : > { %v2814_v54 = vpop.f32.mrb[152].mxu0  ;;  %4867 = vmatprep.subr.bf16.mxu1 %v5003_v6 }
 0x243   : > { %v2701_v51 = vpop.f32.mrb[152].mxu1  ;;  %v3246_v7 = vrot.slane %v2814_v54, 2  ;;  %v2816_v2 = vpop.f32.mrb[153].mxu0  ;;  %4868 = vmatpush3.bf16.msra.mxu1 %v5003_v6 }
 0x244   : > { %v2703_v42 = vpop.f32.mrb[153].mxu1  ;;  %v3374_v59 = vrot.slane %v2816_v2, 3  ;;  %v2818_v61 = vpop.f32.mrb[154].mxu0 }
 0x245   : > { %v3134_v57 = vrot.slane %v2703_v42, 1  ;;  %v2705_v34 = vpop.f32.mrb[154].mxu1  ;;  %v3310_v18 = vadd.f32 %v3246_v7, %v6144_v45  ;;  %v3247_v48 = vrot.slane %v2818_v61, 2  ;;  %v2820_v23 = vpop.f32.mrb[155].mxu0 }
 0x246   : > { %v2707_v58 = vpop.f32.mrb[155].mxu1  ;;  %v3375_v19 = vrot.slane %v2820_v23, 3 }
 0x247   : > { %v6242_v40 = vadd.f32 %v3134_v57, %v2701_v51  ;;  %v3135_v17 = vrot.slane %v2707_v58, 1  ;;  %v6244_v35 = vadd.f32 %v3374_v59, %v3310_v18  ;;  %v3311_v62 = vadd.f32 %v3247_v48, %v6153_v43  ;;  %v5004_v43 = vld [vmem:[#allocation2 + $0xb0] sm:$0xff]   ;;  %v6264_v48 = vld [vmem:[%s6661_s2 + $0x2] ss:$0 sm:$0xff] }
 0x248   : > { %4869 = vmatprep.subr.bf16.mxu1 %v5004_v43 }
 0x249   : > { %v6247_v63 = vadd.f32 %v3135_v17, %v2705_v34  ;;  %v6249_v39 = vadd.f32 %v3375_v19, %v3311_v62  ;;  %4870 = vmatpush3.bf16.msra.mxu1 %v5004_v43 }
 0x24a   : > { %v2824_v31 = vpop.f32.mrb[156].mxu0 }
 0x24b   : > { %v2711_v10 = vpop.f32.mrb[156].mxu1  ;;  %v3248_v27 = vrot.slane %v2824_v31, 2  ;;  %v2826_v45 = vpop.f32.mrb[157].mxu0 }
 0x24c   : > { %v2713_v47 = vpop.f32.mrb[157].mxu1  ;;  %v3376_v0 = vrot.slane %v2826_v45, 3  ;;  %v2828_v26 = vpop.f32.mrb[158].mxu0 }
 0x24d   : > { %v3136_v29 = vrot.slane %v2713_v47, 1  ;;  %v2715_v49 = vpop.f32.mrb[158].mxu1  ;;  %v3312_v9 = vadd.f32 %v3248_v27, %v6159_v53  ;;  %v3249_v21 = vrot.slane %v2828_v26, 2  ;;  %v2830_v15 = vpop.f32.mrb[159].mxu0  ;;  %v5005_v53 = vld [vmem:[#allocation2 + $0xb8] sm:$0xff]  }
 0x24e   : > { %v2717_v3 = vpop.f32.mrb[159].mxu1  ;;  %v3377_v14 = vrot.slane %v2830_v15, 3  ;;  %4871 = vmatprep.subr.bf16.mxu1 %v5005_v53 }
 0x24f   : > { %v6252_v46 = vadd.f32 %v3136_v29, %v2711_v10  ;;  %v3137_v37 = vrot.slane %v2717_v3, 1  ;;  %v6254_v51 = vadd.f32 %v3376_v0, %v3312_v9  ;;  %v3313_v54 = vadd.f32 %v3249_v21, %v6167_v56  ;;  %4872 = vmatpush3.bf16.msra.mxu1 %v5005_v53 }
 0x251   : > { %6675 = vst [vmem:[#allocation8_spill] sm:$0xff] %v6252_v46  ;;  %v6257_v7 = vadd.f32 %v3137_v37, %v2715_v49  ;;  %v6259_v42 = vadd.f32 %v3377_v14, %v3313_v54 }
 0x252   : > { %v2834_v2 = vpop.f32.mrb[160].mxu0 }
 0x253   : > { %6676 = vst [vmem:[#allocation9_spill] sm:$0xff] %v6257_v7  ;;  %v4827_v57 = vpop.f32.mrb[160].mxu1  ;;  %v3250_v59 = vrot.slane %v2834_v2, 2  ;;  %v2836_v61 = vpop.f32.mrb[161].mxu0 }
 0x254   : > { %v3492_v34 = vrot.slane %v4827_v57, 4  ;;  %v2947_v18 = vpop.f32.mrb[161].mxu1  ;;  %v3378_v56 = vrot.slane %v2836_v61, 3  ;;  %v2838_v23 = vpop.f32.mrb[162].mxu0 }
 0x255   : > { %v3490_v58 = vrot.slane %v2947_v18, 4  ;;  %v4828_v17 = vpop.f32.mrb[162].mxu1  ;;  %v3314_v19 = vadd.f32 %v3250_v59, %v6172_v44  ;;  %v3251_v10 = vrot.slane %v2838_v23, 2  ;;  %v2840_v27 = vpop.f32.mrb[163].mxu0 }
 0x256   : > { %v3556_v62 = vadd.f32 %v3492_v34, %v6188_v36  ;;  %v3493_v31 = vrot.slane %v4828_v17, 4  ;;  %v2950_v47 = vpop.f32.mrb[163].mxu1  ;;  %v3379_v29 = vrot.slane %v2840_v27, 3 }
 0x257   : > { %v3554_v45 = vadd.f32 %v3490_v58, %v6175_v33  ;;  %v3491_v0 = vrot.slane %v2950_v47, 4  ;;  %v6270_v26 = vadd.f32 %v3378_v56, %v3314_v19  ;;  %v3315_v9 = vadd.f32 %v3251_v10, %v6178_v13 }
 0x258   : > { %v3595_v49 = vadd.f32 %v6264_v48, %v3556_v62  ;;  %v3557_v21 = vadd.f32 %v3493_v31, %v6193_v4 }
 0x259   : > { %v3593_v44 = vadd.f32 %v6264_v48, %v3554_v45  ;;  %v3555_v36 = vadd.f32 %v3491_v0, %v6181_v1  ;;  %v6277_v33 = vadd.f32 %v3379_v29, %v3315_v9 }
 0x25a   : > { %v3627_v3 = vmax.f32 %v3595_v49, 0.0  ;;  %v3596_v15 = vadd.f32 %v6264_v48, %v3557_v21  ;;  %v2844_v37 = vpop.f32.mrb[164].mxu0 }
 0x25b   : > { %v3625_v6 = vmax.f32 %v3593_v44, 0.0  ;;  %v3594_v43 = vadd.f32 %v6264_v48, %v3555_v36  ;;  %v4831_v14 = vpop.f32.mrb[164].mxu1  ;;  %v3252_v4 = vrot.slane %v2844_v37, 2  ;;  %v2846_v57 = vpop.f32.mrb[165].mxu0 }
 0x25c   : > { %v3672_v13 = vsel %vm3657_vm10, %v3627_v3, -inf  ;;  %v3628_v54 = vmax.f32 %v3596_v15, 0.0  ;;  %v3496_v2 = vrot.slane %v4831_v14, 4  ;;  %v2963_v59 = vpop.f32.mrb[165].mxu1  ;;  %v3380_v61 = vrot.slane %v2846_v57, 3  ;;  %v2848_v18 = vpop.f32.mrb[166].mxu0 }
 0x25d   : > { %v3673_v34 = vrot.slane %v3672_v13, 4  ;;  %v3658_v1 = vsel %vm3657_vm10, %v3625_v6, -inf  ;;  %v3626_v53 = vmax.f32 %v3594_v43, 0.0  ;;  %v4832_v56 = vpop.f32.mrb[166].mxu1  ;;  %v3316_v17 = vadd.f32 %v3252_v4, %v6186_v25  ;;  %v2850_v62 = vpop.f32.mrb[167].mxu0 }
 0x25e   : > { %v3659_v58 = vrot.slane %v3658_v1, 4  ;;  %v3679_v23 = vsel %vm3657_vm10, %v3628_v54, -inf  ;;  %v3560_v19 = vadd.f32 %v3496_v2, %v6214_v11  ;;  %v2966_v10 = vpop.f32.mrb[167].mxu1  ;;  %v3494_v45 = vrot.slane %v2963_v59, 4 }
 0x25f   : > { %v3674_v31 = vmax.f32 %v3672_v13, %v3673_v34  ;;  %v3680_v27 = vrot.slane %v3679_v23, 4  ;;  %v3665_v47 = vsel %vm3657_vm10, %v3626_v53, -inf  ;;  %v6287_v9 = vadd.f32 %v3380_v61, %v3316_v17 }
 0x260   : > { %v3660_v29 = vmax.f32 %v3658_v1, %v3659_v58  ;;  %v3666_v0 = vrot.slane %v3665_v47, 4  ;;  %v3599_v49 = vadd.f32 %v6264_v48, %v3560_v19  ;;  %v3558_v36 = vadd.f32 %v3494_v45, %v6200_v22 }
 0x261   : > { %v3675_v21 = vrot.slane %v3674_v31, 2  ;;  %v3681_v44 = vmax.f32 %v3679_v23, %v3680_v27  ;;  %v3253_v25 = vrot.slane %v2848_v18, 2  ;;  %v3497_v6 = vrot.slane %v4832_v56, 4 }
 0x262   : > { %v3661_v3 = vrot.slane %v3660_v29, 2  ;;  %v3667_v11 = vmax.f32 %v3665_v47, %v3666_v0  ;;  %v3631_v15 = vmax.f32 %v3599_v49, 0.0  ;;  %v3597_v37 = vadd.f32 %v6264_v48, %v3558_v36  ;;  %v2854_v13 = vpop.f32.mrb[168].mxu0 }
 0x263   : > { %v3682_v43 = vrot.slane %v3681_v44, 2  ;;  %v3317_v14 = vadd.f32 %v3253_v25, %v6191_v20  ;;  %v4835_v54 = vpop.f32.mrb[168].mxu1  ;;  %v3561_v59 = vadd.f32 %v3497_v6, %v6219_v60  ;;  %v2856_v34 = vpop.f32.mrb[169].mxu0  ;;  %v3676_v1 = vmax.f32 %v3674_v31, %v3675_v21 }
 0x264   : > { %v3662_v4 = vmax.f32 %v3660_v29, %v3661_v3  ;;  %v3668_v2 = vrot.slane %v3667_v11, 2  ;;  %v3700_v57 = vsel %vm3657_vm10, %v3631_v15, -inf  ;;  %v2979_v22 = vpop.f32.mrb[169].mxu1  ;;  %v3629_v61 = vmax.f32 %v3597_v37, 0.0  ;;  %v2858_v18 = vpop.f32.mrb[170].mxu0 }
 0x265   : > { %v3701_v53 = vrot.slane %v3700_v57, 4  ;;  %v4836_v56 = vpop.f32.mrb[170].mxu1  ;;  %v3600_v17 = vadd.f32 %v6264_v48, %v3561_v59  ;;  %v3381_v20 = vrot.slane %v2850_v62, 3  ;;  %v2860_v19 = vpop.f32.mrb[171].mxu0  ;;  %v3683_v47 = vmax.f32 %v3681_v44, %v3682_v43 }
 0x266   : > { %v3663_v58 = vrot.slane %v3662_v4, 1  ;;  %v3669_v23 = vmax.f32 %v3667_v11, %v3668_v2  ;;  %v6295_v27 = vpop.f32.mrb[171].mxu1  ;;  %v3686_v45 = vsel %vm3657_vm10, %v3629_v61, -inf  ;;  %v3677_v31 = vrot.slane %v3676_v1, 1 }
 0x267   : > { %v3702_v60 = vmax.f32 %v3700_v57, %v3701_v53  ;;  %v3687_v0 = vrot.slane %v3686_v45, 4  ;;  %v3632_v49 = vmax.f32 %v3600_v17, 0.0  ;;  %v6298_v36 = vadd.f32 %v3381_v20, %v3317_v14 }
 0x268   : > { %v3670_v29 = vrot.slane %v3669_v23, 1  ;;  %v3664_v21 = vmax.f32 %v3662_v4, %v3663_v58  ;;  %v3495_v25 = vrot.slane %v2966_v10, 4  ;;  %v3254_v62 = vrot.slane %v2854_v13, 2 }
 0x269   : > { %v3688_v11 = vmax.f32 %v3686_v45, %v3687_v0  ;;  %v3707_v15 = vsel %vm3657_vm10, %v3632_v49, -inf  ;;  %v3684_v6 = vrot.slane %v3683_v47, 1  ;;  %v3500_v43 = vrot.slane %v4835_v54, 4 }
 0x26a   : > { %v3671_v3 = vmax.f32 %v3669_v23, %v3670_v29  ;;  %v3708_v37 = vrot.slane %v3707_v15, 4  ;;  %v3559_v44 = vadd.f32 %v3495_v25, %v6206_v8  ;;  %v2864_v2 = vpop.f32.mrb[172].mxu0  ;;  %v3703_v53 = vrot.slane %v3702_v60, 2 }
 0x26b   : > { %v4839_v59 = vpop.f32.mrb[172].mxu1  ;;  %v3318_v14 = vadd.f32 %v3254_v62, %v6197_v50  ;;  %v3382_v4 = vrot.slane %v2856_v34, 3  ;;  %v2866_v10 = vpop.f32.mrb[173].mxu0  ;;  %v6308_v58 = vmax.f32 %v3676_v1, %v3677_v31  ;;  %v3689_v13 = vrot.slane %v3688_v11, 2 }
 0x26c   : > { %v6303_v57 = vsel %vm3914_vm2, %v3671_v3, %v3664_v21  ;;  %v6306_v61 = vpop.f32.mrb[173].mxu1  ;;  %v3598_v23 = vadd.f32 %v6264_v48, %v3559_v44  ;;  %v3564_v8 = vadd.f32 %v3500_v43, %v6234_v12  ;;  %v6312_v54 = vpop.f32.mrb[174].mxu0  ;;  %v6316_v20 = vmax.f32 %v3707_v15, %v3708_v37 }
 0x26d   : > { %v6314_v17 = vpop.f32.mrb[174].mxu1  ;;  %v6318_v45 = vadd.f32 %v3382_v4, %v3318_v14  ;;  %v3498_v50 = vrot.slane %v2979_v22, 4  ;;  %v3255_v34 = vrot.slane %v2858_v18, 2  ;;  %v6320_v29 = vpop.f32.mrb[175].mxu0  ;;  %v6324_v1 = vmax.f32 %v3683_v47, %v3684_v6 }
 0x26e   : > { %v6322_v0 = vpop.f32.mrb[175].mxu1  ;;  %v3630_v49 = vmax.f32 %v3598_v23, 0.0  ;;  %v3603_v31 = vadd.f32 %v6264_v48, %v3564_v8  ;;  %v3501_v12 = vrot.slane %v4836_v56, 4  ;;  %v6327_v21 = vmax.f32 %v3702_v60, %v3703_v53 }
 0x26f   : > { %6677 = vst [vmem:[#allocation10_spill] sm:$0xff] %v6324_v1  ;;  %v3562_v25 = vadd.f32 %v3498_v50, %v6224_v55  ;;  %v3319_v3 = vadd.f32 %v3255_v34, %v6204_v5  ;;  %v3383_v15 = vrot.slane %v2860_v19, 3  ;;  %v6331_v62 = vmax.f32 %v3688_v11, %v3689_v13 }
 0x270   : > { %v3693_v22 = vsel %vm3657_vm10, %v3630_v49, -inf  ;;  %v3635_v18 = vmax.f32 %v3603_v31, 0.0  ;;  %v3565_v37 = vadd.f32 %v3501_v12, %v6239_v38  ;;  %v3710_v47 = vrot.slane %v6316_v20, 2 }
 0x271   : > { %v3694_v6 = vrot.slane %v3693_v22, 4  ;;  %v3601_v44 = vadd.f32 %v6264_v48, %v3562_v25  ;;  %v6337_v56 = vadd.f32 %v3383_v15, %v3319_v3  ;;  %v3499_v5 = vrot.slane %v6295_v27, 4 }
 0x272   : > { %v3728_v60 = vsel %vm3657_vm10, %v3635_v18, -inf  ;;  %v3604_v55 = vadd.f32 %v6264_v48, %v3565_v37  ;;  %v3256_v19 = vrot.slane %v2864_v2, 2  ;;  %v6342_v11 = vpop.f32.mrb[176].mxu0  ;;  %v3504_v4 = vrot.slane %v4839_v59, 4 }
 0x273   : > { %v6344_v43 = vpop.f32.mrb[176].mxu1  ;;  %v3695_v53 = vmax.f32 %v3693_v22, %v3694_v6  ;;  %v3729_v38 = vrot.slane %v3728_v60, 4  ;;  %v3633_v14 = vmax.f32 %v3601_v44, 0.0  ;;  %v6346_v13 = vpop.f32.mrb[177].mxu0  ;;  %v3563_v50 = vadd.f32 %v3499_v5, %v6229_v16 }
 0x274   : > { %v6348_v23 = vpop.f32.mrb[177].mxu1  ;;  %v3636_v8 = vmax.f32 %v3604_v55, 0.0  ;;  %v3320_v34 = vadd.f32 %v3256_v19, %v6212_v41  ;;  %v3384_v49 = vrot.slane %v2866_v10, 3  ;;  %v6352_v27 = vpop.f32.mrb[178].mxu0  ;;  %v3568_v59 = vadd.f32 %v3504_v4, %v6254_v51 }
 0x275   : > { %v6354_v2 = vpop.f32.mrb[178].mxu1  ;;  %v3696_v31 = vrot.slane %v3695_v53, 2  ;;  %v3730_v12 = vmax.f32 %v3728_v60, %v3729_v38  ;;  %v3714_v25 = vsel %vm3657_vm10, %v3633_v14, -inf  ;;  %v6358_v3 = vpop.f32.mrb[179].mxu0  ;;  %v3602_v41 = vadd.f32 %v6264_v48, %v3563_v50 }
 0x276   : > { %v6360_v15 = vpop.f32.mrb[179].mxu1  ;;  %v3715_v22 = vrot.slane %v3714_v25, 4  ;;  %v3735_v16 = vsel %vm3657_vm10, %v3636_v8, -inf  ;;  %v6364_v10 = vadd.f32 %v3384_v49, %v3320_v34  ;;  %v3607_v44 = vadd.f32 %v6264_v48, %v3568_v59 }
 0x277   : > { %v3697_v18 = vmax.f32 %v3695_v53, %v3696_v31  ;;  %v3731_v37 = vrot.slane %v3730_v12, 2  ;;  %v3736_v6 = vrot.slane %v3735_v16, 4  ;;  %v3634_v55 = vmax.f32 %v3602_v41, 0.0 }
 0x278   : > { %v3716_v60 = vmax.f32 %v3714_v25, %v3715_v22  ;;  %v3502_v51 = vrot.slane %v6306_v61, 4  ;;  %v3257_v5 = vrot.slane %v6312_v54, 2  ;;  %v3691_v19 = vrot.slane %v6331_v62, 1 }
 0x279   : > { %v3698_v38 = vrot.slane %v3697_v18, 1  ;;  %v3737_v14 = vmax.f32 %v3735_v16, %v3736_v6  ;;  %v3639_v4 = vmax.f32 %v3607_v44, 0.0  ;;  %v3721_v50 = vsel %vm3657_vm10, %v3634_v55, -inf }
 0x27a   : > { %v3717_v8 = vrot.slane %v3716_v60, 2  ;;  %v3566_v53 = vadd.f32 %v3502_v51, %v6244_v35  ;;  %v3321_v34 = vadd.f32 %v3257_v5, %v6217_v24  ;;  %v6373_v49 = vpop.f32.mrb[180].mxu0  ;;  %v6379_v54 = vmax.f32 %v6316_v20, %v3710_v47 }
 0x27b   : > { %v6375_v31 = vpop.f32.mrb[180].mxu1  ;;  %v3732_v25 = vmax.f32 %v3730_v12, %v3731_v37  ;;  %v3722_v59 = vrot.slane %v3721_v50, 4  ;;  %v6381_v22 = vpop.f32.mrb[181].mxu0  ;;  %v3738_v41 = vrot.slane %v3737_v14, 2  ;;  %v3756_v35 = vsel %vm3657_vm10, %v3639_v4, -inf }
 0x27c   : > { %v6383_v16 = vpop.f32.mrb[181].mxu1  ;;  %v3605_v24 = vadd.f32 %v6264_v48, %v3566_v53  ;;  %v3505_v6 = vrot.slane %v6314_v17, 4  ;;  %v6388_v44 = vpop.f32.mrb[182].mxu0  ;;  %v6393_v20 = vmax.f32 %v6331_v62, %v3691_v19  ;;  %v3718_v47 = vmax.f32 %v3716_v60, %v3717_v8 }
 0x27d   : > { %v6390_v55 = vpop.f32.mrb[182].mxu1  ;;  %v3723_v12 = vmax.f32 %v3721_v50, %v3722_v59  ;;  %v3757_v37 = vrot.slane %v3756_v35, 4  ;;  %v6395_v51 = vpop.f32.mrb[183].mxu0  ;;  %v6399_v61 = vmax.f32 %v3697_v18, %v3698_v38  ;;  %v3385_v17 = vrot.slane %v6320_v29, 3 }
 0x27e   : > { %v6397_v5 = vpop.f32.mrb[183].mxu1  ;;  %v3637_v4 = vmax.f32 %v3605_v24, 0.0  ;;  %v3569_v53 = vadd.f32 %v3505_v6, %v6259_v42  ;;  %v3733_v7 = vrot.slane %v3732_v25, 1  ;;  %v3503_v62 = vrot.slane %v6322_v0, 4 }
 0x27f   : > { %6678 = vst [vmem:[#allocation11_spill] sm:$0xff] %v6399_v61  ;;  %v3724_v46 = vrot.slane %v3723_v12, 2  ;;  %v3758_v1 = vmax.f32 %v3756_v35, %v3757_v37  ;;  %v3739_v19 = vmax.f32 %v3737_v14, %v3738_v41  ;;  %v6406_v50 = vadd.f32 %v3385_v17, %v3321_v34 }
 0x280   : > { %v3742_v60 = vsel %vm3657_vm10, %v3637_v4, -inf  ;;  %v3608_v8 = vadd.f32 %v6264_v48, %v3569_v53  ;;  %v3719_v59 = vrot.slane %v3718_v47, 1  ;;  %v3567_v42 = vadd.f32 %v3503_v62, %v6249_v39 }
 0x281   : > { %v3725_v18 = vmax.f32 %v3723_v12, %v3724_v46  ;;  %v3759_v38 = vrot.slane %v3758_v1, 2  ;;  %v3743_v24 = vrot.slane %v3742_v60, 4  ;;  %v3258_v29 = vrot.slane %v6342_v11, 2 }
 0x282   : > { %v3640_v61 = vmax.f32 %v3608_v8, 0.0  ;;  %v3508_v35 = vrot.slane %v6344_v43, 4  ;;  %v6411_v6 = vpop.f32.mrb[184].mxu0  ;;  %v6415_v14 = vmax.f32 %v3732_v25, %v3733_v7  ;;  %v3386_v37 = vrot.slane %v6346_v13, 3 }
 0x283   : > { %v6413_v0 = vpop.f32.mrb[184].mxu1  ;;  %v3726_v41 = vrot.slane %v3725_v18, 1  ;;  %v3744_v34 = vmax.f32 %v3742_v60, %v3743_v24  ;;  %v6418_v46 = vpop.f32.mrb[185].mxu0  ;;  %v3606_v11 = vadd.f32 %v6264_v48, %v3567_v42  ;;  %v3322_v43 = vadd.f32 %v3258_v29, %v6222_v30 }
 0x284   : > { %v6420_v12 = vpop.f32.mrb[185].mxu1  ;;  %v3763_v39 = vsel %vm3657_vm10, %v3640_v61, -inf  ;;  %v3572_v4 = vadd.f32 %v3508_v35, %v6287_v9  ;;  %v6426_v53 = vpop.f32.mrb[186].mxu0  ;;  %v3720_v25 = vmax.f32 %v3718_v47, %v3719_v59  ;;  %v3740_v17 = vrot.slane %v3739_v19, 1 }
 0x285   : > { %v6428_v7 = vpop.f32.mrb[186].mxu1  ;;  %v3727_v62 = vmax.f32 %v3725_v18, %v3726_v41  ;;  %v6430_v13 = vmax.f32 %v3758_v1, %v3759_v38  ;;  %v6432_v60 = vpop.f32.mrb[187].mxu0  ;;  %v3638_v61 = vmax.f32 %v3606_v11, 0.0  ;;  %v6437_v42 = vadd.f32 %v3386_v37, %v3322_v43 }
 0x286   : > { %v6434_v8 = vpop.f32.mrb[187].mxu1  ;;  %v3611_v24 = vadd.f32 %v6264_v48, %v3572_v4  ;;  %v3506_v30 = vrot.slane %v6348_v23, 4  ;;  %v3745_v29 = vrot.slane %v3744_v34, 2  ;;  %v3764_v47 = vrot.slane %v3763_v39, 4 }
 0x287   : > { %v6441_v9 = vsel %vm3914_vm2, %v3727_v62, %v3720_v25  ;;  %v3259_v59 = vrot.slane %v6352_v27, 2  ;;  %v3749_v1 = vsel %vm3657_vm10, %v3638_v61, -inf  ;;  %v3509_v35 = vrot.slane %v6354_v2, 4 }
 0x288   : > { %v3643_v18 = vmax.f32 %v3611_v24, 0.0  ;;  %v3570_v38 = vadd.f32 %v3506_v30, %v6270_v26  ;;  %v6447_v41 = vmax.f32 %v3739_v19, %v3740_v17  ;;  %v3750_v11 = vrot.slane %v3749_v1, 4 }
 0x289   : > { %v3323_v23 = vadd.f32 %v3259_v59, %v6227_v52  ;;  %v3573_v27 = vadd.f32 %v3509_v35, %v6298_v36  ;;  %v3387_v25 = vrot.slane %v6358_v3, 3  ;;  %v6459_v2 = vmax.f32 %v3744_v34, %v3745_v29 }
 0x28a   : > { %v3784_v43 = vsel %vm3657_vm10, %v3643_v18, -inf  ;;  %v3609_v4 = vadd.f32 %v6264_v48, %v3570_v38  ;;  %v6455_v62 = vpop.f32.mrb[188].mxu0  ;;  %v6461_v19 = vmax.f32 %v3763_v39, %v3764_v47  ;;  %v3751_v17 = vmax.f32 %v3749_v1, %v3750_v11 }
 0x28b   : > { %v6457_v26 = vpop.f32.mrb[188].mxu1  ;;  %v3785_v61 = vrot.slane %v3784_v43, 4  ;;  %v6463_v24 = vpop.f32.mrb[189].mxu0  ;;  %v3612_v59 = vadd.f32 %v6264_v48, %v3573_v27  ;;  %v6468_v36 = vadd.f32 %v3387_v25, %v3323_v23  ;;  %v3507_v3 = vrot.slane %v6360_v15, 4 }
 0x28c   : > { %v6465_v52 = vpop.f32.mrb[189].mxu1  ;;  %v3641_v30 = vmax.f32 %v3609_v4, 0.0  ;;  %v6471_v18 = vpop.f32.mrb[190].mxu0  ;;  %v3752_v34 = vrot.slane %v3751_v17, 2  ;;  %v3260_v29 = vrot.slane %v6373_v49, 2  ;;  %v3512_v47 = vrot.slane %v6375_v31, 4 }
 0x28d   : > { %v6473_v38 = vpop.f32.mrb[190].mxu1  ;;  %v3786_v39 = vmax.f32 %v3784_v43, %v3785_v61  ;;  %v6477_v1 = vpop.f32.mrb[191].mxu0  ;;  %v3644_v23 = vmax.f32 %v3612_v59, 0.0  ;;  %v3571_v4 = vadd.f32 %v3507_v3, %v6277_v33  ;;  %v3388_v15 = vrot.slane %v6381_v22, 3 }
 0x28e   : > { %6679 = vst [vmem:[#allocation12_spill] sm:$0xff] %v6473_v38  ;;  %v6479_v35 = vpop.f32.mrb[191].mxu1  ;;  %v3770_v11 = vsel %vm3657_vm10, %v3641_v30, -inf  ;;  %v6484_v27 = vmax.f32 %v3751_v17, %v3752_v34  ;;  %v3324_v43 = vadd.f32 %v3260_v29, %v6232_v28  ;;  %v3576_v61 = vadd.f32 %v3512_v47, %v6364_v10 }
 0x28f   : > { %6680 = vst [vmem:[#allocation13_spill] sm:$0xff] %v6479_v35  ;;  %v3787_v25 = vrot.slane %v3786_v39, 2  ;;  %v3771_v37 = vrot.slane %v3770_v11, 4  ;;  %v3791_v49 = vsel %vm3657_vm10, %v3644_v23, -inf  ;;  %v3610_v31 = vadd.f32 %v6264_v48, %v3571_v4 }
 0x290   : > { %v3510_v38 = vrot.slane %v6383_v16, 4  ;;  %v3747_v30 = vrot.slane %v6459_v2, 1  ;;  %v3792_v3 = vrot.slane %v3791_v49, 4  ;;  %v3615_v17 = vadd.f32 %v6264_v48, %v3576_v61 }
 0x291   : > { %v3788_v59 = vmax.f32 %v3786_v39, %v3787_v25  ;;  %v3772_v33 = vmax.f32 %v3770_v11, %v3771_v37  ;;  %v3642_v22 = vmax.f32 %v3610_v31, 0.0  ;;  %v3452_v34 = vadd.f32 %v3388_v15, %v3324_v43 }
 0x292   : > { %v3574_v35 = vadd.f32 %v3510_v38, %v6318_v45  ;;  %v3793_v4 = vmax.f32 %v3791_v49, %v3792_v3  ;;  %v3647_v16 = vmax.f32 %v3615_v17, 0.0  ;;  %v3261_v37 = vrot.slane %v6388_v44, 2 }
 0x293   : > { %v3773_v23 = vrot.slane %v3772_v33, 2  ;;  %v3777_v10 = vsel %vm3657_vm10, %v3642_v22, -inf  ;;  %v3789_v39 = vrot.slane %v3788_v59, 1  ;;  %v3513_v43 = vrot.slane %v6390_v55, 4 }
 0x294   : > { %v3613_v47 = vadd.f32 %v6264_v48, %v3574_v35  ;;  %v3794_v25 = vrot.slane %v3793_v4, 2  ;;  %v3778_v31 = vrot.slane %v3777_v10, 4  ;;  %v3812_v15 = vsel %vm3657_vm10, %v3647_v16, -inf }
 0x295   : > { %v3774_v11 = vmax.f32 %v3772_v33, %v3773_v23  ;;  %v3325_v38 = vadd.f32 %v3261_v37, %v6237_v32  ;;  %v3813_v22 = vrot.slane %v3812_v15, 4  ;;  %v3577_v35 = vadd.f32 %v3513_v43, %v6406_v50 }
 0x296   : > { %v3645_v45 = vmax.f32 %v3613_v47, 0.0  ;;  %v3795_v49 = vmax.f32 %v3793_v4, %v3794_v25  ;;  %v3779_v3 = vmax.f32 %v3777_v10, %v3778_v31  ;;  %v3389_v44 = vrot.slane %v6395_v51, 3 }
 0x297   : > { %v3775_v61 = vrot.slane %v3774_v11, 1  ;;  %v3511_v33 = vrot.slane %v6397_v5, 4  ;;  %v3790_v23 = vmax.f32 %v3788_v59, %v3789_v39  ;;  %v3814_v47 = vmax.f32 %v3812_v15, %v3813_v22 }
 0x298   : > { %v3798_v17 = vsel %vm3657_vm10, %v3645_v45, -inf  ;;  %v3780_v16 = vrot.slane %v3779_v3, 2  ;;  %v3616_v32 = vadd.f32 %v6264_v48, %v3577_v35  ;;  %v3453_v55 = vadd.f32 %v3389_v44, %v3325_v38 }
 0x299   : > { %v3776_v29 = vmax.f32 %v3774_v11, %v3775_v61  ;;  %v3799_v28 = vrot.slane %v3798_v17, 4  ;;  %v3575_v4 = vadd.f32 %v3511_v33, %v6337_v56  ;;  %v3796_v10 = vrot.slane %v3795_v49, 1 }
 0x29a   : > { %v3781_v37 = vmax.f32 %v3779_v3, %v3780_v16  ;;  %v3815_v25 = vrot.slane %v3814_v47, 2  ;;  %v3262_v31 = vrot.slane %v6411_v6, 2  ;;  %v3648_v45 = vmax.f32 %v3616_v32, 0.0 }
 0x29b   : > { %v3800_v50 = vmax.f32 %v3798_v17, %v3799_v28  ;;  %v3614_v51 = vadd.f32 %v6264_v48, %v3575_v4  ;;  %v3516_v5 = vrot.slane %v6413_v0, 4  ;;  %v3390_v15 = vrot.slane %v6418_v46, 3 }
 0x29c   : > { %v3782_v59 = vrot.slane %v3781_v37, 1  ;;  %v3816_v39 = vmax.f32 %v3814_v47, %v3815_v25  ;;  %v3326_v11 = vadd.f32 %v3262_v31, %v6242_v40  ;;  %v3819_v56 = vsel %vm3657_vm10, %v3648_v45, -inf }
 0x29d   : > { %v3801_v38 = vrot.slane %v3800_v50, 2  ;;  %v3646_v43 = vmax.f32 %v3614_v51, 0.0  ;;  %v3580_v61 = vadd.f32 %v3516_v5, %v3452_v34  ;;  %v3797_v3 = vmax.f32 %v3795_v49, %v3796_v10 }
 0x29e   : > { %v3783_v22 = vmax.f32 %v3781_v37, %v3782_v59  ;;  %v3820_v6 = vrot.slane %v3819_v56, 4  ;;  %v6514_v28 = vadd.f32 %v3390_v15, %v3326_v11  ;;  %v3514_v44 = vrot.slane %v6420_v12, 4 }
 0x29f   : > { %v3802_v17 = vmax.f32 %v3800_v50, %v3801_v38  ;;  %v3805_v35 = vsel %vm3657_vm10, %v3646_v43, -inf  ;;  %v3619_v0 = vadd.f32 %v6264_v48, %v3580_v61  ;;  %v3817_v46 = vrot.slane %v3816_v39, 1 }
 0x2a0   : > { %v4063_v40 = vsel %vm3914_vm2, %v3783_v22, %v3776_v29  ;;  %v3821_v33 = vmax.f32 %v3819_v56, %v3820_v6  ;;  %v3806_v16 = vrot.slane %v3805_v35, 4  ;;  %v3578_v32 = vadd.f32 %v3514_v44, %v6437_v42 }
 0x2a1   : > { %v4064_v47 = vsel %vm3916_vm3, %v3790_v23, %v4063_v40  ;;  %v3803_v34 = vrot.slane %v3802_v17, 1  ;;  %v3651_v49 = vmax.f32 %v3619_v0, 0.0  ;;  %v3263_v25 = vrot.slane %v6426_v53, 2 }
 0x2a2   : > { %v4065_v4 = vsel %vm3918_vm4, %v3797_v3, %v4064_v47  ;;  %v3822_v10 = vrot.slane %v3821_v33, 2  ;;  %v3807_v37 = vmax.f32 %v3805_v35, %v3806_v16  ;;  %v3617_v29 = vadd.f32 %v6264_v48, %v3578_v32 }
 0x2a3   : > { %v3804_v31 = vmax.f32 %v3802_v17, %v3803_v34  ;;  %v3840_v12 = vsel %vm3657_vm10, %v3651_v49, -inf  ;;  %v3517_v50 = vrot.slane %v6428_v7, 4  ;;  %v3327_v5 = vadd.f32 %v3263_v25, %v6247_v63 }
 0x2a4   : > { %v3823_v45 = vmax.f32 %v3821_v33, %v3822_v10  ;;  %v3808_v51 = vrot.slane %v3807_v37, 2  ;;  %v3841_v23 = vrot.slane %v3840_v12, 4  ;;  %v3649_v59 = vmax.f32 %v3617_v29, 0.0 }
 0x2a5   : > { %v4066_v42 = vsel %vm3920_vm5, %v3804_v31, %v4065_v4  ;;  %v3581_v11 = vadd.f32 %v3517_v50, %v3453_v55  ;;  %v3391_v15 = vrot.slane %v6432_v60, 3  ;;  %v3748_v53 = vmax.f32 %v6459_v2, %v3747_v30 }
 0x2a6   : > { %v3809_v38 = vmax.f32 %v3807_v37, %v3808_v51  ;;  %v3842_v56 = vmax.f32 %v3840_v12, %v3841_v23  ;;  %v3515_v43 = vrot.slane %v6434_v8, 4  ;;  %v3824_v7 = vrot.slane %v3823_v45, 1  ;;  %v6685_v37 = vld [vmem:[#allocation10_spill] sm:$0xff] }
 0x2a7   : > { %v3826_v61 = vsel %vm3657_vm10, %v3649_v59, -inf  ;;  %v3620_v3 = vadd.f32 %v6264_v48, %v3581_v11  ;;  %v6536_v63 = vadd.f32 %v3391_v15, %v3327_v5  ;;  %v6681_v22 = vrot.slane %v6461_v19, 2  ;;  %v6687_v11 = vld [vmem:[#allocation8_spill] sm:$0xff] }
 0x2a8   : > { %v6682_v60 = vrot.slane %v6484_v27, 1  ;;  %v3810_v2 = vrot.slane %v3809_v38, 1  ;;  %v3827_v30 = vrot.slane %v3826_v61, 4  ;;  %v3818_v17 = vmax.f32 %v3816_v39, %v3817_v46 }
 0x2a9   : > { %v3767_v55 = vmax.f32 %v6461_v19, %v6681_v22  ;;  %v3843_v35 = vrot.slane %v3842_v56, 2  ;;  %v3652_v8 = vmax.f32 %v3620_v3, 0.0  ;;  %v3579_v0 = vadd.f32 %v3515_v43, %v6468_v36 }
 0x2aa   : > { %v3755_v6 = vmax.f32 %v6484_v27, %v6682_v60  ;;  %v3811_v44 = vmax.f32 %v3809_v38, %v3810_v2  ;;  %v3828_v40 = vmax.f32 %v3826_v61, %v3827_v30  ;;  %v6683_v33 = vrot.slane %v6327_v21, 1 }
 0x2ab   : > { %v3712_v47 = vrot.slane %v6379_v54, 1  ;;  %v3825_v19 = vmax.f32 %v3823_v45, %v3824_v7  ;;  %v3847_v34 = vsel %vm3657_vm10, %v3652_v8, -inf  ;;  %v3618_v27 = vadd.f32 %v6264_v48, %v3579_v0  ;;  %v6686_v45 = vld [vmem:[#allocation11_spill] sm:$0xff]  ;;  %v6688_v8 = vld [vmem:[#allocation9_spill] sm:$0xff] }
 0x2ac   : > { %v3706_v16 = vmax.f32 %v6327_v21, %v6683_v33  ;;  %v4050_v39 = vsel %vm3916_vm3, %v6308_v58, %v6303_v57  ;;  %v4067_v46 = vsel %vm3922_vm6, %v3811_v44, %v4066_v42  ;;  %v3829_v36 = vrot.slane %v3828_v40, 2 }
 0x2ad   : > { %v3848_v49 = vrot.slane %v3847_v34, 4  ;;  %v6684_v32 = vrot.slane %v6430_v13, 1  ;;  %v3844_v21 = vmax.f32 %v3842_v56, %v3843_v35  ;;  %v3650_v10 = vmax.f32 %v3618_v27, 0.0 }
 0x2ae   : > { %v4051_v25 = vsel %vm3918_vm4, %v6685_v37, %v4050_v39  ;;  %v4057_v31 = vsel %vm3916_vm3, %v6415_v14, %v6441_v9  ;;  %v3713_v57 = vmax.f32 %v6379_v54, %v3712_v47  ;;  %v3768_v58 = vrot.slane %v3767_v55, 1 }
 0x2af   : > { %v3762_v4 = vmax.f32 %v6430_v13, %v6684_v32  ;;  %v3849_v12 = vmax.f32 %v3847_v34, %v3848_v49  ;;  %v4052_v29 = vsel %vm3920_vm5, %v6393_v20, %v4051_v25  ;;  %v3833_v50 = vsel %vm3657_vm10, %v3650_v10, -inf }
 0x2b0   : > { %v4053_v13 = vsel %vm3922_vm6, %v6686_v45, %v4052_v29  ;;  %v4058_v51 = vsel %vm3918_vm4, %v6447_v41, %v4057_v31  ;;  %v3264_v23 = vrot.slane %v6455_v62, 2  ;;  %v3830_v5 = vmax.f32 %v3828_v40, %v3829_v36  ;;  %v6689_v40 = vld [vmem:[#allocation13_spill] sm:$0xff] }
 0x2b1   : > { %v3850_v42 = vrot.slane %v3849_v12, 2  ;;  %v3834_v14 = vrot.slane %v3833_v50, 4  ;;  %v4054_v9 = vsel %vm3924_vm7, %v3706_v16, %v4053_v13  ;;  %v3845_v54 = vrot.slane %v3844_v21, 1  ;;  %v6690_v16 = vld [vmem:[#allocation12_spill] sm:$0xff] }
 0x2b2   : > { %v4055_v59 = vsel %vm3926_vm8, %v3713_v57, %v4054_v9  ;;  %v4059_v20 = vsel %vm3920_vm5, %v3748_v53, %v4058_v51  ;;  %v3328_v15 = vadd.f32 %v3264_v23, %v6687_v11  ;;  %v3769_v43 = vmax.f32 %v3767_v55, %v3768_v58 }
 0x2b3   : > { %v3851_v38 = vmax.f32 %v3849_v12, %v3850_v42  ;;  %v3835_v56 = vmax.f32 %v3833_v50, %v3834_v14  ;;  %v4060_v7 = vsel %vm3922_vm6, %v3755_v6, %v4059_v20  ;;  %v3392_v62 = vrot.slane %v6463_v24, 3 }
 0x2b4   : > { %v4061_v41 = vsel %vm3924_vm7, %v3762_v4, %v4060_v7  ;;  %v3518_v61 = vrot.slane %v6465_v52, 4  ;;  %v3265_v3 = vrot.slane %v6471_v18, 2  ;;  %v3831_v22 = vrot.slane %v3830_v5, 1 }
 0x2b5   : > { %v3836_v60 = vrot.slane %v3835_v56, 2  ;;  %v4062_v2 = vsel %vm3926_vm8, %v3769_v43, %v4061_v41  ;;  %v3520_v53 = vrot.slane %v6457_v26, 4  ;;  %v3456_v35 = vadd.f32 %v3392_v62, %v3328_v15 }
 0x2b6   : > { %v4083_v30 = vpack.c.bf16 %v4062_v2, %v4055_v59  ;;  %v3582_v55 = vadd.f32 %v3518_v61, %v6514_v28  ;;  %v3329_v6 = vadd.f32 %v3265_v3, %v6688_v8  ;;  %v3852_v0 = vrot.slane %v3851_v38, 1 }
 0x2b7   : > { %v3837_v44 = vmax.f32 %v3835_v56, %v3836_v60  ;;  %v3393_v24 = vrot.slane %v6477_v1, 3  ;;  %v3519_v52 = vrot.slane %v6689_v40, 4  ;;  %v3584_v18 = vadd.f32 %v3520_v53, %v3456_v35 }
 0x2b8   : > { %4873 = vmatprep.mubr.bf16.mxu1 %v4083_v30  ;;  %v3621_v33 = vadd.f32 %v6264_v48, %v3582_v55  ;;  %v3521_v47 = vrot.slane %v6690_v16, 4  ;;  %v4068_v26 = vsel %vm3924_vm7, %v3818_v17, %v4067_v46  ;;  %v3832_v1 = vmax.f32 %v3830_v5, %v3831_v22 }
 0x2b9   : > { %v3838_v34 = vrot.slane %v3837_v44, 1  ;;  %v3457_v27 = vadd.f32 %v3393_v24, %v3329_v6  ;;  %v3583_v28 = vadd.f32 %v3519_v52, %v6536_v63  ;;  %v4069_v39 = vsel %vm3926_vm8, %v3825_v19, %v4068_v26 }
 0x2ba   : > { %v3623_v36 = vadd.f32 %v6264_v48, %v3584_v18  ;;  %v3653_v49 = vmax.f32 %v3621_v33, 0.0  ;;  %v3846_v37 = vmax.f32 %v3844_v21, %v3845_v54  ;;  %v3853_v25 = vmax.f32 %v3851_v38, %v3852_v0 }
 0x2bb   : > { %v3839_v32 = vmax.f32 %v3837_v44, %v3838_v34  ;;  %v3585_v4 = vadd.f32 %v3521_v47, %v3457_v27  ;;  %v3622_v10 = vadd.f32 %v6264_v48, %v3583_v28  ;;  %v4680_v34 = vld [vmem:[%s6663_s4] ss:$0 sm:$0xff] }
 0x2bc   : > { %v3655_v31 = vmax.f32 %v3623_v36, 0.0  ;;  %v3854_v12 = vsel %vm3657_vm10, %v3653_v49, -inf }
 0x2bd   : > { %v4070_v17 = vsel %vm3914_vm2, %v3839_v32, %v3832_v1  ;;  %v3855_v46 = vrot.slane %v3854_v12, 4  ;;  %v3624_v63 = vadd.f32 %v6264_v48, %v3585_v4  ;;  %v3654_v57 = vmax.f32 %v3622_v10, 0.0 }
 0x2be   : > { %v4071_v19 = vsel %vm3916_vm3, %v3846_v37, %v4070_v17  ;;  %v3868_v58 = vsel %vm3657_vm10, %v3655_v31, -inf }
 0x2bf   : > { %v3869_v29 = vrot.slane %v3868_v58, 4  ;;  %v3856_v50 = vmax.f32 %v3854_v12, %v3855_v46  ;;  %v4072_v45 = vsel %vm3918_vm4, %v3853_v25, %v4071_v19  ;;  %v3656_v13 = vmax.f32 %v3624_v63, 0.0 }
 0x2c0   : > { %v3861_v21 = vsel %vm3657_vm10, %v3654_v57, -inf }
 0x2c1   : > { %v3870_v51 = vmax.f32 %v3868_v58, %v3869_v29  ;;  %v3857_v23 = vrot.slane %v3856_v50, 2  ;;  %v3875_v5 = vsel %vm3657_vm10, %v3656_v13, -inf  ;;  %v3862_v42 = vrot.slane %v3861_v21, 4 }
 0x2c2   : > { %v3876_v14 = vrot.slane %v3875_v5, 4 }
 0x2c3   : > { %v3871_v9 = vrot.slane %v3870_v51, 2  ;;  %v3858_v48 = vmax.f32 %v3856_v50, %v3857_v23  ;;  %v3863_v54 = vmax.f32 %v3861_v21, %v3862_v42  ;;  %v4763_v59 = vpop.f32.mrb[192].mxu0 }
 0x2c4   : > { %v3877_v20 = vmax.f32 %v3875_v5, %v3876_v14  ;;  %v4764_v11 = vpop.f32.mrb[193].mxu0 }
 0x2c5   : > { %v3872_v15 = vmax.f32 %v3870_v51, %v3871_v9  ;;  %v3859_v38 = vrot.slane %v3858_v48, 1  ;;  %v3864_v56 = vrot.slane %v3863_v54, 2  ;;  %v4765_v43 = vadd.f32 %v4764_v11, %v4763_v59  ;;  %v4766_v7 = vpop.f32.mrb[194].mxu0 }
 0x2c6   : > { %v3878_v41 = vrot.slane %v3877_v20, 2  ;;  %v4767_v62 = vpop.f32.mrb[195].mxu0 }
 0x2c7   : > { %v3873_v61 = vrot.slane %v3872_v15, 1  ;;  %v3860_v3 = vmax.f32 %v3858_v48, %v3859_v38  ;;  %v3865_v22 = vmax.f32 %v3863_v54, %v3864_v56  ;;  %v4768_v60 = vadd.f32 %v4767_v62, %v4766_v7 }
 0x2c8   : > { %v3879_v2 = vmax.f32 %v3877_v20, %v3878_v41  ;;  %v4321_v36 = vadd.f32 %v4765_v43, %v4680_v34 }
 0x2c9   : > { %v4073_v53 = vsel %vm3920_vm5, %v3860_v3, %v4072_v45  ;;  %v3866_v30 = vrot.slane %v3865_v22, 1  ;;  %v3874_v35 = vmax.f32 %v3872_v15, %v3873_v61 }
 0x2ca   : > { %v3880_v55 = vrot.slane %v3879_v2, 1 }
 0x2cb   : > { %v3867_v8 = vmax.f32 %v3865_v22, %v3866_v30 }
 0x2cc   : > { %v3881_v6 = vmax.f32 %v3879_v2, %v3880_v55 }
 0x2cd   : > { %v4074_v0 = vsel %vm3922_vm6, %v3867_v8, %v4073_v53 }
 0x2ce   : > { %v4075_v44 = vsel %vm3924_vm7, %v3874_v35, %v4074_v0 }
 0x2cf   : > { %v4076_v24 = vsel %vm3926_vm8, %v3881_v6, %v4075_v44 }
 0x2d0   : > { %v4086_v40 = vpack.c.bf16 %v4076_v24, %v4069_v39  ;;  %v4324_v39 = vadd.f32 %v4768_v60, %v4680_v34 }
 0x2d2   : > { %4874 = vmatmul.mubr.bf16.vlgmr.msra.gmra.mrb[192].mxu1 %v4086_v40 }
 0x2fe   : > { %v4769_v52 = vpop.f32.mrb[196].mxu0 }
 0x2ff   : > { %v4770_v18 = vpop.f32.mrb[197].mxu0 }
 0x300   : > { %v4771_v33 = vadd.f32 %v4770_v18, %v4769_v52  ;;  %v4772_v16 = vpop.f32.mrb[198].mxu0 }
 0x301   : > { %v4773_v47 = vpop.f32.mrb[199].mxu0 }
 0x302   : > { %v4774_v26 = vadd.f32 %v4773_v47, %v4772_v16  ;;  %v4329_v27 = vadd.f32 %v4771_v33, %v4680_v34 }
 0x304   : > { %v4332_v32 = vadd.f32 %v4774_v26, %v4680_v34 }
 0x3a5   : > { %v4875_v28 = vpop.f32.mrb[192].mxu1 }
 0x3a6   : > { %v4378_v49 = vadd.f32 %v4875_v28, %v4329_v27  ;;  %v4369_v1 = vpop.f32.mrb[193].mxu1 }
 0x3a7   : > { %v4370_v4 = vadd.f32 %v4369_v1, %v4321_v36  ;;  %v4876_v10 = vpop.f32.mrb[194].mxu1 }
 0x3a8   : > { %v4381_v37 = vadd.f32 %v4876_v10, %v4332_v32  ;;  %v4372_v25 = vpop.f32.mrb[195].mxu1  ;;  %4388 = vmax.xlane.f32.xlu1 %v4378_v49 }
 0x3a9   : > { %v4373_v31 = vadd.f32 %v4372_v25, %v4324_v39  ;;  %4384 = vmax.xlane.f32.xlu0 %v4370_v4 }
 0x3ac   : > { %4390 = vmax.xlane.f32.xlu1 %v4381_v37 }
 0x3ad   : > { %4386 = vmax.xlane.f32.xlu0 %v4373_v31 }
 0x435   : > { %v4389_v12 = vpop.xlane.xlu1 %4388 }
 0x436   : > { %v4394_v17 = vsub.f32 %v4378_v49, %v4389_v12  ;;  %v4385_v46 = vpop.xlane.xlu0 %4384 }
 0x437   : > { %v4392_v63 = vsub.f32 %v4370_v4, %v4385_v46 }
 0x438   : > { %v4400_v58 = vmul.f32 1.442695, %v4394_v17 }
 0x439   : > { %v4396_v57 = vmul.f32 1.442695, %v4392_v63  ;;  %v4391_v19 = vpop.xlane.xlu1 %4390 }
 0x43a   : > { %v4387_v29 = vpop.xlane.xlu0 %4386  ;;  %v4395_v50 = vsub.f32 %v4381_v37, %v4391_v19 }
 0x43b   : > { %5006 = vpow2.f32 %v4396_v57  ;;  %v4393_v45 = vsub.f32 %v4373_v31, %v4387_v29 }
 0x43c   : > { %5008 = vpow2.f32 %v4400_v58  ;;  %v4402_v21 = vmul.f32 1.442695, %v4395_v50 }
 0x43d   : > { %v4398_v13 = vmul.f32 1.442695, %v4393_v45 }
 0x43f   : > { %5010 = vpow2.f32 %v4398_v13 }
 0x440   : > { %5012 = vpow2.f32 %v4402_v21 }
 0x445   : > { %v5007_v51 = vpop.eup %5006 }
 0x446   : > { %4404 = vadd.xlane.f32.xlu0 %v5007_v51  ;;  %v5009_v23 = vpop.eup %5008 }
 0x449   : > { %v5011_v5 = vpop.eup %5010 }
 0x44a   : > { %4406 = vadd.xlane.f32.xlu1 %v5011_v5  ;;  %4408 = vadd.xlane.f32.xlu0 %v5009_v23  ;;  %v5013_v42 = vpop.eup %5012 }
 0x44e   : > { %4410 = vadd.xlane.f32.xlu1 %v5013_v42 }
 0x4d3   : > { %v4405_v14 = vpop.xlane.xlu0 %4404 }
 0x4d4   : > { %5014 = vlog2.f32 %v4405_v14 }
 0x4d7   : > { %v4409_v9 = vpop.xlane.xlu0 %4408  ;;  %v4407_v48 = vpop.xlane.xlu1 %4406 }
 0x4d8   : > { %5016 = vlog2.f32 %v4409_v9 }
 0x4d9   : > { %5018 = vlog2.f32 %v4407_v48 }
 0x4db   : > { %v4411_v54 = vpop.xlane.xlu1 %4410 }
 0x4dc   : > { %5020 = vlog2.f32 %v4411_v54 }
 0x4de   : > { %v5015_v59 = vpop.eup %5014 }
 0x4df   : > { %v4413_v20 = vmul.f32 0.6931472, %v5015_v59 }
 0x4e1   : > { %v4420_v11 = vsub.f32 %v4392_v63, %v4413_v20 }
 0x4e2   : > { %v5017_v15 = vpop.eup %5016 }
 0x4e3   : > { %v5019_v38 = vpop.eup %5018  ;;  %4424 = vst [vmem:[%s233_s7] sm:$0xff] %v4420_v11  ;;  %v4417_v56 = vmul.f32 0.6931472, %v5017_v15 }
 0x4e4   : > { %v4415_v43 = vmul.f32 0.6931472, %v5019_v38 }
 0x4e5   : > { %v4422_v7 = vsub.f32 %v4394_v17, %v4417_v56 }
 0x4e6   : > { %v5021_v41 = vpop.eup %5020  ;;  %v4421_v62 = vsub.f32 %v4393_v45, %v4415_v43 }
 0x4e7   : > { %4426 = vst [vmem:[%s233_s7 + $0x10] sm:$0xff] %v4422_v7  ;;  %v4419_v61 = vmul.f32 0.6931472, %v5021_v41 }
 0x4e8   : > { %4425 = vst [vmem:[%s233_s7 + $0x8] sm:$0xff] %v4421_v62 }
 0x4e9   : > { %v4423_v3 = vsub.f32 %v4395_v50, %v4419_v61 }
 0x4eb   : > { %4427 = vst [vmem:[%s233_s7 + $0x18] sm:$0xff] %v4423_v3 }
 0x4ec   : > { %5081 = shalt.err (!%p5078_p7)
}
 0x4ed   : > { %s5082_s26 = scalar_lea.hbm %s6616_s16, 512  ;;  %s5086_s9 = scalar_lea.hbm %s6664_s5, 1024 }
 0x4ee   : > { %p5083_p8 = scmp.ne.s32.totalorder %s6616_s16, %s5082_s26  ;;  %p5087_p1 = scmp.lt.u32.totalorder %s6616_s16, %s6664_s5 }
 0x4ef   : > { %p5088_p0 = scmp.lt.u32.totalorder %s5086_s9, %s5082_s26  ;;  %p5090_p6 = scmp.lt.u32.totalorder %s5082_s26, %s6616_s16 }
 0x4f0   : > { %p5084_p11 = pnand %p5083_p8, %p6691_p9 }
 0x4f1   : > { %p5089_p5 = por %p5088_p0, %p5087_p1 }
 0x4f2   : > { %p5085_p13 = pneg %p5084_p11 }
 0x4f3   : > { %p5091_p10 = por %p5090_p6, %p5089_p5 }
 0x4f5   : > { %p5092_p12 = pnand %p5091_p10, %p5085_p13 }
 0x4f7   : > { %5095 = shalt.err (!%p5092_p12)
}
 0x4f8   : > { %s5141_s7 = smov 128   ;;  %s5142_s12 = smov 8  }
 0x4f9   : > { %4881 = dma.vmem_to_hbm [thread:$0]  (%p6691_p9), %s6611_s11, 512, %s6616_s16, %s6618_s17, %s5141_s7, %s5141_s7, %s5142_s12  }
 0x4fa PF: > { %p4893_p2 = scmp.ge.s32.totalorder %s5134_s21, 2  ;;  %s4457_s13 = sand.u32 1, %s5122_s18  }
 0x4fb   : > { %p6692_p3 = scmp.ne.s32.totalorder %s6669_s29, 0  ;;  %s4458_s14 = scalar_lea.sflag [#allocation4], %s4457_s13 }
 0x4fd   : > { %p4888_p4 = pnand %p4893_p2, %p6692_p3 }
 0x4ff   : > { %5117 = dma.done.wait (!%p4888_p4), %s4458_s14, 512  }
 0x500   : > { %5119 = vsyncadd (!%p4888_p4), %s4458_s14, 4294966784  ;;  %p16_p7 = scmp.ge.s32.totalorder %s5198_s24, 4   ;;  %s6693_s18 = smov %s5126_s19 }
 0x501   : > { %s6694_s19 = smov %s5130_s20  ;;  %s6695_s20 = smov %s5209_s27 }
 0x502   : > { %s6696_s21 = smov %s5198_s24  ;;  %18 = sbr.rel (!%p16_p7) target bundleno = 4 (0x4), region = 80 }
 0x509   :  { %4463 = vsyncpa [#allocation3], 1 }
 0x50a   :  { %4465 = vsyncpa [#allocation3 + $0x1], 1 }
 0x50b   :  { %4466 = vsyncpa [#allocation4], 1 }
 0x50c   :  { %4468 = vsyncpa [#allocation4 + $0x1], 1 }

</bundles_post_ra>
